<compile_context>
chip_gen: v7x
topology: tpu7x:2x2x1
jax: 0.10.0
libtpu: 0.0.40
codegen_flags: <defaults>
</compile_context>

<pallas_src>
import functools

import jax
import jax.numpy as jnp
from jax.experimental import pallas as pl
from jax.experimental.pallas import tpu as pltpu


LN_EPS = 1e-5   # PyTorch nn.LayerNorm default
LANE = 128      # TPU lane width
SUBLANE = 8


def _pad_to(n, m):
    return ((n + m - 1) // m) * m


# --------------------------- hardware / feature probes ----------------------

_BUFFERED_OK = None


def _buffered_supported():
    """One-time probe: does BlockSpec(pipeline_mode=pl.Buffered(1)) compile+run?"""
    global _BUFFERED_OK
    if _BUFFERED_OK is None:
        try:
            def _probe_kernel(x_ref, o_ref):
                o_ref[...] = x_ref[...] + 1.0

            spec = pl.BlockSpec((8, 128), lambda i: (0, 0),
                                pipeline_mode=pl.Buffered(1))
            f = pl.pallas_call(
                _probe_kernel,
                out_shape=jax.ShapeDtypeStruct((8, 128), jnp.float32),
                grid=(2,),
                in_specs=[spec],
                out_specs=pl.BlockSpec((8, 128), lambda i: (0, 0)),
            )
            jax.block_until_ready(f(jnp.zeros((8, 128), jnp.float32)))
            _BUFFERED_OK = True
        except Exception:
            _BUFFERED_OK = False
    return _BUFFERED_OK


def _tpu_vmem_capacity():
    """Physical VMEM bytes per TensorCore (falls back to the v7x 64 MiB)."""
    try:
        cap = int(pltpu.get_tpu_info().vmem_capacity_bytes)
        if cap > 0:
            return cap
    except Exception:
        pass
    return 64 << 20


# ------------------------------- kernel -------------------------------------

def _layernorm_1pass(h, g, b, inv_d, eps):
    """Single-pass LN (E[h^2]-E[h]^2).  `h` is zero in padded lanes, so the
    sums are exact; gamma/beta are zero in padded lanes, so output stays zero."""
    s1 = jnp.sum(h, axis=-1, keepdims=True) * inv_d
    s2 = jnp.sum(h * h, axis=-1, keepdims=True) * inv_d
    var = jnp.maximum(s2 - s1 * s1, 0.0)
    return (h - s1) * jax.lax.rsqrt(var + eps) * g + b


def _layernorm_2pass(h, g, b, inv_d, eps, real_d, padded_d):
    """Mean-shifted (two-pass) LN for the feature_norm: robust when raw
    observations have |mean| >> std.  Padded lanes are masked out of the
    centered values so the variance stays exact."""
    mu = jnp.sum(h, axis=-1, keepdims=True) * inv_d
    hc = h - mu
    if padded_d != real_d:
        lane = jax.lax.broadcasted_iota(jnp.int32, (1, padded_d), 1)
        hc = jnp.where(lane < real_d, hc, 0.0)
    var = jnp.sum(hc * hc, axis=-1, keepdims=True) * inv_d
    return hc * jax.lax.rsqrt(var + eps) * g + b


def _make_kernel(n_layers, dims, dims_p, eps):
    """Kernel refs: (x, fn_vec, [W, vec] * n_layers, out).

    fn_vec : (2, obs_p)   rows = [gamma, beta]
    W      : (din_p, dout_p) bf16
    vec    : (3, dout_p)  rows = [bias, gamma, beta]
    """
    inv = [1.0 / float(d) for d in dims]

    def kernel(*refs):
        x_ref = refs[0]
        fn_ref = refs[1]
        o_ref = refs[-1]
        layer_refs = refs[2:-1]

        h = x_ref[...].astype(jnp.float32)

        # feature_norm (two-pass variance, lane-masked)
        fn = fn_ref[...]
        h = _layernorm_2pass(h, fn[0:1, :], fn[1:2, :], inv[0], eps,
                             dims[0], dims_p[0])

        # mlp: Linear -> ReLU -> LayerNorm, repeated
        for li in range(n_layers):
            w_ref = layer_refs[2 * li]
            vec = layer_refs[2 * li + 1][...]
            # bf16 MXU inputs, f32 accumulation.
            h = jnp.dot(h.astype(jnp.bfloat16), w_ref[...],
                        preferred_element_type=jnp.float32) + vec[0:1, :]
            h = jnp.maximum(h, 0.0)
            h = _layernorm_1pass(h, vec[1:2, :], vec[2:3, :], inv[li + 1], eps)

        o_ref[...] = h.astype(o_ref.dtype)

    return kernel


# ----------------------- parameter packing (hoisted) -------------------------

def pack_params(fn_gamma, fn_beta, layers):
    """Pad/pack weights ONCE (out of the per-call hot path).

    Returns (packed, dims):
      packed = (fn_vec, ((W1p, vec1), (W2p, vec2), ...))   lane-padded arrays
      dims   = (obs, d1, d2, ..., hidden)                   real widths (static)
    """
    obs = fn_gamma.shape[0]
    dims = [obs] + [W.shape[1] for (W, _, _, _) in layers]
    dims_p = [_pad_to(d, LANE) for d in dims]

    fn_vec = jnp.zeros((2, dims_p[0]), jnp.float32)
    fn_vec = fn_vec.at[0, :obs].set(fn_gamma.astype(jnp.float32))
    fn_vec = fn_vec.at[1, :obs].set(fn_beta.astype(jnp.float32))

    packed_layers = []
    din_p = dims_p[0]
    for li, (W, b, g, be) in enumerate(layers):
        din, dout = W.shape
        dout_p = dims_p[li + 1]
        Wp = jnp.zeros((din_p, dout_p), jnp.bfloat16).at[:din, :dout].set(
            W.astype(jnp.bfloat16))
        vec = jnp.zeros((3, dout_p), jnp.float32)
        vec = vec.at[0, :dout].set(b.astype(jnp.float32))
        vec = vec.at[1, :dout].set(g.astype(jnp.float32))
        vec = vec.at[2, :dout].set(be.astype(jnp.float32))
        packed_layers.append((Wp, vec))
        din_p = dout_p

    return (fn_vec, tuple(packed_layers)), tuple(dims)


# ------------------------------ tile selection -------------------------------

def _choose_tb(B, dims_p, out_itemsize, vmem_cap, w_factor):
    obs_p, out_p, max_w = dims_p[0], dims_p[-1], max(dims_p)

    # VMEM held by the grid-invariant operands (weights + packed vectors).
    w_bytes = w_factor * SUBLANE * obs_p * 4
    d_prev = obs_p
    for d in dims_p[1:]:
        w_bytes += w_factor * (d_prev * d * 2 + SUBLANE * d * 4)
        d_prev = d

    # Budget for the batch-tiled operands + live f32 activations.
    act_budget = max(4 << 20, (vmem_cap - (16 << 20) - w_bytes) // 2)
    per_row = 2 * obs_p * 4 + 2 * out_p * out_itemsize + 3 * max_w * 4
    cap = max(SUBLANE, (act_budget // per_row) // SUBLANE * SUBLANE)

    desired = min(512, cap)
    if desired >= 256:
        desired = (desired // 256) * 256      # MXU-M friendly on v6e/v7x
    elif desired >= 128:
        desired = 128

    B_p8 = _pad_to(B, SUBLANE)
    if B_p8 >= 2 * 256:
        # Keep >= 2 grid steps so both v7x TensorCores get work.
        desired = min(desired, max(256, ((B_p8 // 2) // 256) * 256))

    if B_p8 <= desired:
        return B_p8, w_bytes
    return desired, w_bytes


# ------------------------------- forward ------------------------------------

@functools.partial(jax.jit, static_argnums=(2, 3, 4))
def _forward_impl(x, packed, dims, buffered_ok, vmem_cap):
    fn_vec, packed_layers = packed
    dims = list(dims)
    dims_p = [_pad_to(d, LANE) for d in dims]
    obs, out_dim = dims[0], dims[-1]
    obs_p, out_p = dims_p[0], dims_p[-1]
    n_layers = len(packed_layers)
    B = x.shape[0]

    out_dtype = x.dtype
    out_itemsize = jnp.dtype(out_dtype).itemsize
    w_factor = 1 if buffered_ok else 2

    tb, w_bytes = _choose_tb(B, dims_p, out_itemsize, vmem_cap, w_factor)
    B_p = _pad_to(B, tb)

    # Pad x (single fused pad under jit; padded lanes/rows are exactly zero).
    xf = x.astype(jnp.float32)
    if (B_p, obs_p) != (B, obs):
        xf = jnp.pad(xf, ((0, B_p - B), (0, obs_p - obs)))

    const_kw = {"pipeline_mode": pl.Buffered(1)} if buffered_ok else {}

    in_specs = [
        pl.BlockSpec((tb, obs_p), lambda i: (i, 0)),                  # x tile
        pl.BlockSpec((2, obs_p), lambda i: (0, 0), **const_kw),       # [g; b]
    ]
    args = [xf, fn_vec]
    din_p = obs_p
    for (Wp, vec) in packed_layers:
        dout_p = Wp.shape[1]
        in_specs.append(pl.BlockSpec((din_p, dout_p), lambda i: (0, 0), **const_kw))
        in_specs.append(pl.BlockSpec((3, dout_p), lambda i: (0, 0), **const_kw))
        args += [Wp, vec]
        din_p = dout_p

    # ---- VMEM budget (generation-aware; leave headroom on v7x) -------------
    vmem_bytes = (2 * tb * obs_p * 4                 # x tile (double-buffered)
                  + 2 * tb * out_p * out_itemsize    # out tile (double-buffered)
                  + w_bytes                          # weights / packed vectors
                  + 3 * tb * max(dims_p) * 4)        # live f32 activations
    vmem_limit = max(32 << 20, vmem_bytes + (8 << 20))
    vmem_limit = int(max(16 << 20, min(vmem_limit, vmem_cap - (12 << 20))))

    # ---- cost hint so XLA overlaps this small custom call -------------------
    flops = 2 * B_p * sum(dims_p[i] * dims_p[i + 1] for i in range(n_layers))
    bytes_accessed = (B_p * obs_p * 4 + B_p * out_p * out_itemsize
                      + 2 * obs_p * 4
                      + sum(dims_p[i] * dims_p[i + 1] * 2 + 3 * dims_p[i + 1] * 4
                            for i in range(n_layers)))
    cost = pl.CostEstimate(flops=int(flops),
                           transcendentals=int(B_p * (n_layers + 1)),
                           bytes_accessed=int(bytes_accessed))

    kernel = _make_kernel(n_layers, tuple(dims), tuple(dims_p), LN_EPS)

    out = pl.pallas_call(
        kernel,
        out_shape=jax.ShapeDtypeStruct((B_p, out_p), out_dtype),
        grid_spec=pltpu.PrefetchScalarGridSpec(
            num_scalar_prefetch=0,
            grid=(B_p // tb,),
            in_specs=in_specs,
            out_specs=pl.BlockSpec((tb, out_p), lambda i: (i, 0)),
        ),
        compiler_params=pltpu.CompilerParams(
            dimension_semantics=("parallel",),
            vmem_limit_bytes=vmem_limit,
        ),
        cost_estimate=cost,
    )(*args)

    if (B_p, out_p) != (B, out_dim):
        out = out[:B, :out_dim]
    return out


def representation_forward(x, packed, dims):
    """Fused representation network forward.

    x      : (B, obs)
    packed : output of pack_params (lane-padded weights; computed once)
    dims   : tuple of real widths (obs, d1, ..., hidden)
    """
    return _forward_impl(x, packed, tuple(int(d) for d in dims),
                         bool(_buffered_supported()), int(_tpu_vmem_capacity()))


# ----------------------- deterministic parameter init -----------------------

def _orthogonal(key, shape, gain):
    """Equivalent of nn.init.orthogonal_ for a (rows, cols) weight."""
    rows, cols = shape
    n = max(rows, cols)
    a = jax.random.normal(key, (n, min(rows, cols)), dtype=jnp.float32)
    q, r = jnp.linalg.qr(a)
    q = q * jnp.sign(jnp.diagonal(r))
    q = q[:rows, :cols] if rows >= cols else q[:cols, :rows].T
    return gain * q


def build_params(key, observation_size, fc_layers, hidden_state_size):
    """Matches RepresentationNetwork.__init__: orthogonal(gain=sqrt(2)) Linear
    weights, zero biases, unit/zero LayerNorm affine params."""
    gain = float(jnp.sqrt(2.0))  # nn.init.calculate_gain('relu')
    fn_gamma = jnp.ones((observation_size,), jnp.float32)
    fn_beta = jnp.zeros((observation_size,), jnp.float32)

    sizes = [observation_size] + list(fc_layers) + [hidden_state_size]
    layers = []
    for i in range(len(sizes) - 1):
        key, sub = jax.random.split(key)
        # PyTorch Linear weight is (out, in); orthogonal-init it, then transpose
        # to (in, out) for the kernel's act @ W layout.
        W_pt = _orthogonal(sub, (sizes[i + 1], sizes[i]), gain)
        W = W_pt.T
        b = jnp.zeros((sizes[i + 1],), jnp.float32)
        g = jnp.ones((sizes[i + 1],), jnp.float32)
        be = jnp.zeros((sizes[i + 1],), jnp.float32)
        layers.append((W, b, g, be))
    return fn_gamma, fn_beta, layers


# ------------------------------ references ----------------------------------

def _layernorm_ref(h, g, b, eps):
    mu = jnp.mean(h, axis=-1, keepdims=True)
    var = jnp.mean((h - mu) ** 2, axis=-1, keepdims=True)
    return (h - mu) * jax.lax.rsqrt(var + eps) * g + b


def reference_forward(x, fn_gamma, fn_beta, layers, eps=LN_EPS,
                      matmul_dtype=jnp.float32):
    h = _layernorm_ref(x.astype(jnp.float32), fn_gamma, fn_beta, eps)
    for (W, b, g, be) in layers:
        z = jnp.dot(h.astype(matmul_dtype), W.astype(matmul_dtype),
                    preferred_element_type=jnp.float32) + b
        h = _layernorm_ref(jnp.maximum(z, 0.0), g, be, eps)
    return h


if __name__ == "__main__":
    key = jax.random.PRNGKey(0)

    batch = 512                    # two 256-row tiles -> grid=(2,), both v7x TCs busy
    observation_size = 32
    fc_representation_layers = [64]
    hidden_state_size = 32

    k_x, k_p = jax.random.split(key)
    x = jax.random.normal(k_x, (batch, observation_size), dtype=jnp.float32)
    fn_gamma, fn_beta, layers = build_params(
        k_p, observation_size, fc_representation_layers, hidden_state_size
    )

    # Pack/pad weights once (hoisted out of the per-call hot path).
    packed, dims = pack_params(fn_gamma, fn_beta, layers)

    out = representation_forward(x, packed, dims)
    out = jax.block_until_ready(out)

    assert out.shape == (batch, hidden_state_size)

    # Tight check against a reference that mimics the kernel's bf16 matmul inputs.
    ref_bf16 = reference_forward(x, fn_gamma, fn_beta, layers,
                                 matmul_dtype=jnp.bfloat16)
    assert jnp.allclose(out, ref_bf16, atol=1e-2, rtol=1e-2), "mismatch vs bf16 reference"

    # Loose check against the exact f32 (PyTorch-semantics) reference; tolerance is
    # widened because the kernel's matmul inputs are bf16.
    ref_f32 = reference_forward(x, fn_gamma, fn_beta, layers)
    max_err = float(jnp.max(jnp.abs(out - ref_f32)))
    assert max_err < 1.5e-1, f"max abs err vs f32 reference: {max_err}"

    print("KERNEL_OK")
</pallas_src>

<mosaic_0001>
module attributes {stable_mosaic.version = 11 : i64} {
  func.func @_probe_kernel(%arg0: i32, %arg1: memref<8x128xf32, #tpu.memory_space<vmem>>, %arg2: memref<8x128xf32, #tpu.memory_space<vmem>>) attributes {dimension_semantics = [#tpu.dimension_semantics<arbitrary>], iteration_bounds = array<i64: 2>, scalar_prefetch = 0 : i64, scratch_operands = 0 : i64, tpu.core_type = #tpu.core_type<tc>, window_params = [{pipeline_mode = #tpu.pipeline_mode<synchronous>, transform_indices = @transform_0, window_bounds = array<i64: 8, 128>}, {pipeline_mode = #tpu.pipeline_mode<synchronous>, transform_indices = @transform_1, window_bounds = array<i64: 8, 128>}]} {
    %c0 = arith.constant 0 : index
    %c0_0 = arith.constant 0 : index
    %0 = vector.load %arg1[%c0, %c0_0] : memref<8x128xf32, #tpu.memory_space<vmem>>, vector<8x128xf32>
    %cst = arith.constant 1.000000e+00 : f32
    %1 = vector.broadcast %cst : f32 to vector<8x128xf32>
    %2 = arith.addf %0, %1 : vector<8x128xf32>
    %c0_1 = arith.constant 0 : index
    %c0_2 = arith.constant 0 : index
    %3 = vector.load %arg2[%c0_1, %c0_2] : memref<8x128xf32, #tpu.memory_space<vmem>>, vector<8x128xf32>
    tpu.vector_store %arg2[%c0_1, %c0_2], %2 {strides = array<i32>} : memref<8x128xf32, #tpu.memory_space<vmem>>, vector<8x128xf32>,
    return
  }
  func.func @transform_0(%arg0: i32) -> (i32, i32) {
    %c0_i32 = arith.constant 0 : i32
    %c0_i32_0 = arith.constant 0 : i32
    %c0_i32_1 = arith.constant 0 : i32
    return %c0_i32, %c0_i32_0 : i32, i32
  }
  func.func @transform_1(%arg0: i32) -> (i32, i32) {
    %c0_i32 = arith.constant 0 : i32
    %c0_i32_0 = arith.constant 0 : i32
    %c0_i32_1 = arith.constant 0 : i32
    return %c0_i32, %c0_i32_0 : i32, i32
  }
}

module attributes {stable_mosaic.version = 11 : i64} {
  func.func @kernel(%arg0: i32, %arg1: memref<256x128xf32, #tpu.memory_space<vmem>>, %arg2: memref<2x128xf32, #tpu.memory_space<vmem>>, %arg3: memref<128x128xbf16, #tpu.memory_space<vmem>>, %arg4: memref<3x128xf32, #tpu.memory_space<vmem>>, %arg5: memref<128x128xbf16, #tpu.memory_space<vmem>>, %arg6: memref<3x128xf32, #tpu.memory_space<vmem>>, %arg7: memref<256x128xf32, #tpu.memory_space<vmem>>) attributes {dimension_semantics = [#tpu.dimension_semantics<parallel>], iteration_bounds = array<i64: 2>, scalar_prefetch = 0 : i64, scratch_operands = 0 : i64, tpu.core_type = #tpu.core_type<tc>, window_params = [{transform_indices = @transform_0, window_bounds = array<i64: 256, 128>}, {pipeline_mode = #tpu.pipeline_mode<synchronous>, transform_indices = @transform_1, window_bounds = array<i64: 2, 128>}, {pipeline_mode = #tpu.pipeline_mode<synchronous>, transform_indices = @transform_2, window_bounds = array<i64: 128, 128>}, {pipeline_mode = #tpu.pipeline_mode<synchronous>, transform_indices = @transform_3, window_bounds = array<i64: 3, 128>}, {pipeline_mode = #tpu.pipeline_mode<synchronous>, transform_indices = @transform_4, window_bounds = array<i64: 128, 128>}, {pipeline_mode = #tpu.pipeline_mode<synchronous>, transform_indices = @transform_5, window_bounds = array<i64: 3, 128>}, {transform_indices = @transform_6, window_bounds = array<i64: 256, 128>}]} {
    %c0 = arith.constant 0 : index
    %c0_0 = arith.constant 0 : index
    %0 = vector.load %arg1[%c0, %c0_0] : memref<256x128xf32, #tpu.memory_space<vmem>>, vector<256x128xf32>
    %c0_1 = arith.constant 0 : index
    %c0_2 = arith.constant 0 : index
    %1 = vector.load %arg2[%c0_1, %c0_2] : memref<2x128xf32, #tpu.memory_space<vmem>>, vector<2x128xf32>
    %2 = vector.extract_strided_slice %1 {offsets = [0, 0], sizes = [1, 128], strides = [1, 1]} : vector<2x128xf32> to vector<1x128xf32>
    %3 = vector.extract_strided_slice %1 {offsets = [1, 0], sizes = [1, 128], strides = [1, 1]} : vector<2x128xf32> to vector<1x128xf32>
    %cst = arith.constant dense<0.000000e+00> : vector<256xf32>
    %4 = vector.multi_reduction <add>, %0, %cst [1] : vector<256x128xf32> to vector<256xf32>
    %5 = vector.shape_cast %4 : vector<256xf32> to vector<256x1xf32>
    %cst_3 = arith.constant 3.125000e-02 : f32
    %6 = vector.broadcast %cst_3 : f32 to vector<256x1xf32>
    %7 = arith.mulf %5, %6 : vector<256x1xf32>
    %8 = vector.broadcast %7 : vector<256x1xf32> to vector<256x128xf32>
    %9 = arith.subf %0, %8 : vector<256x128xf32>
    %10 = tpu.iota {dimensions = array<i32: 1>} : vector<1x128xi32>
    %c32_i32 = arith.constant 32 : i32
    %11 = vector.broadcast %c32_i32 : i32 to vector<1x128xi32>
    %12 = arith.cmpi slt, %10, %11 : vector<1x128xi32>
    %cst_4 = arith.constant 0.000000e+00 : f32
    %13 = vector.shape_cast %12 : vector<1x128xi1> to vector<1x128xi1>
    %14 = vector.broadcast %13 : vector<1x128xi1> to vector<256x128xi1>
    %15 = vector.broadcast %cst_4 : f32 to vector<256x128xf32>
    %16 = arith.select %14, %9, %15 : vector<256x128xi1>, vector<256x128xf32>
    %17 = arith.mulf %16, %16 : vector<256x128xf32>
    %cst_5 = arith.constant dense<0.000000e+00> : vector<256xf32>
    %18 = vector.multi_reduction <add>, %17, %cst_5 [1] : vector<256x128xf32> to vector<256xf32>
    %19 = vector.shape_cast %18 : vector<256xf32> to vector<256x1xf32>
    %cst_6 = arith.constant 3.125000e-02 : f32
    %20 = vector.broadcast %cst_6 : f32 to vector<256x1xf32>
    %21 = arith.mulf %19, %20 : vector<256x1xf32>
    %cst_7 = arith.constant 9.99999974E-6 : f32
    %22 = vector.broadcast %cst_7 : f32 to vector<256x1xf32>
    %23 = arith.addf %21, %22 : vector<256x1xf32>
    %24 = math.rsqrt %23 : vector<256x1xf32>
    %25 = vector.broadcast %24 : vector<256x1xf32> to vector<256x128xf32>
    %26 = arith.mulf %16, %25 : vector<256x128xf32>
    %27 = vector.broadcast %2 : vector<1x128xf32> to vector<256x128xf32>
    %28 = arith.mulf %26, %27 : vector<256x128xf32>
    %29 = vector.broadcast %3 : vector<1x128xf32> to vector<256x128xf32>
    %30 = arith.addf %28, %29 : vector<256x128xf32>
    %c0_8 = arith.constant 0 : index
    %c0_9 = arith.constant 0 : index
    %31 = vector.load %arg4[%c0_8, %c0_9] : memref<3x128xf32, #tpu.memory_space<vmem>>, vector<3x128xf32>
    %32 = arith.truncf %30 : vector<256x128xf32> to vector<256x128xbf16>
    %c0_10 = arith.constant 0 : index
    %c0_11 = arith.constant 0 : index
    %33 = vector.load %arg3[%c0_10, %c0_11] : memref<128x128xbf16, #tpu.memory_space<vmem>>, vector<128x128xbf16>
    %cst_12 = arith.constant dense<0.000000e+00> : vector<256x128xf32>
    %34 = tpu.matmul %32, %33, %cst_12 {dimension_numbers = #tpu.dot_dimension_numbers<[1], [0], [0], [1], [0, 0, 1, 1], [], []>} : vector<256x128xbf16>, vector<128x128xbf16>, vector<256x128xf32> -> vector<256x128xf32>
    %35 = vector.extract_strided_slice %31 {offsets = [0, 0], sizes = [1, 128], strides = [1, 1]} : vector<3x128xf32> to vector<1x128xf32>
    %36 = vector.broadcast %35 : vector<1x128xf32> to vector<256x128xf32>
    %37 = arith.addf %34, %36 : vector<256x128xf32>
    %cst_13 = arith.constant 0.000000e+00 : f32
    %38 = vector.broadcast %cst_13 : f32 to vector<256x128xf32>
    %39 = arith.maximumf %37, %38 : vector<256x128xf32>
    %40 = vector.extract_strided_slice %31 {offsets = [1, 0], sizes = [1, 128], strides = [1, 1]} : vector<3x128xf32> to vector<1x128xf32>
    %41 = vector.extract_strided_slice %31 {offsets = [2, 0], sizes = [1, 128], strides = [1, 1]} : vector<3x128xf32> to vector<1x128xf32>
    %cst_14 = arith.constant dense<0.000000e+00> : vector<256xf32>
    %42 = vector.multi_reduction <add>, %39, %cst_14 [1] : vector<256x128xf32> to vector<256xf32>
    %43 = vector.shape_cast %42 : vector<256xf32> to vector<256x1xf32>
    %cst_15 = arith.constant 1.562500e-02 : f32
    %44 = vector.broadcast %cst_15 : f32 to vector<256x1xf32>
    %45 = arith.mulf %43, %44 : vector<256x1xf32>
    %46 = arith.mulf %39, %39 : vector<256x128xf32>
    %cst_16 = arith.constant dense<0.000000e+00> : vector<256xf32>
    %47 = vector.multi_reduction <add>, %46, %cst_16 [1] : vector<256x128xf32> to vector<256xf32>
    %48 = vector.shape_cast %47 : vector<256xf32> to vector<256x1xf32>
    %cst_17 = arith.constant 1.562500e-02 : f32
    %49 = vector.broadcast %cst_17 : f32 to vector<256x1xf32>
    %50 = arith.mulf %48, %49 : vector<256x1xf32>
    %51 = arith.mulf %45, %45 : vector<256x1xf32>
    %52 = arith.subf %50, %51 : vector<256x1xf32>
    %cst_18 = arith.constant 0.000000e+00 : f32
    %53 = vector.broadcast %cst_18 : f32 to vector<256x1xf32>
    %54 = arith.maximumf %52, %53 : vector<256x1xf32>
    %55 = vector.broadcast %45 : vector<256x1xf32> to vector<256x128xf32>
    %56 = arith.subf %39, %55 : vector<256x128xf32>
    %cst_19 = arith.constant 9.99999974E-6 : f32
    %57 = vector.broadcast %cst_19 : f32 to vector<256x1xf32>
    %58 = arith.addf %54, %57 : vector<256x1xf32>
    %59 = math.rsqrt %58 : vector<256x1xf32>
    %60 = vector.broadcast %59 : vector<256x1xf32> to vector<256x128xf32>
    %61 = arith.mulf %56, %60 : vector<256x128xf32>
    %62 = vector.broadcast %40 : vector<1x128xf32> to vector<256x128xf32>
    %63 = arith.mulf %61, %62 : vector<256x128xf32>
    %64 = vector.broadcast %41 : vector<1x128xf32> to vector<256x128xf32>
    %65 = arith.addf %63, %64 : vector<256x128xf32>
    %c0_20 = arith.constant 0 : index
    %c0_21 = arith.constant 0 : index
    %66 = vector.load %arg6[%c0_20, %c0_21] : memref<3x128xf32, #tpu.memory_space<vmem>>, vector<3x128xf32>
    %67 = arith.truncf %65 : vector<256x128xf32> to vector<256x128xbf16>
    %c0_22 = arith.constant 0 : index
    %c0_23 = arith.constant 0 : index
    %68 = vector.load %arg5[%c0_22, %c0_23] : memref<128x128xbf16, #tpu.memory_space<vmem>>, vector<128x128xbf16>
    %cst_24 = arith.constant dense<0.000000e+00> : vector<256x128xf32>
    %69 = tpu.matmul %67, %68, %cst_24 {dimension_numbers = #tpu.dot_dimension_numbers<[1], [0], [0], [1], [0, 0, 1, 1], [], []>} : vector<256x128xbf16>, vector<128x128xbf16>, vector<256x128xf32> -> vector<256x128xf32>
    %70 = vector.extract_strided_slice %66 {offsets = [0, 0], sizes = [1, 128], strides = [1, 1]} : vector<3x128xf32> to vector<1x128xf32>
    %71 = vector.broadcast %70 : vector<1x128xf32> to vector<256x128xf32>
    %72 = arith.addf %69, %71 : vector<256x128xf32>
    %cst_25 = arith.constant 0.000000e+00 : f32
    %73 = vector.broadcast %cst_25 : f32 to vector<256x128xf32>
    %74 = arith.maximumf %72, %73 : vector<256x128xf32>
    %75 = vector.extract_strided_slice %66 {offsets = [1, 0], sizes = [1, 128], strides = [1, 1]} : vector<3x128xf32> to vector<1x128xf32>
    %76 = vector.extract_strided_slice %66 {offsets = [2, 0], sizes = [1, 128], strides = [1, 1]} : vector<3x128xf32> to vector<1x128xf32>
    %cst_26 = arith.constant dense<0.000000e+00> : vector<256xf32>
    %77 = vector.multi_reduction <add>, %74, %cst_26 [1] : vector<256x128xf32> to vector<256xf32>
    %78 = vector.shape_cast %77 : vector<256xf32> to vector<256x1xf32>
    %cst_27 = arith.constant 3.125000e-02 : f32
    %79 = vector.broadcast %cst_27 : f32 to vector<256x1xf32>
    %80 = arith.mulf %78, %79 : vector<256x1xf32>
    %81 = arith.mulf %74, %74 : vector<256x128xf32>
    %cst_28 = arith.constant dense<0.000000e+00> : vector<256xf32>
    %82 = vector.multi_reduction <add>, %81, %cst_28 [1] : vector<256x128xf32> to vector<256xf32>
    %83 = vector.shape_cast %82 : vector<256xf32> to vector<256x1xf32>
    %cst_29 = arith.constant 3.125000e-02 : f32
    %84 = vector.broadcast %cst_29 : f32 to vector<256x1xf32>
    %85 = arith.mulf %83, %84 : vector<256x1xf32>
    %86 = arith.mulf %80, %80 : vector<256x1xf32>
    %87 = arith.subf %85, %86 : vector<256x1xf32>
    %cst_30 = arith.constant 0.000000e+00 : f32
    %88 = vector.broadcast %cst_30 : f32 to vector<256x1xf32>
    %89 = arith.maximumf %87, %88 : vector<256x1xf32>
    %90 = vector.broadcast %80 : vector<256x1xf32> to vector<256x128xf32>
    %91 = arith.subf %74, %90 : vector<256x128xf32>
    %cst_31 = arith.constant 9.99999974E-6 : f32
    %92 = vector.broadcast %cst_31 : f32 to vector<256x1xf32>
    %93 = arith.addf %89, %92 : vector<256x1xf32>
    %94 = math.rsqrt %93 : vector<256x1xf32>
    %95 = vector.broadcast %94 : vector<256x1xf32> to vector<256x128xf32>
    %96 = arith.mulf %91, %95 : vector<256x128xf32>
    %97 = vector.broadcast %75 : vector<1x128xf32> to vector<256x128xf32>
    %98 = arith.mulf %96, %97 : vector<256x128xf32>
    %99 = vector.broadcast %76 : vector<1x128xf32> to vector<256x128xf32>
    %100 = arith.addf %98, %99 : vector<256x128xf32>
    %c0_32 = arith.constant 0 : index
    %c0_33 = arith.constant 0 : index
    %101 = vector.load %arg7[%c0_32, %c0_33] : memref<256x128xf32, #tpu.memory_space<vmem>>, vector<256x128xf32>
    tpu.vector_store %arg7[%c0_32, %c0_33], %100 {strides = array<i32>} : memref<256x128xf32, #tpu.memory_space<vmem>>, vector<256x128xf32>,
    return
  }
  func.func @transform_0(%arg0: i32) -> (i32, i32) {
    %c0_i32 = arith.constant 0 : i32
    %c0_i32_0 = arith.constant 0 : i32
    return %arg0, %c0_i32 : i32, i32
  }
  func.func @transform_1(%arg0: i32) -> (i32, i32) {
    %c0_i32 = arith.constant 0 : i32
    %c0_i32_0 = arith.constant 0 : i32
    %c0_i32_1 = arith.constant 0 : i32
    return %c0_i32, %c0_i32_0 : i32, i32
  }
  func.func @transform_2(%arg0: i32) -> (i32, i32) {
    %c0_i32 = arith.constant 0 : i32
    %c0_i32_0 = arith.constant 0 : i32
    %c0_i32_1 = arith.constant 0 : i32
    return %c0_i32, %c0_i32_0 : i32, i32
  }
  func.func @transform_3(%arg0: i32) -> (i32, i32) {
    %c0_i32 = arith.constant 0 : i32
    %c0_i32_0 = arith.constant 0 : i32
    %c0_i32_1 = arith.constant 0 : i32
    return %c0_i32, %c0_i32_0 : i32, i32
  }
  func.func @transform_4(%arg0: i32) -> (i32, i32) {
    %c0_i32 = arith.constant 0 : i32
    %c0_i32_0 = arith.constant 0 : i32
    %c0_i32_1 = arith.constant 0 : i32
    return %c0_i32, %c0_i32_0 : i32, i32
  }
  func.func @transform_5(%arg0: i32) -> (i32, i32) {
    %c0_i32 = arith.constant 0 : i32
    %c0_i32_0 = arith.constant 0 : i32
    %c0_i32_1 = arith.constant 0 : i32
    return %c0_i32, %c0_i32_0 : i32, i32
  }
  func.func @transform_6(%arg0: i32) -> (i32, i32) {
    %c0_i32 = arith.constant 0 : i32
    %c0_i32_0 = arith.constant 0 : i32
    return %arg0, %c0_i32 : i32, i32
  }
}

</mosaic_0001>

<bundles_post_ra>
// kernel: tpu_custom_call.1
= control target key start
LH: loop header
LB: loop body
LE: loop exit
PB: predicated region body
PF: predicated region fallthrough
CT: control target
= control target key end

     0   :  { %6 = vsyncpa [#allocation3], 0  ;;  %s341_s0 = inlined_call_operand.hbm [shape: f32[8,128], index: 0, kind: input, shape index: {}]   ;;  %s342_s1 = inlined_call_operand.hbm [shape: f32[8,128], index: 1, kind: output, shape index: {}]  }
   0x1   :  { %7 = vsyncpa [#allocation4], 0  ;;  %s262_s6 = smov 0  }
   0x2 LB: > { %s145_s7 = sadd.s32 4294967295, %s248_s6   ;;  %p146_p0 = scmp.ge.s32.totalorder %s248_s6, 1  ;;  %s248_s6 = sphi %s262_s6, %s13_s6  }
   0x3   : > { %p60_p1 = scmp.lt.s32.totalorder %s248_s6, 3  ;;  %p276_p3 = scmp.eq.s32.totalorder %s145_s7, 0 }
   0x4   : > { %s250_s10 = smov [#allocation2]   ;;  %s180_s15 = scalar_lea.hbm %s341_s0, 128 }
   0x5   : > { %p270_p2 = pnand %p146_p0, %p60_p1  ;;  %s73_s11 = sshll.u32 %s250_s10, 4  ;;  %s74_s11 = int_to_ptr.vmem [resolvable:$true] %s73_s11 }
   0x6   : > { %s347_s9 = scalar_select %p276_p3, 1, 0 }
   0x7   : > { %s346_s8 = scalar_select %p270_p2, 1, 0 }
   0x8   : > { %p162_p4 = pneg %p270_p2  ;;  %p181_p6 = scmp.ne.s32.totalorder %s341_s0, %s180_s15 }
   0x9   : > { %p187_p10 = scmp.lt.u32.totalorder %s180_s15, %s341_s0 }
   0xa   : > { %p284_p5 = pnand %p276_p3, %p162_p4 }
   0xc   : > { %p182_p7 = pneg %p284_p5 }
   0xe   : > { %p183_p8 = pnand %p182_p7, %p181_p6 }
  0x10   : > { %p184_p9 = pneg %p183_p8 }
  0x12   : > { %p189_p11 = pnand %p187_p10, %p184_p9 }
  0x14   : > { %192 = shalt.err (!%p189_p11)
}
  0x15   : > { %s193_s20 = scalar_lea.vmem %s74_s11, 128  ;;  %p201_p1 = scmp.lt.s32.totalorder %s74_s11, %s74_s11 }
  0x16   : > { %p194_p12 = scmp.ne.s32.totalorder %s74_s11, %s193_s20  ;;  %p202_p4 = scmp.lt.s32.totalorder %s193_s20, %s193_s20 }
  0x18   : > { %p196_p13 = pnand %p194_p12, %p182_p7  ;;  %p203_p3 = por %p202_p4, %p201_p1 }
  0x1a   : > { %p197_p0 = pneg %p196_p13 }
  0x1c   : > { %p204_p2 = pnand %p203_p3, %p197_p0 }
  0x1e   : > { %207 = shalt.err (!%p204_p2)
}
  0x1f   : > { %165 = dma.hbm_to_vmem [thread:$0]  (!%p284_p5), %s341_s0, 128, %s74_s11, [#allocation3]  }
  0x20   : > { %p349_p6 = scmp.ne.s32.totalorder %s346_s8, 0 }
  0x21   : > { %p350_p8 = scmp.ne.s32.totalorder (!%p349_p6), %s347_s9, 0 }
  0x22   : > { %86 = sbr.rel (%p349_p6) target bundleno = 67 (0x43), region = 24 }
  0x29   : > { %239 = dma.done.wait (%p350_p8), [#allocation3], 128  }
  0x2a   : > { %241 = vsyncadd (%p350_p8), [#allocation3], 4294967168  ;;  %s251_s23 = smov [#allocation5]   ;;  %v96_v0 = vld [vmem:[#allocation2] sm:$0xff]  ;;  %p312_p2 = scmp.eq.s32.totalorder %s145_s7, 1 }
  0x2b   : > { %s106_s24 = sshll.u32 %s251_s23, 4  ;;  %v97_v1 = vadd.f32 1.0, %v96_v0  ;;  %s107_s24 = int_to_ptr.vmem [resolvable:$true] %s106_s24 }
  0x2c   : > { %s208_s26 = scalar_lea.vmem %s107_s24, 128  ;;  %p215_p9 = scmp.lt.s32.totalorder %s107_s24, %s107_s24 }
  0x2d   : > { %98 = vst [vmem:[#allocation5] sm:$0xff] %v97_v1  ;;  %p209_p3 = scmp.ne.s32.totalorder %s107_s24, %s208_s26  ;;  %p216_p10 = scmp.lt.s32.totalorder %s208_s26, %s208_s26 }
  0x2f   : > { %p210_p5 = pnand %p209_p3, %p312_p2  ;;  %p217_p11 = por %p216_p10, %p215_p9 }
  0x31   : > { %p211_p7 = pneg %p210_p5 }
  0x33   : > { %p218_p12 = pnand %p217_p11, %p211_p7 }
  0x35   : > { %221 = shalt.err (!%p218_p12)
}
  0x36   : > { %s222_s29 = scalar_lea.hbm %s342_s1, 128 }
  0x37   : > { %p223_p13 = scmp.ne.s32.totalorder %s342_s1, %s222_s29  ;;  %p228_p4 = scmp.lt.u32.totalorder %s222_s29, %s342_s1 }
  0x39   : > { %p224_p0 = pnand %p223_p13, %p312_p2 }
  0x3b   : > { %p225_p1 = pneg %p224_p0 }
  0x3d   : > { %p230_p6 = pnand %p228_p4, %p225_p1 }
  0x3f   : > { %233 = shalt.err (!%p230_p6)
}
  0x40   : > { %159 = dma.vmem_to_hbm [thread:$0]  (%p312_p2), %s107_s24, 128, %s342_s1, [#allocation4]  }
  0x41   : > { %243 = dma.done.wait (%p312_p2), [#allocation4], 128  }
  0x42   : > { %245 = vsyncadd (%p312_p2), [#allocation4], 4294967168 }
  0x43 PF: > { %s13_s6 = sadd.s32 1, %s248_s6  }
  0x44   : > { %p10_p8 = scmp.ge.s32.totalorder %s13_s6, 4  }
  0x46   :  { %12 = sbr.rel (!%p10_p8) target bundleno = 2 (0x2), region = 53 }
  0x4d   :  { %119 = vsyncpa [#allocation3], 1 }
  0x4e   :  { %121 = vsyncpa [#allocation3 + $0x1], 1 }
  0x4f   :  { %122 = vsyncpa [#allocation4], 1 }
  0x50   :  { %124 = vsyncpa [#allocation4 + $0x1], 1 }

// kernel: _forward_impl.1
= control target key start
LH: loop header
LB: loop body
LE: loop exit
PB: predicated region body
PF: predicated region fallthrough
CT: control target
= control target key end

     0   :  { %s2866_s21 = smov 0   ;;  %s4401_s0 = inlined_call_operand.vmem [shape: f32[512,128], index: 0, kind: input, shape index: {}]   ;;  %s4402_s1 = inlined_call_operand.vmem [shape: f32[2,128], index: 1, kind: input, shape index: {}]   ;;  %s4403_s2 = inlined_call_operand.vmem [shape: bf16[128,128], index: 2, kind: input, shape index: {}]   ;;  %s4404_s3 = inlined_call_operand.vmem [shape: f32[3,128], index: 3, kind: input, shape index: {}]   ;;  %s4405_s4 = inlined_call_operand.vmem [shape: bf16[128,128], index: 4, kind: input, shape index: {}]   ;;  %s4406_s5 = inlined_call_operand.vmem [shape: f32[3,128], index: 5, kind: input, shape index: {}]   ;;  %s4407_s6 = inlined_call_operand.vmem [shape: f32[512,128], index: 6, kind: output, shape index: {}]  }
   0x1 LB: > { %s2434_s22 = sadd.s32 4294967295, %s2829_s21   ;;  %p2438_p0 = scmp.ge.s32.totalorder %s2829_s21, 1  ;;  %s2829_s21 = sphi %s2866_s21, %s16_s21  }
   0x2   : > { %p213_p1 = scmp.lt.s32.totalorder %s2829_s21, 3 }
   0x4   : > { %p214_p2 = pnand %p2438_p0, %p213_p1 }
   0x6   : > { %217 = sbr.rel (%p214_p2) target bundleno = 1252 (0x4e4), region = 44 }
   0xd   : > { %s2439_s23 = sshll.u32 %s2434_s22, 5  ;;  %v417_v12 = vlaneseq  ;;  %v750_v18 = vld [vmem:[%s4404_s3] sm:$0x7] }
   0xe   : > { %p244_p3 = scmp.lt.s32.totalorder %s2439_s23, 63  ;;  %v1548_v19 = vld [vmem:[%s4406_s5] sm:$0x7] }
   0xf   : > { %v2932_v13 = vshrl.u32 %v417_v12, 7  ;;  %v2613_v42 = vld [vmem:[%s4403_s2] sm:$0xff]   ;;  %v3037_v43 = vand.u32 127, %v417_v12 }
  0x10   : > { %s4415_s23 = smov (!%p244_p3, %s2439_s23), 63  ;;  %2509 = vmatprep.subr.bf16.mxu0 %v2613_v42 }
  0x11   : > { %s2440_s24 = sshll.u32 %s4415_s23, 3  ;;  %v1514_v16 = vsub.s32 2, %v2932_v13  ;;  %v2942_v17 = vsub.s32 1, %v2932_v13  ;;  %2510 = vmatpush3.bf16.msra.mxu0 %v2613_v42  ;;  %vm419_vm0 = vcmp.lt.s32.totalorder %v3037_v43, 32 }
  0x12   : > { %s2882_s27 = scalar_lea.vmem %s4401_s0, %s2440_s24  ;;  %s4147_s30 = scalar_lea.vmem %s4407_s6, %s2440_s24 }
  0x13   : > { %v2885_v0 = vld [vmem:[%s2882_s27] sm:$0xff]  ;;  %v2888_v1 = vld [vmem:[%s2882_s27 + $0x10] sm:$0xff]  ;;  %v2893_v2 = vld [vmem:[%s2882_s27 + $0x8] sm:$0xff]  ;;  %v2959_v22 = vrot.slane %v750_v18, %v2942_v17  ;;  %v2961_v23 = vrot.slane %v750_v18, %v1514_v16  ;;  %v2964_v24 = vrot.slane %v1548_v19, %v2942_v17  ;;  %v2966_v25 = vrot.slane %v1548_v19, %v1514_v16 }
  0x14   : > { %289 = vadd.xlane.f32.xlu0 %v2885_v0  ;;  %293 = vadd.xlane.f32.xlu1 %v2888_v1  ;;  %v2896_v3 = vld [vmem:[%s2882_s27 + $0x18] sm:$0xff]  ;;  %v2901_v4 = vld [vmem:[%s2882_s27 + $0x20] sm:$0xff]  ;;  %v2904_v5 = vld [vmem:[%s2882_s27 + $0x28] sm:$0xff] }
  0x15   : > { %v2909_v6 = vld [vmem:[%s2882_s27 + $0x30] sm:$0xff]  ;;  %v2912_v7 = vld [vmem:[%s2882_s27 + $0x38] sm:$0xff]  ;;  %v2915_v8 = vld [vmem:[%s2882_s27 + $0x40] sm:$0xff]  ;;  %4410 = vst [vmem:[#allocation2_spill] sm:$0xff] %v2964_v24 }
  0x16   : > { %v2918_v9 = vld [vmem:[%s2882_s27 + $0x48] sm:$0xff]  ;;  %v2925_v10 = vld [vmem:[%s2882_s27 + $0x50] sm:$0xff]  ;;  %v2928_v11 = vld [vmem:[%s2882_s27 + $0x58] sm:$0xff]  ;;  %4411 = vst [vmem:[#allocation3_spill] sm:$0xff] %v2966_v25 }
  0x17   : > { %v2935_v14 = vld [vmem:[%s2882_s27 + $0x60] sm:$0xff]  ;;  %v2938_v15 = vld [vmem:[%s2882_s27 + $0x68] sm:$0xff]  ;;  %v2953_v20 = vld [vmem:[%s2882_s27 + $0x70] sm:$0xff] }
  0x18   : > { %291 = vadd.xlane.f32.xlu0 %v2893_v2  ;;  %295 = vadd.xlane.f32.xlu1 %v2896_v3  ;;  %v2956_v21 = vld [vmem:[%s2882_s27 + $0x78] sm:$0xff]  ;;  %v2971_v26 = vld [vmem:[%s2882_s27 + $0x80] sm:$0xff]  ;;  %v2974_v27 = vld [vmem:[%s2882_s27 + $0x88] sm:$0xff] }
  0x19   : > { %v2979_v28 = vld [vmem:[%s2882_s27 + $0x90] sm:$0xff]  ;;  %v2982_v29 = vld [vmem:[%s2882_s27 + $0x98] sm:$0xff]  ;;  %v2987_v30 = vld [vmem:[%s2882_s27 + $0xa0] sm:$0xff] }
  0x1a   : > { %v2990_v31 = vld [vmem:[%s2882_s27 + $0xa8] sm:$0xff]  ;;  %v2995_v32 = vld [vmem:[%s2882_s27 + $0xb0] sm:$0xff]  ;;  %v2998_v33 = vld [vmem:[%s2882_s27 + $0xb8] sm:$0xff] }
  0x1b   : > { %v3003_v34 = vld [vmem:[%s2882_s27 + $0xc0] sm:$0xff]  ;;  %v3006_v35 = vld [vmem:[%s2882_s27 + $0xc8] sm:$0xff]  ;;  %v3011_v36 = vld [vmem:[%s2882_s27 + $0xd0] sm:$0xff] }
  0x1c   : > { %297 = vadd.xlane.f32.xlu0 %v2901_v4  ;;  %299 = vadd.xlane.f32.xlu1 %v2904_v5  ;;  %v3014_v37 = vld [vmem:[%s2882_s27 + $0xd8] sm:$0xff]  ;;  %v3019_v38 = vld [vmem:[%s2882_s27 + $0xe0] sm:$0xff]  ;;  %v3022_v39 = vld [vmem:[%s2882_s27 + $0xe8] sm:$0xff] }
  0x1d   : > { %v3027_v40 = vld [vmem:[%s2882_s27 + $0xf0] sm:$0xff]  ;;  %v3030_v41 = vld [vmem:[%s2882_s27 + $0xf8] sm:$0xff] }
  0x20   : > { %301 = vadd.xlane.f32.xlu0 %v2909_v6  ;;  %303 = vadd.xlane.f32.xlu1 %v2912_v7 }
  0x24   : > { %305 = vadd.xlane.f32.xlu0 %v2915_v8  ;;  %307 = vadd.xlane.f32.xlu1 %v2918_v9 }
  0x28   : > { %309 = vadd.xlane.f32.xlu0 %v2925_v10  ;;  %311 = vadd.xlane.f32.xlu1 %v2928_v11 }
  0x2c   : > { %313 = vadd.xlane.f32.xlu0 %v2935_v14  ;;  %315 = vadd.xlane.f32.xlu1 %v2938_v15 }
  0x30   : > { %317 = vadd.xlane.f32.xlu0 %v2953_v20  ;;  %319 = vadd.xlane.f32.xlu1 %v2956_v21 }
  0x34   : > { %321 = vadd.xlane.f32.xlu0 %v2971_v26  ;;  %323 = vadd.xlane.f32.xlu1 %v2974_v27 }
  0x38   : > { %325 = vadd.xlane.f32.xlu0 %v2979_v28  ;;  %327 = vadd.xlane.f32.xlu1 %v2982_v29 }
  0x3c   : > { %329 = vadd.xlane.f32.xlu0 %v2987_v30  ;;  %331 = vadd.xlane.f32.xlu1 %v2990_v31 }
  0x40   : > { %333 = vadd.xlane.f32.xlu0 %v2995_v32  ;;  %335 = vadd.xlane.f32.xlu1 %v2998_v33 }
  0x44   : > { %337 = vadd.xlane.f32.xlu0 %v3003_v34  ;;  %339 = vadd.xlane.f32.xlu1 %v3006_v35 }
  0x48   : > { %341 = vadd.xlane.f32.xlu0 %v3011_v36  ;;  %343 = vadd.xlane.f32.xlu1 %v3014_v37 }
  0x4c   : > { %345 = vadd.xlane.f32.xlu0 %v3019_v38  ;;  %347 = vadd.xlane.f32.xlu1 %v3022_v39 }
  0x50   : > { %349 = vadd.xlane.f32.xlu0 %v3027_v40  ;;  %351 = vadd.xlane.f32.xlu1 %v3030_v41 }
  0xa1   : > { %v290_v44 = vpop.xlane.xlu0 %289  ;;  %v294_v45 = vpop.xlane.xlu1 %293 }
  0xa2   : > { %v353_v46 = vmul.f32 0.03125, %v290_v44  ;;  %v355_v47 = vmul.f32 0.03125, %v294_v45 }
  0xa4   : > { %v385_v48 = vsub.f32 %v2885_v0, %v353_v46  ;;  %v387_v49 = vsub.f32 %v2888_v1, %v355_v47 }
  0xa5   : > { %v292_v50 = vpop.xlane.xlu0 %291  ;;  %v296_v51 = vpop.xlane.xlu1 %295 }
  0xa6   : > { %v354_v52 = vmul.f32 0.03125, %v292_v50  ;;  %v356_v53 = vmul.f32 0.03125, %v296_v51  ;;  %v3044_v54 = vsel %vm419_vm0, %v385_v48, 0.0  ;;  %v3048_v55 = vsel %vm419_vm0, %v387_v49, 0.0 }
  0xa7   : > { %v454_v56 = vmul.f32 %v3044_v54, %v3044_v54  ;;  %v456_v61 = vmul.f32 %v3048_v55, %v3048_v55 }
  0xa8   : > { %v386_v57 = vsub.f32 %v2893_v2, %v354_v52  ;;  %v388_v58 = vsub.f32 %v2896_v3, %v356_v53 }
  0xa9   : > { %486 = vadd.xlane.f32.xlu0 %v454_v56  ;;  %v298_v59 = vpop.xlane.xlu0 %297  ;;  %v300_v60 = vpop.xlane.xlu1 %299 }
  0xaa   : > { %v357_v62 = vmul.f32 0.03125, %v298_v59  ;;  %v358_v63 = vmul.f32 0.03125, %v300_v60  ;;  %v3058_v0 = vsel %vm419_vm0, %v386_v57, 0.0  ;;  %v3062_v1 = vsel %vm419_vm0, %v388_v58, 0.0 }
  0xab   : > { %v455_v2 = vmul.f32 %v3058_v0, %v3058_v0  ;;  %v457_v19 = vmul.f32 %v3062_v1, %v3062_v1 }
  0xac   : > { %v389_v3 = vsub.f32 %v2901_v4, %v357_v62  ;;  %v390_v12 = vsub.f32 %v2904_v5, %v358_v63 }
  0xad   : > { %490 = vadd.xlane.f32.xlu0 %v456_v61  ;;  %488 = vadd.xlane.f32.xlu1 %v455_v2  ;;  %v302_v16 = vpop.xlane.xlu0 %301  ;;  %v304_v18 = vpop.xlane.xlu1 %303 }
  0xae   : > { %v359_v42 = vmul.f32 0.03125, %v302_v16  ;;  %v360_v44 = vmul.f32 0.03125, %v304_v18  ;;  %v3072_v45 = vsel %vm419_vm0, %v389_v3, 0.0  ;;  %v3076_v46 = vsel %vm419_vm0, %v390_v12, 0.0  ;;  %v2614_v12 = vld [vmem:[%s4403_s2 + $0x8] sm:$0xff]  }
  0xaf   : > { %v458_v4 = vmul.f32 %v3072_v45, %v3072_v45  ;;  %v459_v50 = vmul.f32 %v3076_v46, %v3076_v46  ;;  %2511 = vmatprep.subr.bf16.mxu0 %v2614_v12 }
  0xb0   : > { %v391_v5 = vsub.f32 %v2909_v6, %v359_v42  ;;  %v392_v47 = vsub.f32 %v2912_v7, %v360_v44  ;;  %2512 = vmatpush3.bf16.msra.mxu0 %v2614_v12 }
  0xb1   : > { %492 = vadd.xlane.f32.xlu1 %v457_v19  ;;  %494 = vadd.xlane.f32.xlu0 %v458_v4  ;;  %v306_v48 = vpop.xlane.xlu0 %305  ;;  %v308_v49 = vpop.xlane.xlu1 %307 }
  0xb2   : > { %v361_v51 = vmul.f32 0.03125, %v306_v48  ;;  %v362_v52 = vmul.f32 0.03125, %v308_v49  ;;  %v3086_v53 = vsel %vm419_vm0, %v391_v5, 0.0  ;;  %v3090_v56 = vsel %vm419_vm0, %v392_v47, 0.0 }
  0xb3   : > { %v460_v6 = vmul.f32 %v3086_v53, %v3086_v53  ;;  %v461_v60 = vmul.f32 %v3090_v56, %v3090_v56 }
  0xb4   : > { %v393_v7 = vsub.f32 %v2915_v8, %v361_v51  ;;  %v394_v57 = vsub.f32 %v2918_v9, %v362_v52  ;;  %v2615_v51 = vld [vmem:[%s4403_s2 + $0x10] sm:$0xff]  }
  0xb5   : > { %496 = vadd.xlane.f32.xlu1 %v459_v50  ;;  %498 = vadd.xlane.f32.xlu0 %v460_v6  ;;  %v310_v58 = vpop.xlane.xlu0 %309  ;;  %v312_v59 = vpop.xlane.xlu1 %311 }
  0xb6   : > { %v363_v61 = vmul.f32 0.03125, %v310_v58  ;;  %v364_v62 = vmul.f32 0.03125, %v312_v59  ;;  %v3100_v63 = vsel %vm419_vm0, %v393_v7, 0.0  ;;  %v3104_v2 = vsel %vm419_vm0, %v394_v57, 0.0  ;;  %2513 = vmatprep.subr.bf16.mxu0 %v2615_v51 }
  0xb7   : > { %v462_v8 = vmul.f32 %v3100_v63, %v3100_v63  ;;  %v463_v19 = vmul.f32 %v3104_v2, %v3104_v2  ;;  %2514 = vmatpush3.bf16.msra.mxu0 %v2615_v51 }
  0xb8   : > { %v395_v9 = vsub.f32 %v2925_v10, %v363_v61  ;;  %v396_v3 = vsub.f32 %v2928_v11, %v364_v62  ;;  %v2616_v62 = vld [vmem:[%s4403_s2 + $0x18] sm:$0xff]  }
  0xb9   : > { %500 = vadd.xlane.f32.xlu1 %v461_v60  ;;  %502 = vadd.xlane.f32.xlu0 %v462_v8  ;;  %v314_v16 = vpop.xlane.xlu0 %313  ;;  %v316_v18 = vpop.xlane.xlu1 %315 }
  0xba   : > { %v365_v42 = vmul.f32 0.03125, %v314_v16  ;;  %v366_v44 = vmul.f32 0.03125, %v316_v18  ;;  %v3117_v4 = vsel %vm419_vm0, %v395_v9, 0.0  ;;  %v3121_v10 = vsel %vm419_vm0, %v396_v3, 0.0  ;;  %2515 = vmatprep.subr.bf16.mxu0 %v2616_v62 }
  0xbb   : > { %v464_v11 = vmul.f32 %v3117_v4, %v3117_v4  ;;  %v465_v50 = vmul.f32 %v3121_v10, %v3121_v10  ;;  %2516 = vmatpush3.bf16.msra.mxu0 %v2616_v62 }
  0xbc   : > { %v397_v5 = vsub.f32 %v2935_v14, %v365_v42  ;;  %v398_v47 = vsub.f32 %v2938_v15, %v366_v44  ;;  %v2617_v44 = vld [vmem:[%s4403_s2 + $0x20] sm:$0xff]  }
  0xbd   : > { %504 = vadd.xlane.f32.xlu1 %v463_v19  ;;  %506 = vadd.xlane.f32.xlu0 %v464_v11  ;;  %v318_v48 = vpop.xlane.xlu0 %317  ;;  %v320_v49 = vpop.xlane.xlu1 %319 }
  0xbe   : > { %v367_v52 = vmul.f32 0.03125, %v318_v48  ;;  %v368_v6 = vmul.f32 0.03125, %v320_v49  ;;  %v3134_v7 = vsel %vm419_vm0, %v397_v5, 0.0  ;;  %v3138_v14 = vsel %vm419_vm0, %v398_v47, 0.0  ;;  %2517 = vmatprep.subr.bf16.mxu0 %v2617_v44 }
  0xbf   : > { %v466_v15 = vmul.f32 %v3134_v7, %v3134_v7  ;;  %v467_v61 = vmul.f32 %v3138_v14, %v3138_v14  ;;  %2518 = vmatpush3.bf16.msra.mxu0 %v2617_v44 }
  0xc0   : > { %v399_v57 = vsub.f32 %v2953_v20, %v367_v52  ;;  %v400_v58 = vsub.f32 %v2956_v21, %v368_v6  ;;  %v2618_v6 = vld [vmem:[%s4403_s2 + $0x28] sm:$0xff]  }
  0xc1   : > { %508 = vadd.xlane.f32.xlu1 %v465_v50  ;;  %510 = vadd.xlane.f32.xlu0 %v466_v15  ;;  %v322_v59 = vpop.xlane.xlu0 %321  ;;  %v324_v60 = vpop.xlane.xlu1 %323 }
  0xc2   : > { %v369_v8 = vmul.f32 0.03125, %v322_v59  ;;  %v370_v9 = vmul.f32 0.03125, %v324_v60  ;;  %v3151_v3 = vsel %vm419_vm0, %v399_v57, 0.0  ;;  %v3155_v20 = vsel %vm419_vm0, %v400_v58, 0.0  ;;  %2519 = vmatprep.subr.bf16.mxu0 %v2618_v6 }
  0xc3   : > { %v468_v21 = vmul.f32 %v3151_v3, %v3151_v3  ;;  %v469_v42 = vmul.f32 %v3155_v20, %v3155_v20  ;;  %2520 = vmatpush3.bf16.msra.mxu0 %v2618_v6 }
  0xc4   : > { %v401_v12 = vsub.f32 %v2971_v26, %v369_v8  ;;  %v402_v16 = vsub.f32 %v2974_v27, %v370_v9  ;;  %v2619_v9 = vld [vmem:[%s4403_s2 + $0x30] sm:$0xff]  }
  0xc5   : > { %512 = vadd.xlane.f32.xlu1 %v467_v61  ;;  %514 = vadd.xlane.f32.xlu0 %v468_v21  ;;  %v326_v18 = vpop.xlane.xlu0 %325  ;;  %v328_v19 = vpop.xlane.xlu1 %327 }
  0xc6   : > { %v371_v11 = vmul.f32 0.03125, %v326_v18  ;;  %v372_v5 = vmul.f32 0.03125, %v328_v19  ;;  %v3168_v47 = vsel %vm419_vm0, %v401_v12, 0.0  ;;  %v3172_v26 = vsel %vm419_vm0, %v402_v16, 0.0  ;;  %2521 = vmatprep.subr.bf16.mxu0 %v2619_v9 }
  0xc7   : > { %v470_v27 = vmul.f32 %v3168_v47, %v3168_v47  ;;  %v471_v52 = vmul.f32 %v3172_v26, %v3172_v26  ;;  %2522 = vmatpush3.bf16.msra.mxu0 %v2619_v9 }
  0xc8   : > { %v403_v48 = vsub.f32 %v2979_v28, %v371_v11  ;;  %v404_v49 = vsub.f32 %v2982_v29, %v372_v5  ;;  %v2620_v5 = vld [vmem:[%s4403_s2 + $0x38] sm:$0xff]  }
  0xc9   : > { %516 = vadd.xlane.f32.xlu1 %v469_v42  ;;  %518 = vadd.xlane.f32.xlu0 %v470_v27  ;;  %v330_v50 = vpop.xlane.xlu0 %329  ;;  %v332_v51 = vpop.xlane.xlu1 %331 }
  0xca   : > { %v373_v15 = vmul.f32 0.03125, %v330_v50  ;;  %v374_v57 = vmul.f32 0.03125, %v332_v51  ;;  %v3185_v58 = vsel %vm419_vm0, %v403_v48, 0.0  ;;  %v3189_v28 = vsel %vm419_vm0, %v404_v49, 0.0  ;;  %2523 = vmatprep.subr.bf16.mxu0 %v2620_v5 }
  0xcb   : > { %v472_v29 = vmul.f32 %v3185_v58, %v3185_v58  ;;  %v473_v8 = vmul.f32 %v3189_v28, %v3189_v28  ;;  %2524 = vmatpush3.bf16.msra.mxu0 %v2620_v5 }
  0xcc   : > { %v405_v59 = vsub.f32 %v2987_v30, %v373_v15  ;;  %v406_v60 = vsub.f32 %v2990_v31, %v374_v57 }
  0xcd   : > { %520 = vadd.xlane.f32.xlu1 %v471_v52  ;;  %522 = vadd.xlane.f32.xlu0 %v472_v29  ;;  %v334_v61 = vpop.xlane.xlu0 %333  ;;  %v336_v62 = vpop.xlane.xlu1 %335 }
  0xce   : > { %v375_v21 = vmul.f32 0.03125, %v334_v61  ;;  %v376_v12 = vmul.f32 0.03125, %v336_v62  ;;  %v3202_v16 = vsel %vm419_vm0, %v405_v59, 0.0  ;;  %v3206_v30 = vsel %vm419_vm0, %v406_v60, 0.0 }
  0xcf   : > { %v474_v31 = vmul.f32 %v3202_v16, %v3202_v16  ;;  %v475_v11 = vmul.f32 %v3206_v30, %v3206_v30 }
  0xd0   : > { %v407_v18 = vsub.f32 %v2995_v32, %v375_v21  ;;  %v408_v19 = vsub.f32 %v2998_v33, %v376_v12 }
  0xd1   : > { %524 = vadd.xlane.f32.xlu1 %v473_v8  ;;  %526 = vadd.xlane.f32.xlu0 %v474_v31  ;;  %v338_v42 = vpop.xlane.xlu0 %337  ;;  %v340_v44 = vpop.xlane.xlu1 %339 }
  0xd2   : > { %v377_v27 = vmul.f32 0.03125, %v338_v42  ;;  %v378_v48 = vmul.f32 0.03125, %v340_v44  ;;  %v3219_v49 = vsel %vm419_vm0, %v407_v18, 0.0  ;;  %v3223_v32 = vsel %vm419_vm0, %v408_v19, 0.0 }
  0xd3   : > { %v476_v33 = vmul.f32 %v3219_v49, %v3219_v49  ;;  %v477_v15 = vmul.f32 %v3223_v32, %v3223_v32 }
  0xd4   : > { %v409_v50 = vsub.f32 %v3003_v34, %v377_v27  ;;  %v410_v51 = vsub.f32 %v3006_v35, %v378_v48 }
  0xd5   : > { %528 = vadd.xlane.f32.xlu1 %v475_v11  ;;  %530 = vadd.xlane.f32.xlu0 %v476_v33  ;;  %v342_v52 = vpop.xlane.xlu0 %341  ;;  %v344_v6 = vpop.xlane.xlu1 %343 }
  0xd6   : > { %v379_v57 = vmul.f32 0.03125, %v342_v52  ;;  %v380_v29 = vmul.f32 0.03125, %v344_v6  ;;  %v3233_v59 = vsel %vm419_vm0, %v409_v50, 0.0  ;;  %v3237_v60 = vsel %vm419_vm0, %v410_v51, 0.0 }
  0xd7   : > { %v478_v34 = vmul.f32 %v3233_v59, %v3233_v59  ;;  %v479_v9 = vmul.f32 %v3237_v60, %v3237_v60 }
  0xd8   : > { %v411_v35 = vsub.f32 %v3011_v36, %v379_v57  ;;  %v412_v61 = vsub.f32 %v3014_v37, %v380_v29 }
  0xd9   : > { %532 = vadd.xlane.f32.xlu1 %v477_v15  ;;  %534 = vadd.xlane.f32.xlu0 %v478_v34  ;;  %v346_v62 = vpop.xlane.xlu0 %345  ;;  %v348_v8 = vpop.xlane.xlu1 %347 }
  0xda   : > { %v381_v21 = vmul.f32 0.03125, %v346_v62  ;;  %v382_v12 = vmul.f32 0.03125, %v348_v8  ;;  %v3247_v31 = vsel %vm419_vm0, %v411_v35, 0.0  ;;  %v3251_v18 = vsel %vm419_vm0, %v412_v61, 0.0 }
  0xdb   : > { %v480_v36 = vmul.f32 %v3247_v31, %v3247_v31  ;;  %v481_v11 = vmul.f32 %v3251_v18, %v3251_v18 }
  0xdc   : > { %v413_v37 = vsub.f32 %v3019_v38, %v381_v21  ;;  %v414_v19 = vsub.f32 %v3022_v39, %v382_v12 }
  0xdd   : > { %536 = vadd.xlane.f32.xlu1 %v479_v9  ;;  %538 = vadd.xlane.f32.xlu0 %v480_v36  ;;  %v350_v42 = vpop.xlane.xlu0 %349  ;;  %v352_v44 = vpop.xlane.xlu1 %351 }
  0xde   : > { %v383_v5 = vmul.f32 0.03125, %v350_v42  ;;  %v384_v27 = vmul.f32 0.03125, %v352_v44  ;;  %v3261_v48 = vsel %vm419_vm0, %v413_v37, 0.0  ;;  %v3265_v33 = vsel %vm419_vm0, %v414_v19, 0.0 }
  0xdf   : > { %v482_v38 = vmul.f32 %v3261_v48, %v3261_v48  ;;  %v483_v51 = vmul.f32 %v3265_v33, %v3265_v33  ;;  %v3286_v42 = vsub.s32 0, %v2932_v13 }
  0xe0   : > { %v415_v39 = vsub.f32 %v3027_v40, %v383_v5  ;;  %v416_v50 = vsub.f32 %v3030_v41, %v384_v27  ;;  %v288_v5 = vld [vmem:[%s4402_s1] sm:$0x3] }
  0xe1   : > { %540 = vadd.xlane.f32.xlu1 %v481_v11  ;;  %542 = vadd.xlane.f32.xlu0 %v482_v38 }
  0xe2   : > { %v3275_v52 = vsel %vm419_vm0, %v415_v39, 0.0  ;;  %v3279_v6 = vsel %vm419_vm0, %v416_v50, 0.0 }
  0xe3   : > { %v484_v15 = vmul.f32 %v3275_v52, %v3275_v52  ;;  %v485_v40 = vmul.f32 %v3279_v6, %v3279_v6 }
  0xe5   : > { %544 = vadd.xlane.f32.xlu1 %v483_v51  ;;  %546 = vadd.xlane.f32.xlu0 %v484_v15  ;;  %v3292_v15 = vrot.slane %v288_v5, %v3286_v42 }
  0xe9   : > { %548 = vadd.xlane.f32.xlu1 %v485_v40 }
 0x136   : > { %v487_v41 = vpop.xlane.xlu0 %486 }
 0x137   : > { %v550_v57 = vmul.f32 0.03125, %v487_v41 }
 0x139   : > { %v582_v29 = vadd.f32 1e-05, %v550_v57 }
 0x13a   : > { %v489_v34 = vpop.xlane.xlu1 %488  ;;  %v491_v35 = vpop.xlane.xlu0 %490 }
 0x13b   : > { %2629 = vrsqrt.f32 %v582_v29  ;;  %v551_v61 = vmul.f32 0.03125, %v489_v34  ;;  %v552_v62 = vmul.f32 0.03125, %v491_v35 }
 0x13d   : > { %v583_v43 = vadd.f32 1e-05, %v551_v61  ;;  %v584_v8 = vadd.f32 1e-05, %v552_v62 }
 0x13e   : > { %v493_v9 = vpop.xlane.xlu1 %492  ;;  %v495_v21 = vpop.xlane.xlu0 %494 }
 0x13f   : > { %2631 = vrsqrt.f32 %v583_v43  ;;  %v553_v12 = vmul.f32 0.03125, %v493_v9  ;;  %v554_v36 = vmul.f32 0.03125, %v495_v21  ;;  %v3296_v43 = vrot.slane %v288_v5, %v2942_v17 }
 0x140   : > { %2633 = vrsqrt.f32 %v584_v8 }
 0x141   : > { %v585_v37 = vadd.f32 1e-05, %v553_v12  ;;  %v586_v19 = vadd.f32 1e-05, %v554_v36 }
 0x142   : > { %v497_v44 = vpop.xlane.xlu1 %496  ;;  %v499_v11 = vpop.xlane.xlu0 %498 }
 0x143   : > { %2635 = vrsqrt.f32 %v585_v37  ;;  %v555_v27 = vmul.f32 0.03125, %v497_v44  ;;  %v556_v38 = vmul.f32 0.03125, %v499_v11 }
 0x144   : > { %2637 = vrsqrt.f32 %v586_v19 }
 0x145   : > { %v2630_v39 = vpop.eup %2629  ;;  %v587_v50 = vadd.f32 1e-05, %v555_v27  ;;  %v588_v51 = vadd.f32 1e-05, %v556_v38 }
 0x146   : > { %v501_v40 = vpop.xlane.xlu1 %500  ;;  %v503_v41 = vpop.xlane.xlu0 %502  ;;  %v646_v13 = vmul.f32 %v2630_v39, %v3044_v54 }
 0x147   : > { %2639 = vrsqrt.f32 %v587_v50  ;;  %v557_v57 = vmul.f32 0.03125, %v501_v40  ;;  %v558_v29 = vmul.f32 0.03125, %v503_v41 }
 0x148   : > { %2641 = vrsqrt.f32 %v588_v51  ;;  %v682_v12 = vmul.f32 %v3292_v15, %v646_v13 }
 0x149   : > { %v2632_v34 = vpop.eup %2631  ;;  %v589_v35 = vadd.f32 1e-05, %v557_v57  ;;  %v590_v61 = vadd.f32 1e-05, %v558_v29 }
 0x14a   : > { %v2634_v62 = vpop.eup %2633  ;;  %v505_v8 = vpop.xlane.xlu1 %504  ;;  %v647_v21 = vmul.f32 %v2632_v34, %v3058_v0  ;;  %v718_v39 = vadd.f32 %v3296_v43, %v682_v12 }
 0x14b   : > { %v507_v9 = vpop.xlane.xlu0 %506  ;;  %2643 = vrsqrt.f32 %v589_v35  ;;  %v559_v36 = vmul.f32 0.03125, %v505_v8  ;;  %v648_v37 = vmul.f32 %v2634_v62, %v3048_v55 }
 0x14c   : > { %v560_v54 = vmul.f32 0.03125, %v507_v9  ;;  %2645 = vrsqrt.f32 %v590_v61  ;;  %v683_v19 = vmul.f32 %v3292_v15, %v647_v21 }
 0x14d   : > { %v2636_v44 = vpop.eup %2635  ;;  %v591_v11 = vadd.f32 1e-05, %v559_v36  ;;  %v684_v51 = vmul.f32 %v3292_v15, %v648_v37 }
 0x14e   : > { %v592_v27 = vadd.f32 1e-05, %v560_v54  ;;  %v2638_v38 = vpop.eup %2637  ;;  %v509_v17 = vpop.xlane.xlu1 %508  ;;  %v719_v0 = vadd.f32 %v3296_v43, %v683_v19  ;;  %v649_v50 = vmul.f32 %v2636_v44, %v3062_v1 }
 0x14f   : > { %v511_v5 = vpop.xlane.xlu0 %510  ;;  %2647 = vrsqrt.f32 %v591_v11  ;;  %v561_v40 = vmul.f32 0.03125, %v509_v17  ;;  %v650_v57 = vmul.f32 %v2638_v38, %v3072_v45  ;;  %v720_v1 = vadd.f32 %v3296_v43, %v684_v51 }
 0x150   : > { %v562_v55 = vmul.f32 0.03125, %v511_v5  ;;  %2649 = vrsqrt.f32 %v592_v27  ;;  %v751_v41 = vpack.c.bf16 %v719_v0, %v718_v39  ;;  %v685_v13 = vmul.f32 %v3292_v15, %v649_v50 }
 0x151   : > { %v2640_v29 = vpop.eup %2639  ;;  %v593_v34 = vadd.f32 1e-05, %v561_v40  ;;  %v686_v12 = vmul.f32 %v3292_v15, %v650_v57 }
 0x152   : > { %v594_v35 = vadd.f32 1e-05, %v562_v55  ;;  %v2642_v61 = vpop.eup %2641  ;;  %v513_v62 = vpop.xlane.xlu1 %512  ;;  %2525 = vmatprep.mubr.bf16.mxu0 %v751_v41  ;;  %v721_v9 = vadd.f32 %v3296_v43, %v685_v13  ;;  %v651_v21 = vmul.f32 %v2640_v29, %v3076_v46 }
 0x153   : > { %v515_v8 = vpop.xlane.xlu0 %514  ;;  %2651 = vrsqrt.f32 %v593_v34  ;;  %v563_v36 = vmul.f32 0.03125, %v513_v62  ;;  %v652_v45 = vmul.f32 %v2642_v61, %v3086_v53  ;;  %v722_v46 = vadd.f32 %v3296_v43, %v686_v12 }
 0x154   : > { %v564_v54 = vmul.f32 0.03125, %v515_v8  ;;  %2653 = vrsqrt.f32 %v594_v35  ;;  %v752_v37 = vpack.c.bf16 %v721_v9, %v720_v1  ;;  %v687_v19 = vmul.f32 %v3292_v15, %v651_v21 }
 0x155   : > { %v2644_v44 = vpop.eup %2643  ;;  %v595_v11 = vadd.f32 1e-05, %v563_v36  ;;  %v688_v50 = vmul.f32 %v3292_v15, %v652_v45 }
 0x156   : > { %v596_v27 = vadd.f32 1e-05, %v564_v54  ;;  %v2646_v38 = vpop.eup %2645  ;;  %v517_v17 = vpop.xlane.xlu1 %516  ;;  %2526 = vmatmul.mubr.bf16.vlgmr.msra.gmra.mrb[0].mxu0 %v752_v37  ;;  %v723_v39 = vadd.f32 %v3296_v43, %v687_v19  ;;  %v653_v0 = vmul.f32 %v2644_v44, %v3090_v56 }
 0x157   : > { %v519_v5 = vpop.xlane.xlu0 %518  ;;  %2655 = vrsqrt.f32 %v595_v11  ;;  %v565_v53 = vmul.f32 0.03125, %v517_v17  ;;  %v654_v41 = vmul.f32 %v2646_v38, %v3100_v63  ;;  %v724_v56 = vadd.f32 %v3296_v43, %v688_v50 }
 0x158   : > { %v566_v51 = vmul.f32 0.03125, %v519_v5  ;;  %2657 = vrsqrt.f32 %v596_v27  ;;  %v753_v40 = vpack.c.bf16 %v723_v39, %v722_v46  ;;  %v689_v55 = vmul.f32 %v3292_v15, %v653_v0 }
 0x159   : > { %v2648_v13 = vpop.eup %2647  ;;  %v597_v57 = vadd.f32 1e-05, %v565_v53  ;;  %v690_v1 = vmul.f32 %v3292_v15, %v654_v41 }
 0x15a   : > { %v598_v29 = vadd.f32 1e-05, %v566_v51  ;;  %v2650_v34 = vpop.eup %2649  ;;  %v521_v35 = vpop.xlane.xlu1 %520  ;;  %2529 = vmatprep.mubr.bf16.mxu0 %v753_v40  ;;  %v725_v62 = vadd.f32 %v3296_v43, %v689_v55  ;;  %v655_v8 = vmul.f32 %v2648_v13, %v3104_v2 }
 0x15b   : > { %v523_v61 = vpop.xlane.xlu0 %522  ;;  %2659 = vrsqrt.f32 %v597_v57  ;;  %v567_v9 = vmul.f32 0.03125, %v521_v35  ;;  %v656_v63 = vmul.f32 %v2650_v34, %v3117_v4  ;;  %v726_v2 = vadd.f32 %v3296_v43, %v690_v1 }
 0x15c   : > { %v568_v21 = vmul.f32 0.03125, %v523_v61  ;;  %2661 = vrsqrt.f32 %v598_v29  ;;  %v754_v12 = vpack.c.bf16 %v725_v62, %v724_v56  ;;  %v691_v36 = vmul.f32 %v3292_v15, %v655_v8 }
 0x15d   : > { %v2652_v54 = vpop.eup %2651  ;;  %v599_v45 = vadd.f32 1e-05, %v567_v9  ;;  %v692_v17 = vmul.f32 %v3292_v15, %v656_v63 }
 0x15e   : > { %v600_v37 = vadd.f32 1e-05, %v568_v21  ;;  %v2654_v19 = vpop.eup %2653  ;;  %v525_v44 = vpop.xlane.xlu1 %524  ;;  %2530 = vmatmul.mubr.bf16.gmra.mrb[4].mxu0 %v754_v12  ;;  %v727_v27 = vadd.f32 %v3296_v43, %v691_v36  ;;  %v657_v38 = vmul.f32 %v2652_v54, %v3121_v10 }
 0x15f   : > { %v527_v11 = vpop.xlane.xlu0 %526  ;;  %2663 = vrsqrt.f32 %v599_v45  ;;  %v569_v4 = vmul.f32 0.03125, %v525_v44  ;;  %v658_v0 = vmul.f32 %v2654_v19, %v3134_v7  ;;  %v728_v10 = vadd.f32 %v3296_v43, %v692_v17 }
 0x160   : > { %v570_v5 = vmul.f32 0.03125, %v527_v11  ;;  %2665 = vrsqrt.f32 %v600_v37  ;;  %v755_v46 = vpack.c.bf16 %v727_v27, %v726_v2  ;;  %v693_v39 = vmul.f32 %v3292_v15, %v657_v38 }
 0x161   : > { %v2656_v50 = vpop.eup %2655  ;;  %v601_v53 = vadd.f32 1e-05, %v569_v4  ;;  %v694_v29 = vmul.f32 %v3292_v15, %v658_v0 }
 0x162   : > { %v602_v51 = vadd.f32 1e-05, %v570_v5  ;;  %v2658_v40 = vpop.eup %2657  ;;  %v529_v55 = vpop.xlane.xlu1 %528  ;;  %2533 = vmatprep.mubr.bf16.mxu0 %v755_v46  ;;  %v729_v13 = vadd.f32 %v3296_v43, %v693_v39  ;;  %v659_v57 = vmul.f32 %v2656_v50, %v3138_v14 }
 0x163   : > { %v531_v41 = vpop.xlane.xlu0 %530  ;;  %2667 = vrsqrt.f32 %v601_v53  ;;  %v571_v34 = vmul.f32 0.03125, %v529_v55  ;;  %v660_v7 = vmul.f32 %v2658_v40, %v3151_v3  ;;  %v730_v14 = vadd.f32 %v3296_v43, %v694_v29 }
 0x164   : > { %v572_v35 = vmul.f32 0.03125, %v531_v41  ;;  %2669 = vrsqrt.f32 %v602_v51  ;;  %v756_v61 = vpack.c.bf16 %v729_v13, %v728_v10  ;;  %v695_v56 = vmul.f32 %v3292_v15, %v659_v57 }
 0x165   : > { %v2660_v62 = vpop.eup %2659  ;;  %v603_v8 = vadd.f32 1e-05, %v571_v34  ;;  %v696_v54 = vmul.f32 %v3292_v15, %v660_v7 }
 0x166   : > { %v604_v1 = vadd.f32 1e-05, %v572_v35  ;;  %v2662_v9 = vpop.eup %2661  ;;  %v533_v21 = vpop.xlane.xlu1 %532  ;;  %2534 = vmatmul.mubr.bf16.gmra.mrb[8].mxu0 %v756_v61  ;;  %v731_v12 = vadd.f32 %v3296_v43, %v695_v56  ;;  %v661_v36 = vmul.f32 %v2660_v62, %v3155_v20 }
 0x167   : > { %v535_v63 = vpop.xlane.xlu0 %534  ;;  %2671 = vrsqrt.f32 %v603_v8  ;;  %v573_v3 = vmul.f32 0.03125, %v533_v21  ;;  %v662_v44 = vmul.f32 %v2662_v9, %v3168_v47  ;;  %v732_v20 = vadd.f32 %v3296_v43, %v696_v54 }
 0x168   : > { %v574_v45 = vmul.f32 0.03125, %v535_v63  ;;  %2673 = vrsqrt.f32 %v604_v1  ;;  %v757_v37 = vpack.c.bf16 %v731_v12, %v730_v14  ;;  %v697_v19 = vmul.f32 %v3292_v15, %v661_v36 }
 0x169   : > { %v2664_v11 = vpop.eup %2663  ;;  %v605_v2 = vadd.f32 1e-05, %v573_v3  ;;  %v698_v39 = vmul.f32 %v3292_v15, %v662_v44 }
 0x16a   : > { %v606_v27 = vadd.f32 1e-05, %v574_v45  ;;  %v2666_v38 = vpop.eup %2665  ;;  %v537_v17 = vpop.xlane.xlu1 %536  ;;  %2537 = vmatprep.mubr.bf16.mxu0 %v757_v37  ;;  %v733_v5 = vadd.f32 %v3296_v43, %v697_v19  ;;  %v663_v46 = vmul.f32 %v2664_v11, %v3172_v26 }
 0x16b   : > { %v539_v4 = vpop.xlane.xlu0 %538  ;;  %2675 = vrsqrt.f32 %v605_v2  ;;  %v575_v0 = vmul.f32 0.03125, %v537_v17  ;;  %v664_v47 = vmul.f32 %v2666_v38, %v3185_v58  ;;  %v734_v26 = vadd.f32 %v3296_v43, %v698_v39 }
 0x16c   : > { %v576_v50 = vmul.f32 0.03125, %v539_v4  ;;  %2677 = vrsqrt.f32 %v606_v27  ;;  %v758_v53 = vpack.c.bf16 %v733_v5, %v732_v20  ;;  %v699_v51 = vmul.f32 %v3292_v15, %v663_v46 }
 0x16d   : > { %v2668_v40 = vpop.eup %2667  ;;  %v607_v55 = vadd.f32 1e-05, %v575_v0  ;;  %v700_v35 = vmul.f32 %v3292_v15, %v664_v47 }
 0x16e   : > { %v608_v41 = vadd.f32 1e-05, %v576_v50  ;;  %v2670_v10 = vpop.eup %2669  ;;  %v541_v13 = vpop.xlane.xlu1 %540  ;;  %2538 = vmatmul.mubr.bf16.gmra.mrb[12].mxu0 %v758_v53  ;;  %v735_v29 = vadd.f32 %v3296_v43, %v699_v51  ;;  %v665_v34 = vmul.f32 %v2668_v40, %v3189_v28 }
 0x16f   : > { %v543_v57 = vpop.xlane.xlu0 %542  ;;  %2679 = vrsqrt.f32 %v607_v55  ;;  %v577_v58 = vmul.f32 0.03125, %v541_v13  ;;  %v666_v62 = vmul.f32 %v2670_v10, %v3202_v16  ;;  %v736_v28 = vadd.f32 %v3296_v43, %v700_v35 }
 0x170   : > { %v578_v7 = vmul.f32 0.03125, %v543_v57  ;;  %2681 = vrsqrt.f32 %v608_v41  ;;  %v759_v61 = vpack.c.bf16 %v735_v29, %v734_v26  ;;  %v701_v56 = vmul.f32 %v3292_v15, %v665_v34 }
 0x171   : > { %v2672_v8 = vpop.eup %2671  ;;  %v609_v1 = vadd.f32 1e-05, %v577_v58  ;;  %v702_v54 = vmul.f32 %v3292_v15, %v666_v62 }
 0x172   : > { %v610_v9 = vadd.f32 1e-05, %v578_v7  ;;  %v2674_v21 = vpop.eup %2673  ;;  %v545_v63 = vpop.xlane.xlu1 %544  ;;  %2541 = vmatprep.mubr.bf16.mxu0 %v759_v61  ;;  %v737_v12 = vadd.f32 %v3296_v43, %v701_v56  ;;  %v667_v36 = vmul.f32 %v2672_v8, %v3206_v30 }
 0x173   : > { %v547_v14 = vpop.xlane.xlu0 %546  ;;  %2683 = vrsqrt.f32 %v609_v1  ;;  %v579_v3 = vmul.f32 0.03125, %v545_v63  ;;  %v668_v16 = vmul.f32 %v2674_v21, %v3219_v49  ;;  %v738_v17 = vadd.f32 %v3296_v43, %v702_v54 }
 0x174   : > { %v580_v45 = vmul.f32 0.03125, %v547_v14  ;;  %2685 = vrsqrt.f32 %v610_v9  ;;  %v760_v37 = vpack.c.bf16 %v737_v12, %v736_v28  ;;  %v703_v19 = vmul.f32 %v3292_v15, %v667_v36 }
 0x175   : > { %v2676_v44 = vpop.eup %2675  ;;  %v611_v11 = vadd.f32 1e-05, %v579_v3  ;;  %v704_v20 = vmul.f32 %v3292_v15, %v668_v16  ;;  %v2821_v3 = vld [vmem:[%s4404_s3] sm:$0x7] }
 0x176   : > { %v612_v2 = vadd.f32 1e-05, %v580_v45  ;;  %v2678_v27 = vpop.eup %2677  ;;  %v549_v38 = vpop.xlane.xlu1 %548  ;;  %2542 = vmatmul.mubr.bf16.gmra.mrb[16].mxu0 %v760_v37  ;;  %v739_v30 = vadd.f32 %v3296_v43, %v703_v19  ;;  %v669_v4 = vmul.f32 %v2676_v44, %v3223_v32  ;;  %v3397_v45 = vrot.slane %v2821_v3, %v3286_v42 }
 0x177   : > { %2687 = vrsqrt.f32 %v611_v11  ;;  %v581_v49 = vmul.f32 0.03125, %v549_v38  ;;  %v670_v5 = vmul.f32 %v2678_v27, %v3233_v59  ;;  %v740_v53 = vadd.f32 %v3296_v43, %v704_v20 }
 0x178   : > { %2689 = vrsqrt.f32 %v612_v2  ;;  %v761_v46 = vpack.c.bf16 %v739_v30, %v738_v17  ;;  %v705_v39 = vmul.f32 %v3292_v15, %v669_v4 }
 0x179   : > { %v2680_v0 = vpop.eup %2679  ;;  %v613_v50 = vadd.f32 1e-05, %v581_v49  ;;  %v706_v40 = vmul.f32 %v3292_v15, %v670_v5 }
 0x17a   : > { %v2682_v47 = vpop.eup %2681  ;;  %2545 = vmatprep.mubr.bf16.mxu0 %v761_v46  ;;  %v741_v51 = vadd.f32 %v3296_v43, %v705_v39  ;;  %v671_v32 = vmul.f32 %v2680_v0, %v3237_v60 }
 0x17b   : > { %2691 = vrsqrt.f32 %v613_v50  ;;  %v672_v55 = vmul.f32 %v2682_v47, %v3247_v31  ;;  %v742_v57 = vadd.f32 %v3296_v43, %v706_v40 }
 0x17c   : > { %v762_v59 = vpack.c.bf16 %v741_v51, %v740_v53  ;;  %v707_v41 = vmul.f32 %v3292_v15, %v671_v32 }
 0x17d   : > { %v2684_v10 = vpop.eup %2683  ;;  %v708_v34 = vmul.f32 %v3292_v15, %v672_v55 }
 0x17e   : > { %v2686_v13 = vpop.eup %2685  ;;  %2546 = vmatmul.mubr.bf16.gmra.mrb[20].mxu0 %v762_v59  ;;  %v743_v26 = vadd.f32 %v3296_v43, %v707_v41  ;;  %v673_v29 = vmul.f32 %v2684_v10, %v3251_v18 }
 0x17f   : > { %v674_v60 = vmul.f32 %v2686_v13, %v3261_v48  ;;  %v744_v61 = vadd.f32 %v3296_v43, %v708_v34 }
 0x180   : > { %v763_v35 = vpack.c.bf16 %v743_v26, %v742_v57  ;;  %v709_v58 = vmul.f32 %v3292_v15, %v673_v29 }
 0x181   : > { %v2688_v31 = vpop.eup %2687  ;;  %v710_v8 = vmul.f32 %v3292_v15, %v674_v60 }
 0x182   : > { %v2690_v7 = vpop.eup %2689  ;;  %2549 = vmatprep.mubr.bf16.mxu0 %v763_v35  ;;  %v745_v56 = vadd.f32 %v3296_v43, %v709_v58  ;;  %v675_v62 = vmul.f32 %v2688_v31, %v3265_v33 }
 0x183   : > { %v676_v18 = vmul.f32 %v2690_v7, %v3275_v52  ;;  %v746_v21 = vadd.f32 %v3296_v43, %v710_v8 }
 0x184   : > { %v764_v1 = vpack.c.bf16 %v745_v56, %v744_v61  ;;  %v711_v9 = vmul.f32 %v3292_v15, %v675_v62 }
 0x185   : > { %v2692_v48 = vpop.eup %2691  ;;  %v712_v28 = vmul.f32 %v3292_v15, %v676_v18 }
 0x186   : > { %2550 = vmatmul.mubr.bf16.gmra.mrb[24].mxu0 %v764_v1  ;;  %v747_v63 = vadd.f32 %v3296_v43, %v711_v9  ;;  %v677_v14 = vmul.f32 %v2692_v48, %v3279_v6  ;;  %v2621_v9 = vld [vmem:[%s4405_s4] sm:$0xff]  }
 0x187   : > { %v748_v36 = vadd.f32 %v3296_v43, %v712_v28  ;;  %2557 = vmatprep.subr.bf16.mxu1 %v2621_v9 }
 0x188   : > { %v765_v12 = vpack.c.bf16 %v747_v63, %v746_v21  ;;  %v713_v33 = vmul.f32 %v3292_v15, %v677_v14  ;;  %2558 = vmatpush3.bf16.msra.mxu1 %v2621_v9  ;;  %v2628_v9 = vld [vmem:[%s4405_s4 + $0x38] sm:$0xff]  }
 0x18a   : > { %2553 = vmatprep.mubr.bf16.mxu0 %v765_v12  ;;  %v749_v52 = vadd.f32 %v3296_v43, %v713_v33  ;;  %v2622_v12 = vld [vmem:[%s4405_s4 + $0x8] sm:$0xff]  }
 0x18b   : > { %2559 = vmatprep.subr.bf16.mxu1 %v2622_v12 }
 0x18c   : > { %v766_v54 = vpack.c.bf16 %v749_v52, %v748_v36  ;;  %2560 = vmatpush3.bf16.msra.mxu1 %v2622_v12 }
 0x18e   : > { %2554 = vmatmul.mubr.bf16.gmra.mrb[28].mxu0 %v766_v54 }
 0x229   : > { %v2527_v6 = vpop.f32.mrb[0].mxu0 }
 0x22a   : > { %v878_v16 = vadd.f32 %v2527_v6, %v3397_v45  ;;  %v869_v37 = vpop.f32.mrb[1].mxu0 }
 0x22b   : > { %v870_v15 = vadd.f32 %v869_v37, %v3397_v45  ;;  %v2528_v19 = vpop.f32.mrb[2].mxu0  ;;  %v2623_v37 = vld [vmem:[%s4405_s4 + $0x10] sm:$0xff]  }
 0x22c   : > { %v3401_v44 = vmax.f32 %v878_v16, 0.0  ;;  %v881_v43 = vadd.f32 %v2528_v19, %v3397_v45  ;;  %v872_v11 = vpop.f32.mrb[3].mxu0  ;;  %2561 = vmatprep.subr.bf16.mxu1 %v2623_v37 }
 0x22d   : > { %v873_v2 = vadd.f32 %v872_v11, %v3397_v45  ;;  %v3408_v38 = vmax.f32 %v870_v15, 0.0  ;;  %2562 = vmatpush3.bf16.msra.mxu1 %v2623_v37 }
 0x22e   : > { %v3405_v27 = vmax.f32 %v881_v43, 0.0  ;;  %1032 = vadd.xlane.f32.xlu0 %v3401_v44  ;;  %v1126_v0 = vmul.f32 %v3401_v44, %v3401_v44 }
 0x22f   : > { %v3411_v30 = vmax.f32 %v873_v2, 0.0  ;;  %v1124_v53 = vmul.f32 %v3408_v38, %v3408_v38 }
 0x230   : > { %1034 = vadd.xlane.f32.xlu1 %v3405_v27  ;;  %v1127_v47 = vmul.f32 %v3405_v27, %v3405_v27 }
 0x231   : > { %v2531_v17 = vpop.f32.mrb[4].mxu0  ;;  %v1125_v55 = vmul.f32 %v3411_v30, %v3411_v30 }
 0x232   : > { %v894_v4 = vadd.f32 %v2531_v17, %v3397_v45  ;;  %1028 = vadd.xlane.f32.xlu0 %v3408_v38  ;;  %v885_v20 = vpop.f32.mrb[5].mxu0  ;;  %v2624_v17 = vld [vmem:[%s4405_s4 + $0x18] sm:$0xff]  }
 0x233   : > { %v886_v49 = vadd.f32 %v885_v20, %v3397_v45  ;;  %v2532_v5 = vpop.f32.mrb[6].mxu0  ;;  %2563 = vmatprep.subr.bf16.mxu1 %v2624_v17 }
 0x234   : > { %v897_v46 = vadd.f32 %v2532_v5, %v3397_v45  ;;  %1030 = vadd.xlane.f32.xlu1 %v3411_v30  ;;  %v888_v39 = vpop.f32.mrb[7].mxu0  ;;  %v3429_v10 = vmax.f32 %v894_v4, 0.0  ;;  %2564 = vmatpush3.bf16.msra.mxu1 %v2624_v17 }
 0x235   : > { %v889_v50 = vadd.f32 %v888_v39, %v3397_v45  ;;  %v3436_v34 = vmax.f32 %v886_v49, 0.0 }
 0x236   : > { %1160 = vadd.xlane.f32.xlu0 %v1126_v0  ;;  %v3433_v29 = vmax.f32 %v897_v46, 0.0  ;;  %v1130_v8 = vmul.f32 %v3429_v10, %v3429_v10 }
 0x237   : > { %v3439_v35 = vmax.f32 %v889_v50, 0.0  ;;  %v1128_v48 = vmul.f32 %v3436_v34, %v3436_v34  ;;  %v2625_v50 = vld [vmem:[%s4405_s4 + $0x20] sm:$0xff]  }
 0x238   : > { %1162 = vadd.xlane.f32.xlu1 %v1127_v47  ;;  %v1131_v1 = vmul.f32 %v3433_v29, %v3433_v29  ;;  %2565 = vmatprep.subr.bf16.mxu1 %v2625_v50 }
 0x239   : > { %v2535_v51 = vpop.f32.mrb[8].mxu0  ;;  %v1129_v28 = vmul.f32 %v3439_v35, %v3439_v35  ;;  %2566 = vmatpush3.bf16.msra.mxu1 %v2625_v50 }
 0x23a   : > { %v910_v32 = vadd.f32 %v2535_v51, %v3397_v45  ;;  %1156 = vadd.xlane.f32.xlu0 %v1124_v53  ;;  %v901_v40 = vpop.f32.mrb[9].mxu0 }
 0x23b   : > { %v902_v59 = vadd.f32 %v901_v40, %v3397_v45  ;;  %v2536_v41 = vpop.f32.mrb[10].mxu0 }
 0x23c   : > { %v913_v13 = vadd.f32 %v2536_v41, %v3397_v45  ;;  %1158 = vadd.xlane.f32.xlu1 %v1125_v55  ;;  %v904_v57 = vpop.f32.mrb[11].mxu0  ;;  %v3475_v52 = vmax.f32 %v910_v32, 0.0  ;;  %v2626_v55 = vld [vmem:[%s4405_s4 + $0x28] sm:$0xff]  }
 0x23d   : > { %v905_v26 = vadd.f32 %v904_v57, %v3397_v45  ;;  %v3489_v15 = vmax.f32 %v902_v59, 0.0  ;;  %2567 = vmatprep.subr.bf16.mxu1 %v2626_v55 }
 0x23e   : > { %1040 = vadd.xlane.f32.xlu0 %v3429_v10  ;;  %v3483_v16 = vmax.f32 %v913_v13, 0.0  ;;  %v1134_v46 = vmul.f32 %v3475_v52, %v3475_v52  ;;  %2568 = vmatpush3.bf16.msra.mxu1 %v2626_v55 }
 0x23f   : > { %v3492_v43 = vmax.f32 %v905_v26, 0.0  ;;  %v1132_v47 = vmul.f32 %v3489_v15, %v3489_v15 }
 0x240   : > { %1042 = vadd.xlane.f32.xlu1 %v3433_v29  ;;  %v1135_v0 = vmul.f32 %v3483_v16, %v3483_v16 }
 0x241   : > { %v2539_v60 = vpop.f32.mrb[12].mxu0  ;;  %v1133_v40 = vmul.f32 %v3492_v43, %v3492_v43 }
 0x242   : > { %v3442_v58 = vadd.f32 %v2539_v60, %v3397_v45  ;;  %1036 = vadd.xlane.f32.xlu0 %v3436_v34  ;;  %v917_v31 = vpop.f32.mrb[13].mxu0 }
 0x243   : > { %v3446_v7 = vadd.f32 %v917_v31, %v3397_v45  ;;  %v2540_v61 = vpop.f32.mrb[14].mxu0 }
 0x244   : > { %v3449_v56 = vadd.f32 %v2540_v61, %v3397_v45  ;;  %1038 = vadd.xlane.f32.xlu1 %v3439_v35  ;;  %v920_v62 = vpop.f32.mrb[15].mxu0  ;;  %v3532_v13 = vmax.f32 %v3442_v58, 0.0  ;;  %v2627_v58 = vld [vmem:[%s4405_s4 + $0x30] sm:$0xff]  }
 0x245   : > { %v3455_v18 = vadd.f32 %v920_v62, %v3397_v45  ;;  %v3548_v61 = vmax.f32 %v3446_v7, 0.0  ;;  %2569 = vmatprep.subr.bf16.mxu1 %v2627_v58 }
 0x246   : > { %1168 = vadd.xlane.f32.xlu0 %v1130_v8  ;;  %v3541_v31 = vmax.f32 %v3449_v56, 0.0  ;;  %2570 = vmatpush3.bf16.msra.mxu1 %v2627_v58 }
 0x247   : > { %v3552_v8 = vmax.f32 %v3455_v18, 0.0  ;;  %2571 = vmatprep.subr.bf16.mxu1 %v2628_v9 }
 0x248   : > { %1170 = vadd.xlane.f32.xlu1 %v1131_v1  ;;  %v1139_v12 = vmul.f32 %v3541_v31, %v3541_v31 }
 0x249   : > { %v2543_v21 = vpop.f32.mrb[16].mxu0 }
 0x24a   : > { %v3465_v63 = vadd.f32 %v2543_v21, %v3397_v45  ;;  %1164 = vadd.xlane.f32.xlu0 %v1128_v48  ;;  %v933_v14 = vpop.f32.mrb[17].mxu0  ;;  %2572 = vmatpush3.bf16.msra.mxu1 %v2628_v9 }
 0x24b   : > { %v3473_v33 = vadd.f32 %v933_v14, %v3397_v45  ;;  %v2544_v36 = vpop.f32.mrb[18].mxu0  ;;  %v1138_v14 = vmul.f32 %v3532_v13, %v3532_v13 }
 0x24c   : > { %v3478_v54 = vadd.f32 %v2544_v36, %v3397_v45  ;;  %1166 = vadd.xlane.f32.xlu1 %v1129_v28  ;;  %v936_v3 = vpop.f32.mrb[19].mxu0  ;;  %v1136_v36 = vmul.f32 %v3548_v61, %v3548_v61  ;;  %v3576_v37 = vmax.f32 %v3465_v63, 0.0 }
 0x24d   : > { %v3481_v6 = vadd.f32 %v936_v3, %v3397_v45  ;;  %v1137_v3 = vmul.f32 %v3552_v8, %v3552_v8 }
 0x24e   : > { %1048 = vadd.xlane.f32.xlu0 %v3475_v52  ;;  %v1142_v63 = vmul.f32 %v3576_v37, %v3576_v37 }
 0x250   : > { %1050 = vadd.xlane.f32.xlu1 %v3483_v16 }
 0x251   : > { %v2547_v19 = vpop.f32.mrb[20].mxu0 }
 0x252   : > { %v3495_v11 = vadd.f32 %v2547_v19, %v3397_v45  ;;  %1044 = vadd.xlane.f32.xlu0 %v3489_v15  ;;  %v949_v2 = vpop.f32.mrb[21].mxu0  ;;  %v3579_v19 = vmax.f32 %v3478_v54, 0.0 }
 0x253   : > { %v3502_v4 = vadd.f32 %v949_v2, %v3397_v45  ;;  %v2548_v20 = vpop.f32.mrb[22].mxu0  ;;  %v3587_v2 = vmax.f32 %v3481_v6, 0.0 }
 0x254   : > { %v3505_v49 = vadd.f32 %v2548_v20, %v3397_v45  ;;  %1046 = vadd.xlane.f32.xlu1 %v3492_v43  ;;  %v952_v5 = vpop.f32.mrb[23].mxu0  ;;  %v1143_v54 = vmul.f32 %v3579_v19, %v3579_v19  ;;  %v3600_v17 = vmax.f32 %v3495_v11, 0.0 }
 0x255   : > { %v3511_v39 = vadd.f32 %v952_v5, %v3397_v45  ;;  %v1141_v6 = vmul.f32 %v3587_v2, %v3587_v2  ;;  %v3607_v5 = vmax.f32 %v3502_v4, 0.0 }
 0x256   : > { %1176 = vadd.xlane.f32.xlu0 %v1134_v46  ;;  %v3603_v20 = vmax.f32 %v3505_v49, 0.0  ;;  %v1146_v11 = vmul.f32 %v3600_v17, %v3600_v17 }
 0x257   : > { %v3611_v46 = vmax.f32 %v3511_v39, 0.0  ;;  %v1144_v4 = vmul.f32 %v3607_v5, %v3607_v5 }
 0x258   : > { %1178 = vadd.xlane.f32.xlu1 %v1135_v0  ;;  %v1147_v49 = vmul.f32 %v3603_v20, %v3603_v20 }
 0x259   : > { %v2551_v53 = vpop.f32.mrb[24].mxu0  ;;  %v1145_v39 = vmul.f32 %v3611_v46, %v3611_v46 }
 0x25a   : > { %v3521_v51 = vadd.f32 %v2551_v53, %v3397_v45  ;;  %1172 = vadd.xlane.f32.xlu0 %v1132_v47  ;;  %v965_v32 = vpop.f32.mrb[25].mxu0 }
 0x25b   : > { %v3529_v59 = vadd.f32 %v965_v32, %v3397_v45  ;;  %v2552_v41 = vpop.f32.mrb[26].mxu0 }
 0x25c   : > { %v3535_v57 = vadd.f32 %v2552_v41, %v3397_v45  ;;  %1174 = vadd.xlane.f32.xlu1 %v1133_v40  ;;  %v968_v26 = vpop.f32.mrb[27].mxu0  ;;  %v3624_v0 = vmax.f32 %v3521_v51, 0.0 }
 0x25d   : > { %v3538_v60 = vadd.f32 %v968_v26, %v3397_v45  ;;  %v3631_v47 = vmax.f32 %v3529_v59, 0.0 }
 0x25e   : > { %1056 = vadd.xlane.f32.xlu0 %v3532_v13  ;;  %v3627_v50 = vmax.f32 %v3535_v57, 0.0  ;;  %v1150_v51 = vmul.f32 %v3624_v0, %v3624_v0 }
 0x25f   : > { %v3635_v53 = vmax.f32 %v3538_v60, 0.0  ;;  %v1148_v40 = vmul.f32 %v3631_v47, %v3631_v47 }
 0x260   : > { %1058 = vadd.xlane.f32.xlu1 %v3541_v31  ;;  %v1151_v32 = vmul.f32 %v3627_v50, %v3627_v50 }
 0x261   : > { %v2555_v62 = vpop.f32.mrb[28].mxu0  ;;  %v1149_v55 = vmul.f32 %v3635_v53, %v3635_v53 }
 0x262   : > { %v3555_v56 = vadd.f32 %v2555_v62, %v3397_v45  ;;  %1052 = vadd.xlane.f32.xlu0 %v3548_v61  ;;  %v981_v1 = vpop.f32.mrb[29].mxu0 }
 0x263   : > { %v3562_v7 = vadd.f32 %v981_v1, %v3397_v45  ;;  %v2556_v48 = vpop.f32.mrb[30].mxu0 }
 0x264   : > { %v993_v21 = vadd.f32 %v2556_v48, %v3397_v45  ;;  %1054 = vadd.xlane.f32.xlu1 %v3552_v8  ;;  %v984_v18 = vpop.f32.mrb[31].mxu0  ;;  %v3648_v59 = vmax.f32 %v3555_v56, 0.0 }
 0x265   : > { %v985_v28 = vadd.f32 %v984_v18, %v3397_v45  ;;  %v3583_v45 = vmax.f32 %v3473_v33, 0.0  ;;  %v3654_v57 = vmax.f32 %v3562_v7, 0.0 }
 0x266   : > { %1184 = vadd.xlane.f32.xlu0 %v1138_v14  ;;  %v3650_v41 = vmax.f32 %v993_v21, 0.0  ;;  %v1154_v62 = vmul.f32 %v3648_v59, %v3648_v59 }
 0x267   : > { %v1140_v33 = vmul.f32 %v3583_v45, %v3583_v45  ;;  %v3657_v26 = vmax.f32 %v985_v28, 0.0  ;;  %v1152_v60 = vmul.f32 %v3654_v57, %v3654_v57 }
 0x268   : > { %1186 = vadd.xlane.f32.xlu1 %v1139_v12  ;;  %v1155_v56 = vmul.f32 %v3650_v41, %v3650_v41 }
 0x269   : > { %v1153_v58 = vmul.f32 %v3657_v26, %v3657_v26 }
 0x26a   : > { %1180 = vadd.xlane.f32.xlu0 %v1136_v36 }
 0x26c   : > { %1182 = vadd.xlane.f32.xlu1 %v1137_v3 }
 0x26e   : > { %1064 = vadd.xlane.f32.xlu0 %v3576_v37 }
 0x270   : > { %1066 = vadd.xlane.f32.xlu1 %v3579_v19 }
 0x272   : > { %1060 = vadd.xlane.f32.xlu0 %v3583_v45 }
 0x274   : > { %1062 = vadd.xlane.f32.xlu1 %v3587_v2 }
 0x276   : > { %1192 = vadd.xlane.f32.xlu0 %v1142_v63 }
 0x278   : > { %1194 = vadd.xlane.f32.xlu1 %v1143_v54 }
 0x27a   : > { %1188 = vadd.xlane.f32.xlu0 %v1140_v33 }
 0x27c   : > { %1190 = vadd.xlane.f32.xlu1 %v1141_v6 }
 0x27e   : > { %1072 = vadd.xlane.f32.xlu0 %v3600_v17 }
 0x280   : > { %1074 = vadd.xlane.f32.xlu1 %v3603_v20 }
 0x282   : > { %1068 = vadd.xlane.f32.xlu0 %v3607_v5 }
 0x284   : > { %1070 = vadd.xlane.f32.xlu1 %v3611_v46 }
 0x286   : > { %1200 = vadd.xlane.f32.xlu0 %v1146_v11 }
 0x288   : > { %1202 = vadd.xlane.f32.xlu1 %v1147_v49 }
 0x28a   : > { %1196 = vadd.xlane.f32.xlu0 %v1144_v4 }
 0x28c   : > { %1198 = vadd.xlane.f32.xlu1 %v1145_v39 }
 0x28e   : > { %1080 = vadd.xlane.f32.xlu0 %v3624_v0 }
 0x290   : > { %1082 = vadd.xlane.f32.xlu1 %v3627_v50 }
 0x292   : > { %1076 = vadd.xlane.f32.xlu0 %v3631_v47 }
 0x294   : > { %1078 = vadd.xlane.f32.xlu1 %v3635_v53 }
 0x296   : > { %1208 = vadd.xlane.f32.xlu0 %v1150_v51 }
 0x298   : > { %1210 = vadd.xlane.f32.xlu1 %v1151_v32 }
 0x29a   : > { %1204 = vadd.xlane.f32.xlu0 %v1148_v40 }
 0x29c   : > { %1206 = vadd.xlane.f32.xlu1 %v1149_v55 }
 0x29e   : > { %1088 = vadd.xlane.f32.xlu0 %v3648_v59 }
 0x2a0   : > { %1090 = vadd.xlane.f32.xlu1 %v3650_v41 }
 0x2a2   : > { %1084 = vadd.xlane.f32.xlu0 %v3654_v57 }
 0x2a4   : > { %1086 = vadd.xlane.f32.xlu1 %v3657_v26 }
 0x2a6   : > { %1212 = vadd.xlane.f32.xlu0 %v1152_v60 }
 0x2a8   : > { %1214 = vadd.xlane.f32.xlu1 %v1153_v58 }
 0x2aa   : > { %1216 = vadd.xlane.f32.xlu0 %v1154_v62 }
 0x2ac   : > { %1218 = vadd.xlane.f32.xlu1 %v1155_v56 }
 0x2bb   : > { %v1033_v1 = vpop.xlane.xlu0 %1032 }
 0x2bc   : > { %v1094_v48 = vmul.f32 0.015625, %v1033_v1 }
 0x2bd   : > { %v1035_v9 = vpop.xlane.xlu1 %1034 }
 0x2be   : > { %v1095_v18 = vmul.f32 0.015625, %v1035_v9  ;;  %v1254_v28 = vmul.f32 %v1094_v48, %v1094_v48 }
 0x2bf   : > { %v1029_v7 = vpop.xlane.xlu0 %1028 }
 0x2c0   : > { %v3669_v12 = vmul.f32 0.015625, %v1029_v7  ;;  %v1255_v54 = vmul.f32 %v1095_v18, %v1095_v18 }
 0x2c1   : > { %v1031_v21 = vpop.xlane.xlu1 %1030 }
 0x2c2   : > { %v3671_v3 = vmul.f32 0.015625, %v1031_v21  ;;  %v1252_v49 = vmul.f32 %v3669_v12, %v3669_v12 }
 0x2c3   : > { %v1161_v14 = vpop.xlane.xlu0 %1160 }
 0x2c4   : > { %v1222_v36 = vmul.f32 0.015625, %v1161_v14  ;;  %v1253_v32 = vmul.f32 %v3671_v3, %v3671_v3 }
 0x2c5   : > { %v1163_v63 = vpop.xlane.xlu1 %1162 }
 0x2c6   : > { %v1286_v33 = vsub.f32 %v1222_v36, %v1254_v28  ;;  %v1223_v6 = vmul.f32 0.015625, %v1163_v63 }
 0x2c7   : > { %v1157_v11 = vpop.xlane.xlu0 %1156 }
 0x2c8   : > { %v1318_v4 = vmax.f32 %v1286_v33, 0.0  ;;  %v1287_v39 = vsub.f32 %v1223_v6, %v1255_v54  ;;  %v1220_v51 = vmul.f32 0.015625, %v1157_v11 }
 0x2c9   : > { %v1159_v40 = vpop.xlane.xlu1 %1158 }
 0x2ca   : > { %v1382_v55 = vadd.f32 1e-05, %v1318_v4  ;;  %v1319_v60 = vmax.f32 %v1287_v39, 0.0  ;;  %v1284_v58 = vsub.f32 %v1220_v51, %v1252_v49  ;;  %v1221_v62 = vmul.f32 0.015625, %v1159_v40 }
 0x2cb   : > { %v1041_v56 = vpop.xlane.xlu0 %1040 }
 0x2cc   : > { %2693 = vrsqrt.f32 %v1382_v55  ;;  %v1383_v1 = vadd.f32 1e-05, %v1319_v60  ;;  %v1316_v9 = vmax.f32 %v1284_v58, 0.0  ;;  %v1285_v7 = vsub.f32 %v1221_v62, %v1253_v32 }
 0x2cd   : > { %v1043_v21 = vpop.xlane.xlu1 %1042  ;;  %v3677_v54 = vmul.f32 0.015625, %v1041_v56  ;;  %v1350_v62 = vsub.f32 %v3401_v44, %v1094_v48  ;;  %v1351_v56 = vsub.f32 %v3405_v27, %v1095_v18 }
 0x2ce   : > { %2695 = vrsqrt.f32 %v1383_v1  ;;  %v1380_v14 = vadd.f32 1e-05, %v1316_v9  ;;  %v1317_v28 = vmax.f32 %v1285_v7, 0.0  ;;  %v3679_v6 = vmul.f32 0.015625, %v1043_v21 }
 0x2cf   : > { %v1037_v36 = vpop.xlane.xlu0 %1036  ;;  %v1258_v49 = vmul.f32 %v3677_v54, %v3677_v54 }
 0x2d0   : > { %2697 = vrsqrt.f32 %v1380_v14  ;;  %v1381_v63 = vadd.f32 1e-05, %v1317_v28  ;;  %v3683_v4 = vmul.f32 0.015625, %v1037_v36  ;;  %v1259_v55 = vmul.f32 %v3679_v6, %v3679_v6 }
 0x2d1   : > { %v1039_v33 = vpop.xlane.xlu1 %1038  ;;  %v1348_v36 = vsub.f32 %v3408_v38, %v3669_v12 }
 0x2d2   : > { %2699 = vrsqrt.f32 %v1381_v63  ;;  %v3685_v51 = vmul.f32 0.015625, %v1039_v33  ;;  %v1256_v7 = vmul.f32 %v3683_v4, %v3683_v4 }
 0x2d3   : > { %v1169_v11 = vpop.xlane.xlu0 %1168 }
 0x2d4   : > { %v1226_v39 = vmul.f32 0.015625, %v1169_v11  ;;  %v1257_v63 = vmul.f32 %v3685_v51, %v3685_v51 }
 0x2d5   : > { %v1171_v32 = vpop.xlane.xlu1 %1170 }
 0x2d6   : > { %v2694_v40 = vpop.eup %2693  ;;  %v1290_v60 = vsub.f32 %v1226_v39, %v1258_v49  ;;  %v1227_v58 = vmul.f32 0.015625, %v1171_v32  ;;  %v1349_v32 = vsub.f32 %v3411_v30, %v3671_v3 }
 0x2d7   : > { %v1165_v1 = vpop.xlane.xlu0 %1164  ;;  %v1446_v11 = vmul.f32 %v2694_v40, %v1350_v62 }
 0x2d8   : > { %v2696_v9 = vpop.eup %2695  ;;  %v1322_v21 = vmax.f32 %v1290_v60, 0.0  ;;  %v1291_v14 = vsub.f32 %v1227_v58, %v1259_v55  ;;  %v1224_v28 = vmul.f32 0.015625, %v1165_v1 }
 0x2d9   : > { %v1167_v33 = vpop.xlane.xlu1 %1166  ;;  %v1447_v49 = vmul.f32 %v2696_v9, %v1351_v56 }
 0x2da   : > { %v2698_v44 = vpop.eup %2697  ;;  %v1386_v48 = vadd.f32 1e-05, %v1322_v21  ;;  %v1323_v27 = vmax.f32 %v1291_v14, 0.0  ;;  %v1288_v18 = vsub.f32 %v1224_v28, %v1256_v7  ;;  %v1225_v39 = vmul.f32 0.015625, %v1167_v33 }
 0x2db   : > { %v1049_v60 = vpop.xlane.xlu0 %1048  ;;  %v1444_v55 = vmul.f32 %v2698_v44, %v1348_v36  ;;  %v1483_v58 = vmul.f32 %v2959_v22, %v1447_v49  ;;  %v1482_v7 = vmul.f32 %v2959_v22, %v1446_v11 }
 0x2dc   : > { %v2700_v1 = vpop.eup %2699  ;;  %2701 = vrsqrt.f32 %v1386_v48  ;;  %v1387_v38 = vadd.f32 1e-05, %v1323_v27  ;;  %v1320_v12 = vmax.f32 %v1288_v18, 0.0  ;;  %v1289_v25 = vsub.f32 %v1225_v39, %v1257_v63 }
 0x2dd   : > { %v1051_v24 = vpop.xlane.xlu1 %1050  ;;  %v1445_v40 = vmul.f32 %v2700_v1, %v1349_v32  ;;  %v1480_v62 = vmul.f32 %v2959_v22, %v1444_v55  ;;  %v3703_v14 = vmul.f32 0.015625, %v1049_v60  ;;  %v1519_v28 = vadd.f32 %v2961_v23, %v1483_v58 }
 0x2de   : > { %2703 = vrsqrt.f32 %v1387_v38  ;;  %v1384_v56 = vadd.f32 1e-05, %v1320_v12  ;;  %v1321_v9 = vmax.f32 %v1289_v25, 0.0  ;;  %v3708_v49 = vmul.f32 0.015625, %v1051_v24 }
 0x2df   : > { %v1045_v21 = vpop.xlane.xlu0 %1044  ;;  %v1481_v30 = vmul.f32 %v2959_v22, %v1445_v40  ;;  %v1516_v63 = vadd.f32 %v2961_v23, %v1480_v62  ;;  %v1518_v25 = vadd.f32 %v2961_v23, %v1482_v7  ;;  %v1262_v48 = vmul.f32 %v3703_v14, %v3703_v14 }
 0x2e0   : > { %2705 = vrsqrt.f32 %v1384_v56  ;;  %v1385_v3 = vadd.f32 1e-05, %v1321_v9  ;;  %v3713_v27 = vmul.f32 0.015625, %v1045_v21  ;;  %v1263_v24 = vmul.f32 %v3708_v49, %v3708_v49 }
 0x2e1   : > { %v1047_v36 = vpop.xlane.xlu1 %1046  ;;  %v1517_v33 = vadd.f32 %v2961_v23, %v1481_v30  ;;  %v1550_v39 = vpack.c.bf16 %v1519_v28, %v1518_v25  ;;  %v1354_v38 = vsub.f32 %v3429_v10, %v3677_v54  ;;  %v1355_v12 = vsub.f32 %v3433_v29, %v3679_v6 }
 0x2e2   : > { %2707 = vrsqrt.f32 %v1385_v3  ;;  %v3715_v32 = vmul.f32 0.015625, %v1047_v36  ;;  %v1260_v56 = vmul.f32 %v3713_v27, %v3713_v27  ;;  %v1352_v30 = vsub.f32 %v3436_v34, %v3683_v4 }
 0x2e3   : > { %v1177_v11 = vpop.xlane.xlu0 %1176  ;;  %v1549_v44 = vpack.c.bf16 %v1517_v33, %v1516_v63  ;;  %v1353_v25 = vsub.f32 %v3439_v35, %v3685_v51 }
 0x2e4   : > { %v1230_v18 = vmul.f32 0.015625, %v1177_v11  ;;  %v1261_v3 = vmul.f32 %v3715_v32, %v3715_v32 }
 0x2e5   : > { %v1179_v60 = vpop.xlane.xlu1 %1178  ;;  %2573 = vmatprep.mubr.bf16.mxu1 %v1549_v44 }
 0x2e6   : > { %v2702_v55 = vpop.eup %2701  ;;  %v1294_v58 = vsub.f32 %v1230_v18, %v1262_v48  ;;  %v1231_v1 = vmul.f32 0.015625, %v1179_v60  ;;  %2574 = vmatmul.mubr.bf16.vlgmr.msra.gmra.mrb[0].mxu1 %v1550_v39 }
 0x2e7   : > { %v1173_v40 = vpop.xlane.xlu0 %1172  ;;  %v1450_v36 = vmul.f32 %v2702_v55, %v1354_v38 }
 0x2e8   : > { %v2704_v62 = vpop.eup %2703  ;;  %v1326_v9 = vmax.f32 %v1294_v58, 0.0  ;;  %v1295_v7 = vsub.f32 %v1231_v1, %v1263_v24  ;;  %v1228_v21 = vmul.f32 0.015625, %v1173_v40 }
 0x2e9   : > { %v1175_v28 = vpop.xlane.xlu1 %1174  ;;  %v1451_v10 = vmul.f32 %v2704_v62, %v1355_v12  ;;  %v1486_v38 = vmul.f32 %v2959_v22, %v1450_v36 }
 0x2ea   : > { %v2706_v54 = vpop.eup %2705  ;;  %v1390_v63 = vadd.f32 1e-05, %v1326_v9  ;;  %v1327_v29 = vmax.f32 %v1295_v7, 0.0  ;;  %v1292_v6 = vsub.f32 %v1228_v21, %v1260_v56  ;;  %v1229_v33 = vmul.f32 0.015625, %v1175_v28 }
 0x2eb   : > { %v1057_v11 = vpop.xlane.xlu0 %1056  ;;  %v1448_v44 = vmul.f32 %v2706_v54, %v1352_v30  ;;  %v1487_v48 = vmul.f32 %v2959_v22, %v1451_v10  ;;  %v1522_v30 = vadd.f32 %v2961_v23, %v1486_v38 }
 0x2ec   : > { %v2708_v18 = vpop.eup %2707  ;;  %2709 = vrsqrt.f32 %v1390_v63  ;;  %v1391_v34 = vadd.f32 1e-05, %v1327_v29  ;;  %v1324_v4 = vmax.f32 %v1292_v6, 0.0  ;;  %v1293_v39 = vsub.f32 %v1229_v33, %v1261_v3 }
 0x2ed   : > { %v1059_v60 = vpop.xlane.xlu1 %1058  ;;  %v1449_v55 = vmul.f32 %v2708_v18, %v1353_v25  ;;  %v1484_v24 = vmul.f32 %v2959_v22, %v1448_v44  ;;  %v3735_v40 = vmul.f32 0.015625, %v1057_v11  ;;  %v1523_v62 = vadd.f32 %v2961_v23, %v1487_v48 }
 0x2ee   : > { %2711 = vrsqrt.f32 %v1391_v34  ;;  %v1388_v58 = vadd.f32 1e-05, %v1324_v4  ;;  %v1325_v1 = vmax.f32 %v1293_v39, 0.0  ;;  %v3740_v21 = vmul.f32 0.015625, %v1059_v60 }
 0x2ef   : > { %v1053_v12 = vpop.xlane.xlu0 %1052  ;;  %v1485_v35 = vmul.f32 %v2959_v22, %v1449_v55  ;;  %v1520_v9 = vadd.f32 %v2961_v23, %v1484_v24  ;;  %v1266_v36 = vmul.f32 %v3735_v40, %v3735_v40  ;;  %v1552_v63 = vpack.c.bf16 %v1523_v62, %v1522_v30 }
 0x2f0   : > { %2713 = vrsqrt.f32 %v1388_v58  ;;  %v1389_v51 = vadd.f32 1e-05, %v1325_v1  ;;  %v3745_v10 = vmul.f32 0.015625, %v1053_v12  ;;  %v1267_v25 = vmul.f32 %v3740_v21, %v3740_v21 }
 0x2f1   : > { %v1055_v56 = vpop.xlane.xlu1 %1054  ;;  %v1521_v7 = vadd.f32 %v2961_v23, %v1485_v35  ;;  %v1358_v48 = vsub.f32 %v3475_v52, %v3703_v14  ;;  %v1359_v18 = vsub.f32 %v3483_v16, %v3708_v49  ;;  %v1356_v58 = vsub.f32 %v3489_v15, %v3713_v27 }
 0x2f2   : > { %2715 = vrsqrt.f32 %v1389_v51  ;;  %v3747_v29 = vmul.f32 0.015625, %v1055_v56  ;;  %v1264_v39 = vmul.f32 %v3745_v10, %v3745_v10  ;;  %v1357_v62 = vsub.f32 %v3492_v43, %v3715_v32 }
 0x2f3   : > { %v1185_v3 = vpop.xlane.xlu0 %1184  ;;  %v1551_v28 = vpack.c.bf16 %v1521_v7, %v1520_v9 }
 0x2f4   : > { %v1234_v54 = vmul.f32 0.015625, %v1185_v3  ;;  %v1265_v1 = vmul.f32 %v3747_v29, %v3747_v29 }
 0x2f5   : > { %v1187_v6 = vpop.xlane.xlu1 %1186  ;;  %2577 = vmatprep.mubr.bf16.mxu1 %v1551_v28 }
 0x2f6   : > { %v2710_v33 = vpop.eup %2709  ;;  %v1298_v11 = vsub.f32 %v1234_v54, %v1266_v36  ;;  %v1235_v44 = vmul.f32 0.015625, %v1187_v6  ;;  %2578 = vmatmul.mubr.bf16.gmra.mrb[4].mxu1 %v1552_v63 }
 0x2f7   : > { %v1181_v34 = vpop.xlane.xlu0 %1180  ;;  %v1454_v12 = vmul.f32 %v2710_v33, %v1358_v48 }
 0x2f8   : > { %v2712_v4 = vpop.eup %2711  ;;  %v1330_v60 = vmax.f32 %v1298_v11, 0.0  ;;  %v1299_v55 = vsub.f32 %v1235_v44, %v1267_v25  ;;  %v1232_v24 = vmul.f32 0.015625, %v1181_v34 }
 0x2f9   : > { %v1183_v38 = vpop.xlane.xlu1 %1182  ;;  %v1455_v52 = vmul.f32 %v2712_v4, %v1359_v18  ;;  %v1490_v33 = vmul.f32 %v2959_v22, %v1454_v12 }
 0x2fa   : > { %v2714_v14 = vpop.eup %2713  ;;  %v1394_v35 = vadd.f32 1e-05, %v1330_v60  ;;  %v1331_v16 = vmax.f32 %v1299_v55, 0.0  ;;  %v1296_v49 = vsub.f32 %v1232_v24, %v1264_v39  ;;  %v1233_v51 = vmul.f32 0.015625, %v1183_v38 }
 0x2fb   : > { %v1065_v56 = vpop.xlane.xlu0 %1064  ;;  %v1452_v9 = vmul.f32 %v2714_v14, %v1356_v58  ;;  %v1491_v7 = vmul.f32 %v2959_v22, %v1455_v52  ;;  %v1526_v39 = vadd.f32 %v2961_v23, %v1490_v33  ;;  %v1361_v33 = vsub.f32 %v3552_v8, %v3747_v29 }
 0x2fc   : > { %v2716_v30 = vpop.eup %2715  ;;  %2717 = vrsqrt.f32 %v1394_v35  ;;  %v1395_v15 = vadd.f32 1e-05, %v1331_v16  ;;  %v1328_v27 = vmax.f32 %v1296_v49, 0.0  ;;  %v1297_v3 = vsub.f32 %v1233_v51, %v1265_v1 }
 0x2fd   : > { %v1067_v28 = vpop.xlane.xlu1 %1066  ;;  %v1453_v36 = vmul.f32 %v2716_v30, %v1357_v62  ;;  %v1488_v54 = vmul.f32 %v2959_v22, %v1452_v9  ;;  %v3767_v11 = vmul.f32 0.015625, %v1065_v56  ;;  %v1527_v44 = vadd.f32 %v2961_v23, %v1491_v7 }
 0x2fe   : > { %2719 = vrsqrt.f32 %v1395_v15  ;;  %v1392_v63 = vadd.f32 1e-05, %v1328_v27  ;;  %v1329_v6 = vmax.f32 %v1297_v3, 0.0  ;;  %v3772_v4 = vmul.f32 0.015625, %v1067_v28 }
 0x2ff   : > { %v1061_v25 = vpop.xlane.xlu0 %1060  ;;  %v1489_v43 = vmul.f32 %v2959_v22, %v1453_v36  ;;  %v1524_v18 = vadd.f32 %v2961_v23, %v1488_v54  ;;  %v1270_v24 = vmul.f32 %v3767_v11, %v3767_v11  ;;  %v1554_v38 = vpack.c.bf16 %v1527_v44, %v1526_v39 }
 0x300   : > { %2721 = vrsqrt.f32 %v1392_v63  ;;  %v1393_v32 = vadd.f32 1e-05, %v1329_v6  ;;  %v3777_v58 = vmul.f32 0.015625, %v1061_v25  ;;  %v1271_v35 = vmul.f32 %v3772_v4, %v3772_v4 }
 0x301   : > { %v1063_v48 = vpop.xlane.xlu1 %1062  ;;  %v1525_v34 = vadd.f32 %v2961_v23, %v1489_v43  ;;  %v1362_v51 = vsub.f32 %v3532_v13, %v3735_v40  ;;  %v1363_v62 = vsub.f32 %v3541_v31, %v3740_v21  ;;  %v1360_v3 = vsub.f32 %v3548_v61, %v3745_v10 }
 0x302   : > { %2723 = vrsqrt.f32 %v1393_v32  ;;  %v3779_v12 = vmul.f32 0.015625, %v1063_v48  ;;  %v1268_v7 = vmul.f32 %v3777_v58, %v3777_v58 }
 0x303   : > { %v1193_v60 = vpop.xlane.xlu0 %1192  ;;  %v1553_v55 = vpack.c.bf16 %v1525_v34, %v1524_v18 }
 0x304   : > { %v1238_v1 = vmul.f32 0.015625, %v1193_v60  ;;  %v1269_v28 = vmul.f32 %v3779_v12, %v3779_v12 }
 0x305   : > { %v1195_v52 = vpop.xlane.xlu1 %1194  ;;  %2581 = vmatprep.mubr.bf16.mxu1 %v1553_v55 }
 0x306   : > { %v2718_v14 = vpop.eup %2717  ;;  %v1302_v16 = vsub.f32 %v1238_v1, %v1270_v24  ;;  %v1239_v49 = vmul.f32 0.015625, %v1195_v52  ;;  %2582 = vmatmul.mubr.bf16.gmra.mrb[8].mxu1 %v1554_v38 }
 0x307   : > { %v1189_v56 = vpop.xlane.xlu0 %1188  ;;  %v1458_v54 = vmul.f32 %v2718_v14, %v1362_v51 }
 0x308   : > { %v2720_v9 = vpop.eup %2719  ;;  %v1334_v30 = vmax.f32 %v1302_v16, 0.0  ;;  %v1303_v15 = vsub.f32 %v1239_v49, %v1271_v35  ;;  %v1236_v27 = vmul.f32 0.015625, %v1189_v56 }
 0x309   : > { %v1191_v36 = vpop.xlane.xlu1 %1190  ;;  %v1459_v13 = vmul.f32 %v2720_v9, %v1363_v62  ;;  %v1494_v24 = vmul.f32 %v2959_v22, %v1458_v54 }
 0x30a   : > { %v2722_v40 = vpop.eup %2721  ;;  %v1398_v63 = vadd.f32 1e-05, %v1334_v30  ;;  %v1335_v31 = vmax.f32 %v1303_v15, 0.0  ;;  %v1300_v21 = vsub.f32 %v1236_v27, %v1268_v7  ;;  %v1237_v6 = vmul.f32 0.015625, %v1191_v36 }
 0x30b   : > { %v1073_v25 = vpop.xlane.xlu0 %1072  ;;  %v1456_v43 = vmul.f32 %v2722_v40, %v1360_v3  ;;  %v1495_v32 = vmul.f32 %v2959_v22, %v1459_v13  ;;  %v1530_v51 = vadd.f32 %v2961_v23, %v1494_v24  ;;  %v1366_v40 = vsub.f32 %v3576_v37, %v3767_v11 }
 0x30c   : > { %v2724_v44 = vpop.eup %2723  ;;  %2725 = vrsqrt.f32 %v1398_v63  ;;  %v1399_v61 = vadd.f32 1e-05, %v1335_v31  ;;  %v1332_v10 = vmax.f32 %v1300_v21, 0.0  ;;  %v1301_v48 = vsub.f32 %v1237_v6, %v1269_v28 }
 0x30d   : > { %v1075_v18 = vpop.xlane.xlu1 %1074  ;;  %v1457_v34 = vmul.f32 %v2724_v44, %v1361_v33  ;;  %v1492_v39 = vmul.f32 %v2959_v22, %v1456_v43  ;;  %v3799_v38 = vmul.f32 0.015625, %v1073_v25  ;;  %v1531_v52 = vadd.f32 %v2961_v23, %v1495_v32 }
 0x30e   : > { %2727 = vrsqrt.f32 %v1399_v61  ;;  %v1396_v60 = vadd.f32 1e-05, %v1332_v10  ;;  %v1333_v55 = vmax.f32 %v1301_v48, 0.0  ;;  %v3804_v49 = vmul.f32 0.015625, %v1075_v18 }
 0x30f   : > { %v1069_v1 = vpop.xlane.xlu0 %1068  ;;  %v1493_v8 = vmul.f32 %v2959_v22, %v1457_v34  ;;  %v1528_v35 = vadd.f32 %v2961_v23, %v1492_v39  ;;  %v1274_v9 = vmul.f32 %v3799_v38, %v3799_v38  ;;  %v1556_v15 = vpack.c.bf16 %v1531_v52, %v1530_v51 }
 0x310   : > { %2729 = vrsqrt.f32 %v1396_v60  ;;  %v1397_v29 = vadd.f32 1e-05, %v1333_v55  ;;  %v3809_v7 = vmul.f32 0.015625, %v1069_v1  ;;  %v1275_v36 = vmul.f32 %v3804_v49, %v3804_v49 }
 0x311   : > { %v1071_v14 = vpop.xlane.xlu1 %1070  ;;  %v1529_v16 = vadd.f32 %v2961_v23, %v1493_v8  ;;  %v1367_v63 = vsub.f32 %v3579_v19, %v3772_v4  ;;  %v1364_v32 = vsub.f32 %v3583_v45, %v3777_v58  ;;  %v1365_v34 = vsub.f32 %v3587_v2, %v3779_v12 }
 0x312   : > { %2731 = vrsqrt.f32 %v1397_v29  ;;  %v3811_v27 = vmul.f32 0.015625, %v1071_v14  ;;  %v1272_v6 = vmul.f32 %v3809_v7, %v3809_v7 }
 0x313   : > { %v1201_v62 = vpop.xlane.xlu0 %1200  ;;  %v1555_v56 = vpack.c.bf16 %v1529_v16, %v1528_v35 }
 0x314   : > { %v1242_v30 = vmul.f32 0.015625, %v1201_v62  ;;  %v1273_v44 = vmul.f32 %v3811_v27, %v3811_v27 }
 0x315   : > { %v1203_v3 = vpop.xlane.xlu1 %1202  ;;  %2585 = vmatprep.mubr.bf16.mxu1 %v1555_v56 }
 0x316   : > { %v2726_v28 = vpop.eup %2725  ;;  %v1306_v54 = vsub.f32 %v1242_v30, %v1274_v9  ;;  %v1243_v13 = vmul.f32 0.015625, %v1203_v3  ;;  %2586 = vmatmul.mubr.bf16.gmra.mrb[12].mxu1 %v1556_v15 }
 0x317   : > { %v1197_v31 = vpop.xlane.xlu0 %1196  ;;  %v1462_v10 = vmul.f32 %v2726_v28, %v1366_v40 }
 0x318   : > { %v2728_v21 = vpop.eup %2727  ;;  %v1338_v33 = vmax.f32 %v1306_v54, 0.0  ;;  %v1307_v25 = vsub.f32 %v1243_v13, %v1275_v36  ;;  %v1240_v43 = vmul.f32 0.015625, %v1197_v31 }
 0x319   : > { %v1199_v61 = vpop.xlane.xlu1 %1198  ;;  %v1463_v37 = vmul.f32 %v2728_v21, %v1367_v63  ;;  %v1498_v16 = vmul.f32 %v2959_v22, %v1462_v10 }
 0x31a   : > { %v2730_v11 = vpop.eup %2729  ;;  %v1402_v48 = vadd.f32 1e-05, %v1338_v33  ;;  %v1339_v19 = vmax.f32 %v1307_v25, 0.0  ;;  %v1304_v4 = vsub.f32 %v1240_v43, %v1272_v6  ;;  %v1241_v18 = vmul.f32 0.015625, %v1199_v61 }
 0x31b   : > { %v1081_v39 = vpop.xlane.xlu0 %1080  ;;  %v1460_v60 = vmul.f32 %v2730_v11, %v1364_v32  ;;  %v1499_v55 = vmul.f32 %v2959_v22, %v1463_v37  ;;  %v1534_v28 = vadd.f32 %v2961_v23, %v1498_v16  ;;  %v1371_v61 = vsub.f32 %v3603_v20, %v3804_v49 }
 0x31c   : > { %v2732_v24 = vpop.eup %2731  ;;  %2733 = vrsqrt.f32 %v1402_v48  ;;  %v1403_v45 = vadd.f32 1e-05, %v1339_v19  ;;  %v1336_v58 = vmax.f32 %v1304_v4, 0.0  ;;  %v1305_v1 = vsub.f32 %v1241_v18, %v1273_v44 }
 0x31d   : > { %v1083_v8 = vpop.xlane.xlu1 %1082  ;;  %v1461_v29 = vmul.f32 %v2732_v24, %v1365_v34  ;;  %v1496_v52 = vmul.f32 %v2959_v22, %v1460_v60  ;;  %v3831_v62 = vmul.f32 0.015625, %v1081_v39  ;;  %v1535_v56 = vadd.f32 %v2961_v23, %v1499_v55 }
 0x31e   : > { %2735 = vrsqrt.f32 %v1403_v45  ;;  %v1400_v14 = vadd.f32 1e-05, %v1336_v58  ;;  %v1337_v35 = vmax.f32 %v1305_v1, 0.0  ;;  %v3836_v3 = vmul.f32 0.015625, %v1083_v8 }
 0x31f   : > { %v1077_v51 = vpop.xlane.xlu0 %1076  ;;  %v1497_v2 = vmul.f32 %v2959_v22, %v1461_v29  ;;  %v1532_v30 = vadd.f32 %v2961_v23, %v1496_v52  ;;  %v1278_v13 = vmul.f32 %v3831_v62, %v3831_v62  ;;  %v1558_v31 = vpack.c.bf16 %v1535_v56, %v1534_v28 }
 0x320   : > { %2737 = vrsqrt.f32 %v1400_v14  ;;  %v1401_v12 = vadd.f32 1e-05, %v1337_v35  ;;  %v3841_v40 = vmul.f32 0.015625, %v1077_v51  ;;  %v1279_v25 = vmul.f32 %v3836_v3, %v3836_v3 }
 0x321   : > { %v1079_v9 = vpop.xlane.xlu1 %1078  ;;  %v1533_v15 = vadd.f32 %v2961_v23, %v1497_v2  ;;  %v1370_v44 = vsub.f32 %v3600_v17, %v3799_v38  ;;  %v1368_v18 = vsub.f32 %v3607_v5, %v3809_v7  ;;  %v1369_v45 = vsub.f32 %v3611_v46, %v3811_v27 }
 0x322   : > { %2739 = vrsqrt.f32 %v1401_v12  ;;  %v3843_v21 = vmul.f32 0.015625, %v1079_v9  ;;  %v1276_v11 = vmul.f32 %v3841_v40, %v3841_v40 }
 0x323   : > { %v1209_v36 = vpop.xlane.xlu0 %1208  ;;  %v1557_v54 = vpack.c.bf16 %v1533_v15, %v1532_v30 }
 0x324   : > { %v1246_v63 = vmul.f32 0.015625, %v1209_v36  ;;  %v1277_v34 = vmul.f32 %v3843_v21, %v3843_v21 }
 0x325   : > { %v1211_v6 = vpop.xlane.xlu1 %1210  ;;  %2589 = vmatprep.mubr.bf16.mxu1 %v1557_v54 }
 0x326   : > { %v2734_v33 = vpop.eup %2733  ;;  %v1310_v43 = vsub.f32 %v1246_v63, %v1278_v13  ;;  %v1247_v32 = vmul.f32 0.015625, %v1211_v6  ;;  %2590 = vmatmul.mubr.bf16.gmra.mrb[16].mxu1 %v1558_v31 }
 0x327   : > { %v1205_v10 = vpop.xlane.xlu0 %1204  ;;  %v1466_v60 = vmul.f32 %v2734_v33, %v1370_v44 }
 0x328   : > { %v2736_v37 = vpop.eup %2735  ;;  %v1342_v48 = vmax.f32 %v1310_v43, 0.0  ;;  %v1311_v19 = vsub.f32 %v1247_v32, %v1279_v25  ;;  %v1244_v4 = vmul.f32 0.015625, %v1205_v10 }
 0x329   : > { %v1207_v39 = vpop.xlane.xlu1 %1206  ;;  %v1467_v17 = vmul.f32 %v2736_v37, %v1371_v61  ;;  %v1502_v12 = vmul.f32 %v2959_v22, %v1466_v60 }
 0x32a   : > { %v2738_v38 = vpop.eup %2737  ;;  %v1406_v55 = vadd.f32 1e-05, %v1342_v48  ;;  %v1343_v20 = vmax.f32 %v1311_v19, 0.0  ;;  %v1308_v49 = vsub.f32 %v1244_v4, %v1276_v11  ;;  %v1245_v24 = vmul.f32 0.015625, %v1207_v39 }
 0x32b   : > { %v1089_v58 = vpop.xlane.xlu0 %1088  ;;  %v1464_v1 = vmul.f32 %v2738_v38, %v1368_v18  ;;  %v1503_v8 = vmul.f32 %v2959_v22, %v1467_v17  ;;  %v1538_v13 = vadd.f32 %v2961_v23, %v1502_v12  ;;  %v1374_v48 = vsub.f32 %v3624_v0, %v3831_v62 }
 0x32c   : > { %v2740_v29 = vpop.eup %2739  ;;  %2741 = vrsqrt.f32 %v1406_v55  ;;  %v1407_v5 = vadd.f32 1e-05, %v1343_v20  ;;  %v1340_v7 = vmax.f32 %v1308_v49, 0.0  ;;  %v1309_v52 = vsub.f32 %v1245_v24, %v1277_v34 }
 0x32d   : > { %v1091_v14 = vpop.xlane.xlu1 %1090  ;;  %v1465_v35 = vmul.f32 %v2740_v29, %v1369_v45  ;;  %v1500_v16 = vmul.f32 %v2959_v22, %v1464_v1  ;;  %v1539_v9 = vadd.f32 %v2961_v23, %v1503_v8  ;;  %v3871_v6 = vmul.f32 0.015625, %v1089_v58 }
 0x32e   : > { %2743 = vrsqrt.f32 %v1407_v5  ;;  %v1404_v51 = vadd.f32 1e-05, %v1340_v7  ;;  %v1341_v2 = vmax.f32 %v1309_v52, 0.0  ;;  %v3875_v32 = vmul.f32 0.015625, %v1091_v14 }
 0x32f   : > { %v1085_v56 = vpop.xlane.xlu0 %1084  ;;  %v1501_v46 = vmul.f32 %v2959_v22, %v1465_v35  ;;  %v1536_v28 = vadd.f32 %v2961_v23, %v1500_v16  ;;  %v1560_v43 = vpack.c.bf16 %v1539_v9, %v1538_v13  ;;  %v1375_v19 = vsub.f32 %v3627_v50, %v3836_v3 }
 0x330   : > { %2745 = vrsqrt.f32 %v1404_v51  ;;  %v1405_v27 = vadd.f32 1e-05, %v1341_v2  ;;  %v3864_v30 = vmul.f32 0.015625, %v1085_v56  ;;  %v1282_v34 = vmul.f32 %v3871_v6, %v3871_v6 }
 0x331   : > { %v1087_v15 = vpop.xlane.xlu1 %1086  ;;  %v1537_v36 = vadd.f32 %v2961_v23, %v1501_v46  ;;  %v1372_v38 = vsub.f32 %v3631_v47, %v3841_v40  ;;  %v1283_v55 = vmul.f32 %v3875_v32, %v3875_v32  ;;  %v1373_v58 = vsub.f32 %v3635_v53, %v3843_v21 }
 0x332   : > { %2747 = vrsqrt.f32 %v1405_v27  ;;  %v3868_v54 = vmul.f32 0.015625, %v1087_v15  ;;  %v1280_v33 = vmul.f32 %v3864_v30, %v3864_v30  ;;  %v1376_v9 = vsub.f32 %v3654_v57, %v3864_v30 }
 0x333   : > { %v1213_v63 = vpop.xlane.xlu0 %1212  ;;  %v1559_v31 = vpack.c.bf16 %v1537_v36, %v1536_v28 }
 0x334   : > { %v1248_v25 = vmul.f32 0.015625, %v1213_v63  ;;  %v1281_v10 = vmul.f32 %v3868_v54, %v3868_v54  ;;  %v1377_v28 = vsub.f32 %v3657_v26, %v3868_v54  ;;  %v1378_v63 = vsub.f32 %v3648_v59, %v3871_v6 }
 0x335   : > { %v1215_v44 = vpop.xlane.xlu1 %1214  ;;  %2593 = vmatprep.mubr.bf16.mxu1 %v1559_v31 }
 0x336   : > { %v2742_v61 = vpop.eup %2741  ;;  %v1312_v37 = vsub.f32 %v1248_v25, %v1280_v33  ;;  %v1249_v11 = vmul.f32 0.015625, %v1215_v44  ;;  %2594 = vmatmul.mubr.bf16.gmra.mrb[20].mxu1 %v1560_v43  ;;  %v1379_v43 = vsub.f32 %v3650_v41, %v3875_v32  ;;  %v2822_v32 = vld [vmem:[%s4406_s5] sm:$0x7] }
 0x337   : > { %v1217_v4 = vpop.xlane.xlu0 %1216  ;;  %v1470_v49 = vmul.f32 %v2742_v61, %v1374_v48  ;;  %v3919_v48 = vrot.slane %v2822_v32, %v3286_v42 }
 0x338   : > { %v2744_v18 = vpop.eup %2743  ;;  %v1344_v39 = vmax.f32 %v1312_v37, 0.0  ;;  %v1313_v60 = vsub.f32 %v1249_v11, %v1281_v10  ;;  %v1250_v17 = vmul.f32 0.015625, %v1217_v4 }
 0x339   : > { %v1219_v20 = vpop.xlane.xlu1 %1218  ;;  %v1471_v0 = vmul.f32 %v2744_v18, %v1375_v19  ;;  %v1506_v16 = vmul.f32 %v2959_v22, %v1470_v49 }
 0x33a   : > { %v2746_v62 = vpop.eup %2745  ;;  %v1408_v24 = vadd.f32 1e-05, %v1344_v39  ;;  %v1345_v50 = vmax.f32 %v1313_v60, 0.0  ;;  %v1314_v3 = vsub.f32 %v1250_v17, %v1282_v34  ;;  %v1251_v45 = vmul.f32 0.015625, %v1219_v20 }
 0x33b   : > { %v1468_v1 = vmul.f32 %v2746_v62, %v1372_v38  ;;  %v1507_v8 = vmul.f32 %v2959_v22, %v1471_v0  ;;  %v1542_v56 = vadd.f32 %v2961_v23, %v1506_v16 }
 0x33c   : > { %v2748_v29 = vpop.eup %2747  ;;  %2749 = vrsqrt.f32 %v1408_v24  ;;  %v1409_v47 = vadd.f32 1e-05, %v1345_v50  ;;  %v1346_v40 = vmax.f32 %v1314_v3, 0.0  ;;  %v1315_v5 = vsub.f32 %v1251_v45, %v1283_v55 }
 0x33d   : > { %v1469_v7 = vmul.f32 %v2748_v29, %v1373_v58  ;;  %v1504_v52 = vmul.f32 %v2959_v22, %v1468_v1  ;;  %v1543_v21 = vadd.f32 %v2961_v23, %v1507_v8 }
 0x33e   : > { %2751 = vrsqrt.f32 %v1409_v47  ;;  %v1410_v14 = vadd.f32 1e-05, %v1346_v40  ;;  %v1347_v35 = vmax.f32 %v1315_v5, 0.0 }
 0x33f   : > { %v1505_v51 = vmul.f32 %v2959_v22, %v1469_v7  ;;  %v1540_v2 = vadd.f32 %v2961_v23, %v1504_v52  ;;  %v1562_v27 = vpack.c.bf16 %v1543_v21, %v1542_v56 }
 0x340   : > { %2753 = vrsqrt.f32 %v1410_v14  ;;  %v1411_v53 = vadd.f32 1e-05, %v1347_v35 }
 0x341   : > { %v1541_v12 = vadd.f32 %v2961_v23, %v1505_v51 }
 0x342   : > { %2755 = vrsqrt.f32 %v1411_v53 }
 0x343   : > { %v1561_v46 = vpack.c.bf16 %v1541_v12, %v1540_v2 }
 0x345   : > { %2597 = vmatprep.mubr.bf16.mxu1 %v1561_v46 }
 0x346   : > { %v2750_v15 = vpop.eup %2749  ;;  %2598 = vmatmul.mubr.bf16.gmra.mrb[24].mxu1 %v1562_v27 }
 0x347   : > { %v1472_v36 = vmul.f32 %v2750_v15, %v1376_v9 }
 0x348   : > { %v2752_v13 = vpop.eup %2751 }
 0x349   : > { %v1473_v31 = vmul.f32 %v2752_v13, %v1377_v28  ;;  %v1508_v33 = vmul.f32 %v2959_v22, %v1472_v36 }
 0x34a   : > { %v2754_v25 = vpop.eup %2753 }
 0x34b   : > { %v1509_v57 = vmul.f32 %v2959_v22, %v1473_v31  ;;  %v1474_v30 = vmul.f32 %v2754_v25, %v1378_v63  ;;  %v1544_v61 = vadd.f32 %v2961_v23, %v1508_v33 }
 0x34c   : > { %v2756_v44 = vpop.eup %2755 }
 0x34d   : > { %v1545_v26 = vadd.f32 %v2961_v23, %v1509_v57  ;;  %v1475_v54 = vmul.f32 %v2756_v44, %v1379_v43  ;;  %v1510_v10 = vmul.f32 %v2959_v22, %v1474_v30 }
 0x34f   : > { %v1563_v37 = vpack.c.bf16 %v1545_v26, %v1544_v61  ;;  %v1511_v59 = vmul.f32 %v2959_v22, %v1475_v54  ;;  %v1546_v6 = vadd.f32 %v2961_v23, %v1510_v10 }
 0x351   : > { %2601 = vmatprep.mubr.bf16.mxu1 %v1563_v37  ;;  %v1547_v11 = vadd.f32 %v2961_v23, %v1511_v59 }
 0x353   : > { %v1564_v41 = vpack.c.bf16 %v1547_v11, %v1546_v6 }
 0x355   : > { %2602 = vmatmul.mubr.bf16.gmra.mrb[28].mxu1 %v1564_v41 }
 0x3b9   : > { %v2575_v19 = vpop.f32.mrb[0].mxu1 }
 0x3ba   : > { %v1676_v4 = vadd.f32 %v2575_v19, %v3919_v48  ;;  %v1667_v18 = vpop.f32.mrb[1].mxu1 }
 0x3bb   : > { %v2576_v34 = vpop.f32.mrb[2].mxu1  ;;  %v1668_v39 = vadd.f32 %v1667_v18, %v3919_v48 }
 0x3bc   : > { %v3922_v22 = vmax.f32 %v1676_v4, 0.0  ;;  %v1679_v23 = vadd.f32 %v2576_v34, %v3919_v48  ;;  %v1670_v60 = vpop.f32.mrb[3].mxu1 }
 0x3bd   : > { %v1671_v38 = vadd.f32 %v1670_v60, %v3919_v48  ;;  %v3930_v42 = vmax.f32 %v1668_v39, 0.0 }
 0x3be   : > { %v3926_v17 = vmax.f32 %v1679_v23, 0.0  ;;  %1830 = vadd.xlane.f32.xlu0 %v3922_v22  ;;  %v1924_v20 = vmul.f32 %v3922_v22, %v3922_v22 }
 0x3bf   : > { %v3933_v55 = vmax.f32 %v1671_v38, 0.0  ;;  %v1922_v0 = vmul.f32 %v3930_v42, %v3930_v42 }
 0x3c0   : > { %1832 = vadd.xlane.f32.xlu1 %v3926_v17  ;;  %v1925_v49 = vmul.f32 %v3926_v17, %v3926_v17 }
 0x3c1   : > { %v1923_v3 = vmul.f32 %v3933_v55, %v3933_v55 }
 0x3c2   : > { %1826 = vadd.xlane.f32.xlu0 %v3930_v42 }
 0x3c4   : > { %1828 = vadd.xlane.f32.xlu1 %v3933_v55 }
 0x3c6   : > { %1958 = vadd.xlane.f32.xlu0 %v1924_v20 }
 0x3c8   : > { %1960 = vadd.xlane.f32.xlu1 %v1925_v49 }
 0x3c9   : > { %v2579_v62 = vpop.f32.mrb[4].mxu1 }
 0x3ca   : > { %v1692_v24 = vadd.f32 %v2579_v62, %v3919_v48  ;;  %1954 = vadd.xlane.f32.xlu0 %v1922_v0  ;;  %v1683_v50 = vpop.f32.mrb[5].mxu1 }
 0x3cb   : > { %v2580_v45 = vpop.f32.mrb[6].mxu1  ;;  %v1684_v1 = vadd.f32 %v1683_v50, %v3919_v48 }
 0x3cc   : > { %v3946_v58 = vmax.f32 %v1692_v24, 0.0  ;;  %v1695_v8 = vadd.f32 %v2580_v45, %v3919_v48  ;;  %1956 = vadd.xlane.f32.xlu1 %v1923_v3  ;;  %v1686_v29 = vpop.f32.mrb[7].mxu1 }
 0x3cd   : > { %v1687_v40 = vadd.f32 %v1686_v29, %v3919_v48  ;;  %v3954_v5 = vmax.f32 %v1684_v1, 0.0 }
 0x3ce   : > { %v3950_v47 = vmax.f32 %v1695_v8, 0.0  ;;  %1838 = vadd.xlane.f32.xlu0 %v3946_v58  ;;  %v1928_v52 = vmul.f32 %v3946_v58, %v3946_v58 }
 0x3cf   : > { %v3957_v7 = vmax.f32 %v1687_v40, 0.0  ;;  %v1926_v35 = vmul.f32 %v3954_v5, %v3954_v5 }
 0x3d0   : > { %1840 = vadd.xlane.f32.xlu1 %v3950_v47  ;;  %v1929_v14 = vmul.f32 %v3950_v47, %v3950_v47 }
 0x3d1   : > { %v1927_v21 = vmul.f32 %v3957_v7, %v3957_v7 }
 0x3d2   : > { %1834 = vadd.xlane.f32.xlu0 %v3954_v5 }
 0x3d4   : > { %1836 = vadd.xlane.f32.xlu1 %v3957_v7 }
 0x3d6   : > { %1966 = vadd.xlane.f32.xlu0 %v1928_v52 }
 0x3d8   : > { %1968 = vadd.xlane.f32.xlu1 %v1929_v14 }
 0x3d9   : > { %v2583_v16 = vpop.f32.mrb[8].mxu1 }
 0x3da   : > { %v1708_v51 = vadd.f32 %v2583_v16, %v3919_v48  ;;  %1962 = vadd.xlane.f32.xlu0 %v1926_v35  ;;  %v1699_v53 = vpop.f32.mrb[9].mxu1 }
 0x3db   : > { %v2584_v2 = vpop.f32.mrb[10].mxu1  ;;  %v1700_v56 = vadd.f32 %v1699_v53, %v3919_v48 }
 0x3dc   : > { %v3970_v12 = vmax.f32 %v1708_v51, 0.0  ;;  %v1711_v46 = vadd.f32 %v2584_v2, %v3919_v48  ;;  %1964 = vadd.xlane.f32.xlu1 %v1927_v21  ;;  %v1702_v27 = vpop.f32.mrb[11].mxu1 }
 0x3dd   : > { %v1703_v15 = vadd.f32 %v1702_v27, %v3919_v48  ;;  %v3978_v28 = vmax.f32 %v1700_v56, 0.0 }
 0x3de   : > { %v3974_v9 = vmax.f32 %v1711_v46, 0.0  ;;  %1846 = vadd.xlane.f32.xlu0 %v3970_v12  ;;  %v1932_v13 = vmul.f32 %v3970_v12, %v3970_v12 }
 0x3df   : > { %v3981_v36 = vmax.f32 %v1703_v15, 0.0  ;;  %v1930_v31 = vmul.f32 %v3978_v28, %v3978_v28 }
 0x3e0   : > { %1848 = vadd.xlane.f32.xlu1 %v3974_v9  ;;  %v1933_v63 = vmul.f32 %v3974_v9, %v3974_v9 }
 0x3e1   : > { %v1931_v57 = vmul.f32 %v3981_v36, %v3981_v36 }
 0x3e2   : > { %1842 = vadd.xlane.f32.xlu0 %v3978_v28 }
 0x3e4   : > { %1844 = vadd.xlane.f32.xlu1 %v3981_v36 }
 0x3e6   : > { %1974 = vadd.xlane.f32.xlu0 %v1932_v13 }
 0x3e8   : > { %1976 = vadd.xlane.f32.xlu1 %v1933_v63 }
 0x3e9   : > { %v2587_v33 = vpop.f32.mrb[12].mxu1 }
 0x3ea   : > { %v1724_v25 = vadd.f32 %v2587_v33, %v3919_v48  ;;  %1970 = vadd.xlane.f32.xlu0 %v1930_v31  ;;  %v1715_v43 = vpop.f32.mrb[13].mxu1 }
 0x3eb   : > { %v2588_v30 = vpop.f32.mrb[14].mxu1  ;;  %v1716_v61 = vadd.f32 %v1715_v43, %v3919_v48 }
 0x3ec   : > { %v3994_v44 = vmax.f32 %v1724_v25, 0.0  ;;  %v1727_v26 = vadd.f32 %v2588_v30, %v3919_v48  ;;  %1972 = vadd.xlane.f32.xlu1 %v1931_v57  ;;  %v1718_v54 = vpop.f32.mrb[15].mxu1 }
 0x3ed   : > { %v1719_v37 = vadd.f32 %v1718_v54, %v3919_v48  ;;  %v4002_v59 = vmax.f32 %v1716_v61, 0.0 }
 0x3ee   : > { %v3998_v10 = vmax.f32 %v1727_v26, 0.0  ;;  %1854 = vadd.xlane.f32.xlu0 %v3994_v44  ;;  %v1936_v11 = vmul.f32 %v3994_v44, %v3994_v44 }
 0x3ef   : > { %v4005_v6 = vmax.f32 %v1719_v37, 0.0  ;;  %v1934_v32 = vmul.f32 %v4002_v59, %v4002_v59 }
 0x3f0   : > { %1856 = vadd.xlane.f32.xlu1 %v3998_v10  ;;  %v1937_v41 = vmul.f32 %v3998_v10, %v3998_v10 }
 0x3f1   : > { %v1935_v34 = vmul.f32 %v4005_v6, %v4005_v6 }
 0x3f2   : > { %1850 = vadd.xlane.f32.xlu0 %v4002_v59 }
 0x3f4   : > { %1852 = vadd.xlane.f32.xlu1 %v4005_v6 }
 0x3f6   : > { %1982 = vadd.xlane.f32.xlu0 %v1936_v11 }
 0x3f8   : > { %1984 = vadd.xlane.f32.xlu1 %v1937_v41 }
 0x3f9   : > { %v2591_v19 = vpop.f32.mrb[16].mxu1 }
 0x3fa   : > { %v1740_v4 = vadd.f32 %v2591_v19, %v3919_v48  ;;  %1978 = vadd.xlane.f32.xlu0 %v1934_v32  ;;  %v1731_v18 = vpop.f32.mrb[17].mxu1 }
 0x3fb   : > { %v2592_v39 = vpop.f32.mrb[18].mxu1  ;;  %v1732_v60 = vadd.f32 %v1731_v18, %v3919_v48 }
 0x3fc   : > { %v4018_v23 = vmax.f32 %v1740_v4, 0.0  ;;  %v1743_v38 = vadd.f32 %v2592_v39, %v3919_v48  ;;  %1980 = vadd.xlane.f32.xlu1 %v1935_v34  ;;  %v1734_v20 = vpop.f32.mrb[19].mxu1 }
 0x3fd   : > { %v1735_v0 = vadd.f32 %v1734_v20, %v3919_v48  ;;  %v4026_v62 = vmax.f32 %v1732_v60, 0.0 }
 0x3fe   : > { %v4022_v49 = vmax.f32 %v1743_v38, 0.0  ;;  %1862 = vadd.xlane.f32.xlu0 %v4018_v23  ;;  %v1940_v50 = vmul.f32 %v4018_v23, %v4018_v23 }
 0x3ff   : > { %v4029_v24 = vmax.f32 %v1735_v0, 0.0  ;;  %v1938_v45 = vmul.f32 %v4026_v62, %v4026_v62 }
 0x400   : > { %1864 = vadd.xlane.f32.xlu1 %v4022_v49  ;;  %v1941_v3 = vmul.f32 %v4022_v49, %v4022_v49 }
 0x401   : > { %v1939_v40 = vmul.f32 %v4029_v24, %v4029_v24 }
 0x402   : > { %1858 = vadd.xlane.f32.xlu0 %v4026_v62 }
 0x404   : > { %1860 = vadd.xlane.f32.xlu1 %v4029_v24 }
 0x406   : > { %1990 = vadd.xlane.f32.xlu0 %v1940_v50 }
 0x408   : > { %1992 = vadd.xlane.f32.xlu1 %v1941_v3 }
 0x409   : > { %v2595_v1 = vpop.f32.mrb[20].mxu1 }
 0x40a   : > { %v1756_v8 = vadd.f32 %v2595_v1, %v3919_v48  ;;  %1986 = vadd.xlane.f32.xlu0 %v1938_v45  ;;  %v1747_v29 = vpop.f32.mrb[21].mxu1 }
 0x40b   : > { %v2596_v52 = vpop.f32.mrb[22].mxu1  ;;  %v1748_v35 = vadd.f32 %v1747_v29, %v3919_v48 }
 0x40c   : > { %v4042_v14 = vmax.f32 %v1756_v8, 0.0  ;;  %v1759_v16 = vadd.f32 %v2596_v52, %v3919_v48  ;;  %1988 = vadd.xlane.f32.xlu1 %v1939_v40  ;;  %v1750_v51 = vpop.f32.mrb[23].mxu1 }
 0x40d   : > { %v1751_v21 = vadd.f32 %v1750_v51, %v3919_v48  ;;  %v4050_v2 = vmax.f32 %v1748_v35, 0.0 }
 0x40e   : > { %v4046_v53 = vmax.f32 %v1759_v16, 0.0  ;;  %1870 = vadd.xlane.f32.xlu0 %v4042_v14  ;;  %v1944_v46 = vmul.f32 %v4042_v14, %v4042_v14 }
 0x40f   : > { %v4053_v56 = vmax.f32 %v1751_v21, 0.0  ;;  %v1942_v15 = vmul.f32 %v4050_v2, %v4050_v2 }
 0x410   : > { %1872 = vadd.xlane.f32.xlu1 %v4046_v53  ;;  %v1945_v27 = vmul.f32 %v4046_v53, %v4046_v53 }
 0x411   : > { %v1943_v33 = vmul.f32 %v4053_v56, %v4053_v56 }
 0x412   : > { %1866 = vadd.xlane.f32.xlu0 %v4050_v2 }
 0x414   : > { %1868 = vadd.xlane.f32.xlu1 %v4053_v56 }
 0x416   : > { %1998 = vadd.xlane.f32.xlu0 %v1944_v46 }
 0x418   : > { %2000 = vadd.xlane.f32.xlu1 %v1945_v27 }
 0x419   : > { %v2599_v13 = vpop.f32.mrb[24].mxu1 }
 0x41a   : > { %v1772_v63 = vadd.f32 %v2599_v13, %v3919_v48  ;;  %1994 = vadd.xlane.f32.xlu0 %v1942_v15  ;;  %v1763_v31 = vpop.f32.mrb[25].mxu1 }
 0x41b   : > { %v2600_v25 = vpop.f32.mrb[26].mxu1  ;;  %v1764_v57 = vadd.f32 %v1763_v31, %v3919_v48 }
 0x41c   : > { %v4066_v43 = vmax.f32 %v1772_v63, 0.0  ;;  %v1775_v30 = vadd.f32 %v2600_v25, %v3919_v48  ;;  %1996 = vadd.xlane.f32.xlu1 %v1943_v33  ;;  %v1766_v61 = vpop.f32.mrb[27].mxu1 }
 0x41d   : > { %v1767_v54 = vadd.f32 %v1766_v61, %v3919_v48  ;;  %v4074_v37 = vmax.f32 %v1764_v57, 0.0 }
 0x41e   : > { %v4070_v26 = vmax.f32 %v1775_v30, 0.0  ;;  %1878 = vadd.xlane.f32.xlu0 %v4066_v43  ;;  %v1948_v41 = vmul.f32 %v4066_v43, %v4066_v43 }
 0x41f   : > { %v4077_v11 = vmax.f32 %v1767_v54, 0.0  ;;  %v1946_v4 = vmul.f32 %v4074_v37, %v4074_v37 }
 0x420   : > { %1880 = vadd.xlane.f32.xlu1 %v4070_v26  ;;  %v1949_v32 = vmul.f32 %v4070_v26, %v4070_v26 }
 0x421   : > { %v1947_v60 = vmul.f32 %v4077_v11, %v4077_v11 }
 0x422   : > { %1874 = vadd.xlane.f32.xlu0 %v4074_v37 }
 0x424   : > { %1876 = vadd.xlane.f32.xlu1 %v4077_v11 }
 0x426   : > { %2006 = vadd.xlane.f32.xlu0 %v1948_v41 }
 0x428   : > { %2008 = vadd.xlane.f32.xlu1 %v1949_v32  ;;  %v2603_v19 = vpop.f32.mrb[28].mxu1 }
 0x429   : > { %v1788_v18 = vadd.f32 %v2603_v19, %v3919_v48  ;;  %v1779_v34 = vpop.f32.mrb[29].mxu1 }
 0x42a   : > { %2002 = vadd.xlane.f32.xlu0 %v1946_v4  ;;  %v2604_v39 = vpop.f32.mrb[30].mxu1  ;;  %v1780_v50 = vadd.f32 %v1779_v34, %v3919_v48 }
 0x42b   : > { %v4090_v38 = vmax.f32 %v1788_v18, 0.0  ;;  %v1791_v20 = vadd.f32 %v2604_v39, %v3919_v48  ;;  %v1782_v0 = vpop.f32.mrb[31].mxu1 }
 0x42c   : > { %2004 = vadd.xlane.f32.xlu1 %v1947_v60  ;;  %v1783_v45 = vadd.f32 %v1782_v0, %v3919_v48  ;;  %v4098_v1 = vmax.f32 %v1780_v50, 0.0 }
 0x42d   : > { %v4094_v3 = vmax.f32 %v1791_v20, 0.0  ;;  %v1952_v48 = vmul.f32 %v4090_v38, %v4090_v38 }
 0x42e   : > { %1886 = vadd.xlane.f32.xlu0 %v4090_v38  ;;  %v4101_v8 = vmax.f32 %v1783_v45, 0.0  ;;  %v1950_v29 = vmul.f32 %v4098_v1, %v4098_v1 }
 0x42f   : > { %v1953_v52 = vmul.f32 %v4094_v3, %v4094_v3 }
 0x430   : > { %1888 = vadd.xlane.f32.xlu1 %v4094_v3  ;;  %v1951_v40 = vmul.f32 %v4101_v8, %v4101_v8 }
 0x432   : > { %1882 = vadd.xlane.f32.xlu0 %v4098_v1 }
 0x434   : > { %1884 = vadd.xlane.f32.xlu1 %v4101_v8 }
 0x436   : > { %2010 = vadd.xlane.f32.xlu0 %v1950_v29 }
 0x438   : > { %2012 = vadd.xlane.f32.xlu1 %v1951_v40 }
 0x43a   : > { %2014 = vadd.xlane.f32.xlu0 %v1952_v48 }
 0x43c   : > { %2016 = vadd.xlane.f32.xlu1 %v1953_v52 }
 0x44b   : > { %v1831_v35 = vpop.xlane.xlu0 %1830 }
 0x44c   : > { %v1892_v21 = vmul.f32 0.03125, %v1831_v35 }
 0x44d   : > { %v1833_v16 = vpop.xlane.xlu1 %1832 }
 0x44e   : > { %v1893_v27 = vmul.f32 0.03125, %v1833_v16  ;;  %v2052_v13 = vmul.f32 %v1892_v21, %v1892_v21 }
 0x44f   : > { %v1827_v51 = vpop.xlane.xlu0 %1826 }
 0x450   : > { %v4113_v63 = vmul.f32 0.03125, %v1827_v51  ;;  %v2053_v57 = vmul.f32 %v1893_v27, %v1893_v27 }
 0x451   : > { %v1829_v46 = vpop.xlane.xlu1 %1828 }
 0x452   : > { %v4115_v33 = vmul.f32 0.03125, %v1829_v46  ;;  %v2050_v41 = vmul.f32 %v4113_v63, %v4113_v63 }
 0x453   : > { %v1959_v15 = vpop.xlane.xlu0 %1958 }
 0x454   : > { %v2020_v31 = vmul.f32 0.03125, %v1959_v15  ;;  %v2051_v18 = vmul.f32 %v4115_v33, %v4115_v33 }
 0x455   : > { %v1961_v25 = vpop.xlane.xlu1 %1960 }
 0x456   : > { %v2084_v30 = vsub.f32 %v2020_v31, %v2052_v13  ;;  %v2021_v61 = vmul.f32 0.03125, %v1961_v25 }
 0x457   : > { %v1955_v54 = vpop.xlane.xlu0 %1954 }
 0x458   : > { %v2116_v32 = vmax.f32 %v2084_v30, 0.0  ;;  %v2085_v19 = vsub.f32 %v2021_v61, %v2053_v57  ;;  %v2018_v4 = vmul.f32 0.03125, %v1955_v54  ;;  %v2148_v61 = vsub.f32 %v3922_v22, %v1892_v21 }
 0x459   : > { %v1957_v34 = vpop.xlane.xlu1 %1956 }
 0x45a   : > { %v2180_v39 = vadd.f32 1e-05, %v2116_v32  ;;  %v2117_v60 = vmax.f32 %v2085_v19, 0.0  ;;  %v2082_v20 = vsub.f32 %v2018_v4, %v2050_v41  ;;  %v2019_v0 = vmul.f32 0.03125, %v1957_v34 }
 0x45b   : > { %v1839_v50 = vpop.xlane.xlu0 %1838  ;;  %v2149_v34 = vsub.f32 %v3926_v17, %v1893_v27 }
 0x45c   : > { %2757 = vrsqrt.f32 %v2180_v39  ;;  %v2181_v45 = vadd.f32 1e-05, %v2117_v60  ;;  %v2114_v29 = vmax.f32 %v2082_v20, 0.0  ;;  %v2083_v40 = vsub.f32 %v2019_v0, %v2051_v18 }
 0x45d   : > { %v1841_v48 = vpop.xlane.xlu1 %1840  ;;  %v4121_v46 = vmul.f32 0.03125, %v1839_v50 }
 0x45e   : > { %2759 = vrsqrt.f32 %v2181_v45  ;;  %v2178_v52 = vadd.f32 1e-05, %v2114_v29  ;;  %v2115_v35 = vmax.f32 %v2083_v40, 0.0  ;;  %v4123_v13 = vmul.f32 0.03125, %v1841_v48  ;;  %v4412_v29 = vld [vmem:[#allocation2_spill] sm:$0xff] }
 0x45f   : > { %v1835_v16 = vpop.xlane.xlu0 %1834  ;;  %v2056_v25 = vmul.f32 %v4121_v46, %v4121_v46  ;;  %v2146_v45 = vsub.f32 %v3930_v42, %v4113_v63  ;;  %v2147_v42 = vsub.f32 %v3933_v55, %v4115_v33  ;;  %v4413_v63 = vld [vmem:[#allocation3_spill] sm:$0xff] }
 0x460   : > { %2761 = vrsqrt.f32 %v2178_v52  ;;  %v2179_v51 = vadd.f32 1e-05, %v2115_v35  ;;  %v4127_v57 = vmul.f32 0.03125, %v1835_v16  ;;  %v2057_v19 = vmul.f32 %v4123_v13, %v4123_v13 }
 0x461   : > { %v1837_v15 = vpop.xlane.xlu1 %1836 }
 0x462   : > { %2763 = vrsqrt.f32 %v2179_v51  ;;  %v4130_v54 = vmul.f32 0.03125, %v1837_v15  ;;  %v2054_v0 = vmul.f32 %v4127_v57, %v4127_v57 }
 0x463   : > { %v1967_v31 = vpop.xlane.xlu0 %1966 }
 0x464   : > { %v2024_v30 = vmul.f32 0.03125, %v1967_v31  ;;  %v2055_v52 = vmul.f32 %v4130_v54, %v4130_v54 }
 0x465   : > { %v1969_v41 = vpop.xlane.xlu1 %1968 }
 0x466   : > { %v2758_v32 = vpop.eup %2757  ;;  %v2088_v4 = vsub.f32 %v2024_v30, %v2056_v25  ;;  %v2025_v18 = vmul.f32 0.03125, %v1969_v41 }
 0x467   : > { %v2244_v39 = vmul.f32 %v2758_v32, %v2148_v61  ;;  %v1963_v60 = vpop.xlane.xlu0 %1962 }
 0x468   : > { %v2760_v20 = vpop.eup %2759  ;;  %v2120_v50 = vmax.f32 %v2088_v4, 0.0  ;;  %v2089_v22 = vsub.f32 %v2025_v18, %v2057_v19  ;;  %v2022_v21 = vmul.f32 0.03125, %v1963_v60 }
 0x469   : > { %v2280_v40 = vmul.f32 %v4412_v29, %v2244_v39  ;;  %v2245_v48 = vmul.f32 %v2760_v20, %v2149_v34  ;;  %v1965_v35 = vpop.xlane.xlu1 %1964 }
 0x46a   : > { %v2762_v17 = vpop.eup %2761  ;;  %v2184_v27 = vadd.f32 1e-05, %v2120_v50  ;;  %v2121_v16 = vmax.f32 %v2089_v22, 0.0  ;;  %v2086_v51 = vsub.f32 %v2022_v21, %v2054_v0  ;;  %v2023_v15 = vmul.f32 0.03125, %v1965_v35 }
 0x46b   : > { %v2316_v31 = vadd.f32 %v4413_v63, %v2280_v40  ;;  %v2281_v25 = vmul.f32 %v4412_v29, %v2245_v48  ;;  %v2242_v30 = vmul.f32 %v2762_v17, %v2146_v45  ;;  %v1847_v61 = vpop.xlane.xlu0 %1846 }
 0x46c   : > { %v2764_v41 = vpop.eup %2763  ;;  %2765 = vrsqrt.f32 %v2184_v27  ;;  %v2185_v32 = vadd.f32 1e-05, %v2121_v16  ;;  %v2118_v19 = vmax.f32 %v2086_v51, 0.0  ;;  %v2087_v4 = vsub.f32 %v2023_v15, %v2055_v52 }
 0x46d   : > { %2348 = vst [vmem:[%s4147_s30 + $0x10] sm:$0xff] %v2316_v31  ;;  %v2317_v18 = vadd.f32 %v4413_v63, %v2281_v25  ;;  %v2278_v34 = vmul.f32 %v4412_v29, %v2242_v30  ;;  %v2243_v39 = vmul.f32 %v2764_v41, %v2147_v42  ;;  %v1849_v55 = vpop.xlane.xlu1 %1848  ;;  %v4159_v21 = vmul.f32 0.03125, %v1847_v61 }
 0x46e   : > { %2767 = vrsqrt.f32 %v2185_v32  ;;  %v2182_v33 = vadd.f32 1e-05, %v2118_v19  ;;  %v2119_v60 = vmax.f32 %v2087_v4, 0.0  ;;  %v4163_v48 = vmul.f32 0.03125, %v1849_v55 }
 0x46f   : > { %2349 = vst [vmem:[%s4147_s30 + $0x18] sm:$0xff] %v2317_v18  ;;  %v2314_v20 = vadd.f32 %v4413_v63, %v2278_v34  ;;  %v2279_v0 = vmul.f32 %v4412_v29, %v2243_v39  ;;  %v1843_v50 = vpop.xlane.xlu0 %1842  ;;  %v2060_v35 = vmul.f32 %v4159_v21, %v4159_v21  ;;  %v2152_v16 = vsub.f32 %v3946_v58, %v4121_v46 }
 0x470   : > { %2769 = vrsqrt.f32 %v2182_v33  ;;  %v2183_v22 = vadd.f32 1e-05, %v2119_v60  ;;  %v4168_v17 = vmul.f32 0.03125, %v1843_v50  ;;  %v2061_v31 = vmul.f32 %v4163_v48, %v4163_v48 }
 0x471   : > { %2346 = vst [vmem:[%s4147_s30] sm:$0xff] %v2314_v20  ;;  %v2315_v45 = vadd.f32 %v4413_v63, %v2279_v0  ;;  %v1845_v40 = vpop.xlane.xlu1 %1844  ;;  %v2153_v61 = vsub.f32 %v3950_v47, %v4123_v13  ;;  %v2150_v34 = vsub.f32 %v3954_v5, %v4127_v57 }
 0x472   : > { %2771 = vrsqrt.f32 %v2183_v22  ;;  %v4172_v51 = vmul.f32 0.03125, %v1845_v40  ;;  %v2058_v4 = vmul.f32 %v4168_v17, %v4168_v17  ;;  %v2151_v22 = vsub.f32 %v3957_v7, %v4130_v54 }
 0x473   : > { %2347 = vst [vmem:[%s4147_s30 + $0x8] sm:$0xff] %v2315_v45  ;;  %v1975_v52 = vpop.xlane.xlu0 %1974 }
 0x474   : > { %v2028_v27 = vmul.f32 0.03125, %v1975_v52  ;;  %v2059_v33 = vmul.f32 %v4172_v51, %v4172_v51 }
 0x475   : > { %v1977_v15 = vpop.xlane.xlu1 %1976 }
 0x476   : > { %v2766_v42 = vpop.eup %2765  ;;  %v2092_v25 = vsub.f32 %v2028_v27, %v2060_v35  ;;  %v2029_v30 = vmul.f32 0.03125, %v1977_v15 }
 0x477   : > { %v2248_v41 = vmul.f32 %v2766_v42, %v2152_v16  ;;  %v1971_v32 = vpop.xlane.xlu0 %1970 }
 0x478   : > { %v2768_v19 = vpop.eup %2767  ;;  %v2124_v18 = vmax.f32 %v2092_v25, 0.0  ;;  %v2093_v58 = vsub.f32 %v2029_v30, %v2061_v31  ;;  %v2026_v46 = vmul.f32 0.03125, %v1971_v32 }
 0x479   : > { %v2284_v39 = vmul.f32 %v4412_v29, %v2248_v41  ;;  %v2249_v55 = vmul.f32 %v2768_v19, %v2153_v61  ;;  %v1973_v60 = vpop.xlane.xlu1 %1972 }
 0x47a   : > { %v2770_v47 = vpop.eup %2769  ;;  %v2188_v13 = vadd.f32 1e-05, %v2124_v18  ;;  %v2125_v20 = vmax.f32 %v2093_v58, 0.0  ;;  %v2090_v0 = vsub.f32 %v2026_v46, %v2058_v4  ;;  %v2027_v50 = vmul.f32 0.03125, %v1973_v60 }
 0x47b   : > { %v2320_v45 = vadd.f32 %v4413_v63, %v2284_v39  ;;  %v2285_v5 = vmul.f32 %v4412_v29, %v2249_v55  ;;  %v2246_v57 = vmul.f32 %v2770_v47, %v2150_v34  ;;  %v1855_v40 = vpop.xlane.xlu0 %1854 }
 0x47c   : > { %v2772_v52 = vpop.eup %2771  ;;  %2773 = vrsqrt.f32 %v2188_v13  ;;  %v2189_v35 = vadd.f32 1e-05, %v2125_v20  ;;  %v2122_v27 = vmax.f32 %v2090_v0, 0.0  ;;  %v2091_v16 = vsub.f32 %v2027_v50, %v2059_v33 }
 0x47d   : > { %2352 = vst [vmem:[%s4147_s30 + $0x30] sm:$0xff] %v2320_v45  ;;  %v2321_v15 = vadd.f32 %v4413_v63, %v2285_v5  ;;  %v2282_v42 = vmul.f32 %v4412_v29, %v2246_v57  ;;  %v2247_v31 = vmul.f32 %v2772_v52, %v2151_v22  ;;  %v1857_v7 = vpop.xlane.xlu1 %1856  ;;  %v4195_v19 = vmul.f32 0.03125, %v1855_v40 }
 0x47e   : > { %2775 = vrsqrt.f32 %v2189_v35  ;;  %v2186_v54 = vadd.f32 1e-05, %v2122_v27  ;;  %v2123_v25 = vmax.f32 %v2091_v16, 0.0  ;;  %v4199_v58 = vmul.f32 0.03125, %v1857_v7 }
 0x47f   : > { %2353 = vst [vmem:[%s4147_s30 + $0x38] sm:$0xff] %v2321_v15  ;;  %v2318_v30 = vadd.f32 %v4413_v63, %v2282_v42  ;;  %v2283_v61 = vmul.f32 %v4412_v29, %v2247_v31  ;;  %v1851_v41 = vpop.xlane.xlu0 %1850  ;;  %v2064_v34 = vmul.f32 %v4195_v19, %v4195_v19  ;;  %v2156_v33 = vsub.f32 %v3970_v12, %v4159_v21 }
 0x480   : > { %2777 = vrsqrt.f32 %v2186_v54  ;;  %v2187_v32 = vadd.f32 1e-05, %v2123_v25  ;;  %v4204_v39 = vmul.f32 0.03125, %v1851_v41  ;;  %v2065_v20 = vmul.f32 %v4199_v58, %v4199_v58 }
 0x481   : > { %2350 = vst [vmem:[%s4147_s30 + $0x20] sm:$0xff] %v2318_v30  ;;  %v2319_v4 = vadd.f32 %v4413_v63, %v2283_v61  ;;  %v1853_v18 = vpop.xlane.xlu1 %1852  ;;  %v2157_v22 = vsub.f32 %v3974_v9, %v4163_v48  ;;  %v2154_v35 = vsub.f32 %v3978_v28, %v4168_v17  ;;  %v2155_v25 = vsub.f32 %v3981_v36, %v4172_v51 }
 0x482   : > { %2779 = vrsqrt.f32 %v2187_v32  ;;  %v4208_v60 = vmul.f32 0.03125, %v1853_v18  ;;  %v2062_v40 = vmul.f32 %v4204_v39, %v4204_v39 }
 0x483   : > { %2351 = vst [vmem:[%s4147_s30 + $0x28] sm:$0xff] %v2319_v4  ;;  %v1983_v46 = vpop.xlane.xlu0 %1982 }
 0x484   : > { %v2032_v55 = vmul.f32 0.03125, %v1983_v46  ;;  %v2063_v15 = vmul.f32 %v4208_v60, %v4208_v60 }
 0x485   : > { %v1985_v47 = vpop.xlane.xlu1 %1984 }
 0x486   : > { %v2774_v13 = vpop.eup %2773  ;;  %v2096_v0 = vsub.f32 %v2032_v55, %v2064_v34  ;;  %v2033_v50 = vmul.f32 0.03125, %v1985_v47 }
 0x487   : > { %v2252_v45 = vmul.f32 %v2774_v13, %v2156_v33  ;;  %v1979_v5 = vpop.xlane.xlu0 %1978 }
 0x488   : > { %v2776_v57 = vpop.eup %2775  ;;  %v2128_v52 = vmax.f32 %v2096_v0, 0.0  ;;  %v2097_v12 = vsub.f32 %v2033_v50, %v2065_v20  ;;  %v2030_v21 = vmul.f32 0.03125, %v1979_v5 }
 0x489   : > { %v2288_v27 = vmul.f32 %v4412_v29, %v2252_v45  ;;  %v2253_v16 = vmul.f32 %v2776_v57, %v2157_v22  ;;  %v1981_v42 = vpop.xlane.xlu1 %1980 }
 0x48a   : > { %v2778_v9 = vpop.eup %2777  ;;  %v2192_v48 = vadd.f32 1e-05, %v2128_v52  ;;  %v2129_v31 = vmax.f32 %v2097_v12, 0.0  ;;  %v2094_v7 = vsub.f32 %v2030_v21, %v2062_v40  ;;  %v2031_v54 = vmul.f32 0.03125, %v1981_v42 }
 0x48b   : > { %v2324_v30 = vadd.f32 %v4413_v63, %v2288_v27  ;;  %v2289_v28 = vmul.f32 %v4412_v29, %v2253_v16  ;;  %v2250_v17 = vmul.f32 %v2778_v9, %v2154_v35  ;;  %v1863_v61 = vpop.xlane.xlu0 %1862  ;;  %v2160_v21 = vsub.f32 %v3994_v44, %v4195_v19 }
 0x48c   : > { %v2780_v41 = vpop.eup %2779  ;;  %2781 = vrsqrt.f32 %v2192_v48  ;;  %v2193_v32 = vadd.f32 1e-05, %v2129_v31  ;;  %v2126_v4 = vmax.f32 %v2094_v7, 0.0  ;;  %v2095_v18 = vsub.f32 %v2031_v54, %v2063_v15 }
 0x48d   : > { %2356 = vst [vmem:[%s4147_s30 + $0x50] sm:$0xff] %v2324_v30  ;;  %v2325_v46 = vadd.f32 %v4413_v63, %v2289_v28  ;;  %v2286_v34 = vmul.f32 %v4412_v29, %v2250_v17  ;;  %v2251_v55 = vmul.f32 %v2780_v41, %v2155_v25  ;;  %v1865_v36 = vpop.xlane.xlu1 %1864  ;;  %v4231_v50 = vmul.f32 0.03125, %v1863_v61 }
 0x48e   : > { %2783 = vrsqrt.f32 %v2193_v32  ;;  %v2190_v51 = vadd.f32 1e-05, %v2126_v4  ;;  %v2127_v33 = vmax.f32 %v2095_v18, 0.0  ;;  %v4235_v5 = vmul.f32 0.03125, %v1865_v36 }
 0x48f   : > { %2357 = vst [vmem:[%s4147_s30 + $0x58] sm:$0xff] %v2325_v46  ;;  %v2322_v47 = vadd.f32 %v4413_v63, %v2286_v34  ;;  %v2287_v13 = vmul.f32 %v4412_v29, %v2251_v55  ;;  %v1859_v20 = vpop.xlane.xlu0 %1858  ;;  %v2068_v40 = vmul.f32 %v4231_v50, %v4231_v50  ;;  %v2161_v48 = vsub.f32 %v3998_v10, %v4199_v58 }
 0x490   : > { %2785 = vrsqrt.f32 %v2190_v51  ;;  %v2191_v0 = vadd.f32 1e-05, %v2127_v33  ;;  %v4240_v52 = vmul.f32 0.03125, %v1859_v20  ;;  %v2069_v15 = vmul.f32 %v4235_v5, %v4235_v5 }
 0x491   : > { %2354 = vst [vmem:[%s4147_s30 + $0x40] sm:$0xff] %v2322_v47  ;;  %v2323_v22 = vadd.f32 %v4413_v63, %v2287_v13  ;;  %v1861_v45 = vpop.xlane.xlu1 %1860  ;;  %v2158_v28 = vsub.f32 %v4002_v59, %v4204_v39  ;;  %v2159_v34 = vsub.f32 %v4005_v6, %v4208_v60 }
 0x492   : > { %2787 = vrsqrt.f32 %v2191_v0  ;;  %v4244_v35 = vmul.f32 0.03125, %v1861_v45  ;;  %v2066_v25 = vmul.f32 %v4240_v52, %v4240_v52 }
 0x493   : > { %2355 = vst [vmem:[%s4147_s30 + $0x48] sm:$0xff] %v2323_v22  ;;  %v1991_v57 = vpop.xlane.xlu0 %1990 }
 0x494   : > { %v2036_v12 = vmul.f32 0.03125, %v1991_v57  ;;  %v2067_v41 = vmul.f32 %v4244_v35, %v4244_v35 }
 0x495   : > { %v1993_v27 = vpop.xlane.xlu1 %1992 }
 0x496   : > { %v2782_v16 = vpop.eup %2781  ;;  %v2100_v42 = vsub.f32 %v2036_v12, %v2068_v40  ;;  %v2037_v9 = vmul.f32 0.03125, %v1993_v27 }
 0x497   : > { %v2256_v31 = vmul.f32 %v2782_v16, %v2160_v21  ;;  %v1987_v7 = vpop.xlane.xlu0 %1986 }
 0x498   : > { %v2784_v54 = vpop.eup %2783  ;;  %v2132_v30 = vmax.f32 %v2100_v42, 0.0  ;;  %v2101_v44 = vsub.f32 %v2037_v9, %v2069_v15  ;;  %v2034_v19 = vmul.f32 0.03125, %v1987_v7 }
 0x499   : > { %v2292_v17 = vmul.f32 %v4412_v29, %v2256_v31  ;;  %v2257_v61 = vmul.f32 %v2784_v54, %v2161_v48  ;;  %v1989_v32 = vpop.xlane.xlu1 %1988  ;;  %v2164_v54 = vsub.f32 %v4018_v23, %v4231_v50 }
 0x49a   : > { %v2786_v10 = vpop.eup %2785  ;;  %v2196_v58 = vadd.f32 1e-05, %v2132_v30  ;;  %v2133_v4 = vmax.f32 %v2101_v44, 0.0  ;;  %v2098_v18 = vsub.f32 %v2034_v19, %v2066_v25  ;;  %v2035_v46 = vmul.f32 0.03125, %v1989_v32 }
 0x49b   : > { %v2328_v55 = vadd.f32 %v4413_v63, %v2292_v17  ;;  %v2293_v59 = vmul.f32 %v4412_v29, %v2257_v61  ;;  %v2254_v39 = vmul.f32 %v2786_v10, %v2158_v28  ;;  %v1871_v36 = vpop.xlane.xlu0 %1870  ;;  %v2165_v61 = vsub.f32 %v4022_v49, %v4235_v5 }
 0x49c   : > { %v2788_v51 = vpop.eup %2787  ;;  %2789 = vrsqrt.f32 %v2196_v58  ;;  %v2197_v33 = vadd.f32 1e-05, %v2133_v4  ;;  %v2130_v47 = vmax.f32 %v2098_v18, 0.0  ;;  %v2099_v13 = vsub.f32 %v2035_v46, %v2067_v41 }
 0x49d   : > { %2360 = vst [vmem:[%s4147_s30 + $0x70] sm:$0xff] %v2328_v55  ;;  %v2329_v20 = vadd.f32 %v4413_v63, %v2293_v59  ;;  %v2290_v0 = vmul.f32 %v4412_v29, %v2254_v39  ;;  %v2255_v22 = vmul.f32 %v2788_v51, %v2159_v34  ;;  %v1873_v6 = vpop.xlane.xlu1 %1872  ;;  %v4267_v27 = vmul.f32 0.03125, %v1871_v36 }
 0x49e   : > { %2791 = vrsqrt.f32 %v2197_v33  ;;  %v2194_v60 = vadd.f32 1e-05, %v2130_v47  ;;  %v2131_v45 = vmax.f32 %v2099_v13, 0.0  ;;  %v4271_v42 = vmul.f32 0.03125, %v1873_v6 }
 0x49f   : > { %2361 = vst [vmem:[%s4147_s30 + $0x78] sm:$0xff] %v2329_v20  ;;  %v2326_v57 = vadd.f32 %v4413_v63, %v2290_v0  ;;  %v2291_v40 = vmul.f32 %v4412_v29, %v2255_v22  ;;  %v1867_v12 = vpop.xlane.xlu0 %1866  ;;  %v2072_v48 = vmul.f32 %v4267_v27, %v4267_v27  ;;  %v2162_v18 = vsub.f32 %v4026_v62, %v4240_v52 }
 0x4a0   : > { %2793 = vrsqrt.f32 %v2194_v60  ;;  %v2195_v21 = vadd.f32 1e-05, %v2131_v45  ;;  %v4276_v31 = vmul.f32 0.03125, %v1867_v12  ;;  %v2073_v19 = vmul.f32 %v4271_v42, %v4271_v42 }
 0x4a1   : > { %2358 = vst [vmem:[%s4147_s30 + $0x60] sm:$0xff] %v2326_v57  ;;  %v2327_v16 = vadd.f32 %v4413_v63, %v2291_v40  ;;  %v1869_v15 = vpop.xlane.xlu1 %1868  ;;  %v2163_v33 = vsub.f32 %v4029_v24, %v4244_v35 }
 0x4a2   : > { %2795 = vrsqrt.f32 %v2195_v21  ;;  %v4280_v25 = vmul.f32 0.03125, %v1869_v15  ;;  %v2070_v58 = vmul.f32 %v4276_v31, %v4276_v31 }
 0x4a3   : > { %2359 = vst [vmem:[%s4147_s30 + $0x68] sm:$0xff] %v2327_v16  ;;  %v1999_v9 = vpop.xlane.xlu0 %1998 }
 0x4a4   : > { %v2040_v7 = vmul.f32 0.03125, %v1999_v9  ;;  %v2071_v55 = vmul.f32 %v4280_v25, %v4280_v25 }
 0x4a5   : > { %v2001_v30 = vpop.xlane.xlu1 %2000 }
 0x4a6   : > { %v2790_v44 = vpop.eup %2789  ;;  %v2104_v28 = vsub.f32 %v2040_v7, %v2072_v48  ;;  %v2041_v17 = vmul.f32 0.03125, %v2001_v30 }
 0x4a7   : > { %v2260_v41 = vmul.f32 %v2790_v44, %v2164_v54  ;;  %v1995_v32 = vpop.xlane.xlu0 %1994 }
 0x4a8   : > { %v2792_v10 = vpop.eup %2791  ;;  %v2136_v4 = vmax.f32 %v2104_v28, 0.0  ;;  %v2105_v23 = vsub.f32 %v2041_v17, %v2073_v19  ;;  %v2038_v50 = vmul.f32 0.03125, %v1995_v32  ;;  %v2168_v17 = vsub.f32 %v4042_v14, %v4267_v27 }
 0x4a9   : > { %v2296_v46 = vmul.f32 %v4412_v29, %v2260_v41  ;;  %v2261_v34 = vmul.f32 %v2792_v10, %v2165_v61  ;;  %v1997_v59 = vpop.xlane.xlu1 %1996 }
 0x4aa   : > { %v2794_v49 = vpop.eup %2793  ;;  %v2200_v5 = vadd.f32 1e-05, %v2136_v4  ;;  %v2137_v39 = vmax.f32 %v2105_v23, 0.0  ;;  %v2102_v36 = vsub.f32 %v2038_v50, %v2070_v58  ;;  %v2039_v51 = vmul.f32 0.03125, %v1997_v59 }
 0x4ab   : > { %v2332_v47 = vadd.f32 %v4413_v63, %v2296_v46  ;;  %v2297_v62 = vmul.f32 %v4412_v29, %v2261_v34  ;;  %v2258_v52 = vmul.f32 %v2794_v49, %v2162_v18  ;;  %v1879_v13 = vpop.xlane.xlu0 %1878  ;;  %v2169_v23 = vsub.f32 %v4046_v53, %v4271_v42 }
 0x4ac   : > { %v2796_v20 = vpop.eup %2795  ;;  %2797 = vrsqrt.f32 %v2200_v5  ;;  %v2201_v0 = vadd.f32 1e-05, %v2137_v39  ;;  %v2134_v22 = vmax.f32 %v2102_v36, 0.0  ;;  %v2103_v6 = vsub.f32 %v2039_v51, %v2071_v55 }
 0x4ad   : > { %2364 = vst [vmem:[%s4147_s30 + $0x90] sm:$0xff] %v2332_v47  ;;  %v2333_v60 = vadd.f32 %v4413_v63, %v2297_v62  ;;  %v2294_v45 = vmul.f32 %v4412_v29, %v2258_v52  ;;  %v2259_v57 = vmul.f32 %v2796_v20, %v2163_v33  ;;  %v1881_v24 = vpop.xlane.xlu1 %1880  ;;  %v4303_v9 = vmul.f32 0.03125, %v1879_v13 }
 0x4ae   : > { %2799 = vrsqrt.f32 %v2201_v0  ;;  %v2198_v35 = vadd.f32 1e-05, %v2134_v22  ;;  %v2135_v40 = vmax.f32 %v2103_v6, 0.0  ;;  %v4307_v54 = vmul.f32 0.03125, %v1881_v24 }
 0x4af   : > { %2365 = vst [vmem:[%s4147_s30 + $0x98] sm:$0xff] %v2333_v60  ;;  %v2330_v12 = vadd.f32 %v4413_v63, %v2294_v45  ;;  %v2295_v21 = vmul.f32 %v4412_v29, %v2259_v57  ;;  %v1875_v16 = vpop.xlane.xlu0 %1874  ;;  %v2076_v44 = vmul.f32 %v4303_v9, %v4303_v9  ;;  %v2166_v59 = vsub.f32 %v4050_v2, %v4276_v31 }
 0x4b0   : > { %2801 = vrsqrt.f32 %v2198_v35  ;;  %v2199_v15 = vadd.f32 1e-05, %v2135_v40  ;;  %v4312_v19 = vmul.f32 0.03125, %v1875_v16  ;;  %v2077_v10 = vmul.f32 %v4307_v54, %v4307_v54 }
 0x4b1   : > { %2362 = vst [vmem:[%s4147_s30 + $0x80] sm:$0xff] %v2330_v12  ;;  %v2331_v48 = vadd.f32 %v4413_v63, %v2295_v21  ;;  %v1877_v7 = vpop.xlane.xlu1 %1876  ;;  %v2167_v62 = vsub.f32 %v4053_v56, %v4280_v25 }
 0x4b2   : > { %2803 = vrsqrt.f32 %v2199_v15  ;;  %v4316_v61 = vmul.f32 0.03125, %v1877_v7  ;;  %v2074_v34 = vmul.f32 %v4312_v19, %v4312_v19 }
 0x4b3   : > { %2363 = vst [vmem:[%s4147_s30 + $0x88] sm:$0xff] %v2331_v48  ;;  %v2007_v30 = vpop.xlane.xlu0 %2006 }
 0x4b4   : > { %v2044_v28 = vmul.f32 0.03125, %v2007_v30  ;;  %v2075_v39 = vmul.f32 %v4316_v61, %v4316_v61 }
 0x4b5   : > { %v2009_v41 = vpop.xlane.xlu1 %2008 }
 0x4b6   : > { %v2798_v32 = vpop.eup %2797  ;;  %v2108_v58 = vsub.f32 %v2044_v28, %v2076_v44  ;;  %v2045_v4 = vmul.f32 0.03125, %v2009_v41  ;;  %v2172_v41 = vsub.f32 %v4066_v43, %v4303_v9 }
 0x4b7   : > { %v2264_v50 = vmul.f32 %v2798_v32, %v2168_v17  ;;  %v2003_v18 = vpop.xlane.xlu0 %2002 }
 0x4b8   : > { %v2800_v46 = vpop.eup %2799  ;;  %v2140_v55 = vmax.f32 %v2108_v58, 0.0  ;;  %v2109_v14 = vsub.f32 %v2045_v4, %v2077_v10  ;;  %v2042_v27 = vmul.f32 0.03125, %v2003_v18  ;;  %v2173_v18 = vsub.f32 %v4070_v26, %v4307_v54 }
 0x4b9   : > { %v2300_v49 = vmul.f32 %v4412_v29, %v2264_v50  ;;  %v2265_v5 = vmul.f32 %v2800_v46, %v2169_v23  ;;  %v2005_v36 = vpop.xlane.xlu1 %2004 }
 0x4ba   : > { %v2802_v53 = vpop.eup %2801  ;;  %v2204_v42 = vadd.f32 1e-05, %v2140_v55  ;;  %v2141_v51 = vmax.f32 %v2109_v14, 0.0  ;;  %v2106_v33 = vsub.f32 %v2042_v27, %v2074_v34  ;;  %v2043_v47 = vmul.f32 0.03125, %v2005_v36 }
 0x4bb   : > { %v2336_v52 = vadd.f32 %v4413_v63, %v2300_v49  ;;  %v2301_v2 = vmul.f32 %v4412_v29, %v2265_v5  ;;  %v2262_v31 = vmul.f32 %v2802_v53, %v2166_v59  ;;  %v1887_v13 = vpop.xlane.xlu0 %1886  ;;  %v2170_v59 = vsub.f32 %v4074_v37, %v4312_v19 }
 0x4bc   : > { %v2804_v20 = vpop.eup %2803  ;;  %2805 = vrsqrt.f32 %v2204_v42  ;;  %v2205_v0 = vadd.f32 1e-05, %v2141_v51  ;;  %v2138_v22 = vmax.f32 %v2106_v33, 0.0  ;;  %v2107_v6 = vsub.f32 %v2043_v47, %v2075_v39 }
 0x4bd   : > { %2368 = vst [vmem:[%s4147_s30 + $0xb0] sm:$0xff] %v2336_v52  ;;  %v2337_v60 = vadd.f32 %v4413_v63, %v2301_v2  ;;  %v2298_v45 = vmul.f32 %v4412_v29, %v2262_v31  ;;  %v2263_v57 = vmul.f32 %v2804_v20, %v2167_v62  ;;  %v1889_v56 = vpop.xlane.xlu1 %1888  ;;  %v4346_v44 = vmul.f32 0.03125, %v1887_v13 }
 0x4be   : > { %2807 = vrsqrt.f32 %v2205_v0  ;;  %v2202_v25 = vadd.f32 1e-05, %v2138_v22  ;;  %v2139_v24 = vmax.f32 %v2107_v6, 0.0  ;;  %v4352_v32 = vmul.f32 0.03125, %v1889_v56 }
 0x4bf   : > { %2369 = vst [vmem:[%s4147_s30 + $0xb8] sm:$0xff] %v2337_v60  ;;  %v2334_v35 = vadd.f32 %v4413_v63, %v2298_v45  ;;  %v2299_v40 = vmul.f32 %v4412_v29, %v2263_v57  ;;  %v1883_v12 = vpop.xlane.xlu0 %1882  ;;  %v2080_v14 = vmul.f32 %v4346_v44, %v4346_v44  ;;  %v2171_v33 = vsub.f32 %v4077_v11, %v4316_v61 }
 0x4c0   : > { %2809 = vrsqrt.f32 %v2202_v25  ;;  %v2203_v21 = vadd.f32 1e-05, %v2139_v24  ;;  %v4341_v15 = vmul.f32 0.03125, %v1883_v12  ;;  %v2081_v39 = vmul.f32 %v4352_v32, %v4352_v32 }
 0x4c1   : > { %2366 = vst [vmem:[%s4147_s30 + $0xa0] sm:$0xff] %v2334_v35  ;;  %v2335_v16 = vadd.f32 %v4413_v63, %v2299_v40  ;;  %v1885_v48 = vpop.xlane.xlu1 %1884  ;;  %v2176_v40 = vsub.f32 %v4090_v38, %v4346_v44 }
 0x4c2   : > { %2811 = vrsqrt.f32 %v2203_v21  ;;  %v4343_v7 = vmul.f32 0.03125, %v1885_v48  ;;  %v2078_v28 = vmul.f32 %v4341_v15, %v4341_v15  ;;  %v2174_v57 = vsub.f32 %v4098_v1, %v4341_v15 }
 0x4c3   : > { %2367 = vst [vmem:[%s4147_s30 + $0xa8] sm:$0xff] %v2335_v16  ;;  %v2011_v30 = vpop.xlane.xlu0 %2010  ;;  %v2177_v48 = vsub.f32 %v4094_v3, %v4352_v32 }
 0x4c4   : > { %v2046_v17 = vmul.f32 0.03125, %v2011_v30  ;;  %v2079_v4 = vmul.f32 %v4343_v7, %v4343_v7  ;;  %v2175_v25 = vsub.f32 %v4101_v8, %v4343_v7 }
 0x4c5   : > { %v2013_v10 = vpop.xlane.xlu1 %2012 }
 0x4c6   : > { %v2806_v58 = vpop.eup %2805  ;;  %v2110_v23 = vsub.f32 %v2046_v17, %v2078_v28  ;;  %v2047_v50 = vmul.f32 0.03125, %v2013_v10 }
 0x4c7   : > { %v2268_v46 = vmul.f32 %v2806_v58, %v2172_v41  ;;  %v2015_v34 = vpop.xlane.xlu0 %2014 }
 0x4c8   : > { %v2808_v55 = vpop.eup %2807  ;;  %v2142_v27 = vmax.f32 %v2110_v23, 0.0  ;;  %v2111_v43 = vsub.f32 %v2047_v50, %v2079_v4  ;;  %v2048_v9 = vmul.f32 0.03125, %v2015_v34 }
 0x4c9   : > { %v2304_v49 = vmul.f32 %v4412_v29, %v2268_v46  ;;  %v2269_v5 = vmul.f32 %v2808_v55, %v2173_v18  ;;  %v2017_v26 = vpop.xlane.xlu1 %2016 }
 0x4ca   : > { %v2810_v54 = vpop.eup %2809  ;;  %v2206_v36 = vadd.f32 1e-05, %v2142_v27  ;;  %v2143_v53 = vmax.f32 %v2111_v43, 0.0  ;;  %v2112_v42 = vsub.f32 %v2048_v9, %v2080_v14  ;;  %v2049_v51 = vmul.f32 0.03125, %v2017_v26 }
 0x4cb   : > { %v2340_v47 = vadd.f32 %v4413_v63, %v2304_v49  ;;  %v2305_v37 = vmul.f32 %v4412_v29, %v2269_v5  ;;  %v2266_v19 = vmul.f32 %v2810_v54, %v2170_v59 }
 0x4cc   : > { %v2812_v62 = vpop.eup %2811  ;;  %2813 = vrsqrt.f32 %v2206_v36  ;;  %v2207_v52 = vadd.f32 1e-05, %v2143_v53  ;;  %v2144_v2 = vmax.f32 %v2112_v42, 0.0  ;;  %v2113_v31 = vsub.f32 %v2049_v51, %v2081_v39 }
 0x4cd   : > { %2372 = vst [vmem:[%s4147_s30 + $0xd0] sm:$0xff] %v2340_v47  ;;  %v2341_v13 = vadd.f32 %v4413_v63, %v2305_v37  ;;  %v2302_v20 = vmul.f32 %v4412_v29, %v2266_v19  ;;  %v2267_v0 = vmul.f32 %v2812_v62, %v2171_v33 }
 0x4ce   : > { %2815 = vrsqrt.f32 %v2207_v52  ;;  %v2208_v11 = vadd.f32 1e-05, %v2144_v2  ;;  %v2145_v61 = vmax.f32 %v2113_v31, 0.0 }
 0x4cf   : > { %2373 = vst [vmem:[%s4147_s30 + $0xd8] sm:$0xff] %v2341_v13  ;;  %v2338_v22 = vadd.f32 %v4413_v63, %v2302_v20  ;;  %v2303_v6 = vmul.f32 %v4412_v29, %v2267_v0 }
 0x4d0   : > { %2817 = vrsqrt.f32 %v2208_v11  ;;  %v2209_v60 = vadd.f32 1e-05, %v2145_v61 }
 0x4d1   : > { %2370 = vst [vmem:[%s4147_s30 + $0xc0] sm:$0xff] %v2338_v22  ;;  %v2339_v45 = vadd.f32 %v4413_v63, %v2303_v6 }
 0x4d2   : > { %2819 = vrsqrt.f32 %v2209_v60 }
 0x4d3   : > { %2371 = vst [vmem:[%s4147_s30 + $0xc8] sm:$0xff] %v2339_v45 }
 0x4d6   : > { %v2814_v56 = vpop.eup %2813 }
 0x4d7   : > { %v2270_v24 = vmul.f32 %v2814_v56, %v2174_v57 }
 0x4d8   : > { %v2816_v35 = vpop.eup %2815 }
 0x4d9   : > { %v2306_v12 = vmul.f32 %v4412_v29, %v2270_v24  ;;  %v2271_v21 = vmul.f32 %v2816_v35, %v2175_v25 }
 0x4da   : > { %v2818_v16 = vpop.eup %2817 }
 0x4db   : > { %v2342_v1 = vadd.f32 %v4413_v63, %v2306_v12  ;;  %v2307_v15 = vmul.f32 %v4412_v29, %v2271_v21  ;;  %v2272_v8 = vmul.f32 %v2818_v16, %v2176_v40 }
 0x4dc   : > { %v2820_v7 = vpop.eup %2819 }
 0x4dd   : > { %2374 = vst [vmem:[%s4147_s30 + $0xe0] sm:$0xff] %v2342_v1  ;;  %v2343_v30 = vadd.f32 %v4413_v63, %v2307_v15  ;;  %v2308_v38 = vmul.f32 %v4412_v29, %v2272_v8  ;;  %v2273_v44 = vmul.f32 %v2820_v7, %v2177_v48 }
 0x4df   : > { %2375 = vst [vmem:[%s4147_s30 + $0xe8] sm:$0xff] %v2343_v30  ;;  %v2344_v28 = vadd.f32 %v4413_v63, %v2308_v38  ;;  %v2309_v17 = vmul.f32 %v4412_v29, %v2273_v44 }
 0x4e1   : > { %2376 = vst [vmem:[%s4147_s30 + $0xf0] sm:$0xff] %v2344_v28  ;;  %v2345_v3 = vadd.f32 %v4413_v63, %v2309_v17 }
 0x4e3   : > { %2377 = vst [vmem:[%s4147_s30 + $0xf8] sm:$0xff] %v2345_v3 }
 0x4e4 PF: > { %s16_s21 = sadd.s32 1, %s2829_s21  }
 0x4e5   : > { %p13_p4 = scmp.ge.s32.totalorder %s16_s21, 4  }
 0x4e7   :  { %15 = sbr.rel (!%p13_p4) target bundleno = 1 (0x1), region = 74 }

</bundles_post_ra>
